<compile_context>
chip_gen: v6e
topology: v6e:2x2x1
jax: 0.10.0
libtpu: 0.0.40
codegen_flags: <defaults>
</compile_context>

<pallas_src>
import functools
import math

import jax
import jax.numpy as jnp
from jax.experimental import pallas as pl
from jax.experimental.pallas import tpu as pltpu
import numpy as np

EPSILON = float(np.finfo(float).eps)


def _mlp_kernel(xv_ref,
                w1_ref, b1_ref, w2_ref, b2_ref,
                w3_ref, b3_ref, w4_ref, b4_ref,
                out_ref, *, temp, dp):
    f32 = jnp.float32
    bf16 = jnp.bfloat16

    xv = xv_ref[...]                       # (rows, 2*dp) packed [x | vimp]
    x = xv[:, :dp]                         # static, lane-aligned slices
    v = xv[:, dp:]

    # Concrete gate. Eval mode: unif_noise == 0.5 so the noise logit cancels
    # exactly and only logit(vimp)/temp remains.  Padded vimp = 0 -> gate = 0.
    logit = jnp.log(v + EPSILON) - jnp.log(1.0 - v + EPSILON)
    gate = jax.nn.sigmoid(logit * (1.0 / temp))
    h = x * gate                           # f32

    def folded_layer(h, w_ref, b_ref):
        # Linear with eval-mode BatchNorm folded in (done at prep time), then
        # LeakyReLU(0.01).  bf16 operands, f32 accumulation, f32 bias/activation.
        z = jnp.dot(h.astype(bf16), w_ref[...],
                    preferred_element_type=f32) + b_ref[...]
        return jnp.where(z > 0, z, 0.01 * z)

    h = folded_layer(h, w1_ref, b1_ref)
    h = folded_layer(h, w2_ref, b2_ref)
    h = folded_layer(h, w3_ref, b3_ref)

    # Final Linear(300 -> 2).  Padded output lanes carry bias = -1e30 (f32), so
    # they vanish from the softmax and are sliced off in the wrapper.
    z = jnp.dot(h.astype(bf16), w4_ref[...],
                preferred_element_type=f32) + b4_ref[...]

    m = jnp.max(z, axis=1, keepdims=True)
    zc = z - m
    lse = jnp.log(jnp.sum(jnp.exp(zc), axis=1, keepdims=True))
    out_ref[...] = zc - lse


def _round_up(n, m):
    return (n + m - 1) // m * m


def _pad2(a, rows, cols, fill=0.0):
    return jnp.pad(a, ((0, rows - a.shape[0]), (0, cols - a.shape[1])),
                   constant_values=fill)


def prepare_params(params):
    """One-time parameter prep (call once, outside the jitted hot path):
    fold eval-mode BatchNorm1d into the preceding Linear, pad all operands to
    lane multiples, and cast matmul weights to bf16 (biases stay f32)."""
    f32 = jnp.float32
    bf16 = jnp.bfloat16

    def fold(w, b, gamma, beta, rmean, rvar):
        s = gamma / jnp.sqrt(rvar + 1e-5)
        return w * s[None, :], (b - rmean) * s + beta

    w1, b1 = fold(params["w1"], params["b1"], params["g1"], params["be1"],
                  params["rm1"], params["rv1"])
    w2, b2 = fold(params["w2"], params["b2"], params["g2"], params["be2"],
                  params["rm2"], params["rv2"])
    w3, b3 = fold(params["w3"], params["b3"], params["g3"], params["be3"],
                  params["rm3"], params["rv3"])
    w4, b4 = params["w4"], params["b4"]

    Dp = _round_up(w1.shape[0], 128)
    H1p = _round_up(w1.shape[1], 128)
    H2p = _round_up(w2.shape[1], 128)
    H3p = _round_up(w3.shape[1], 128)
    Cp = _round_up(w4.shape[1], 128)

    prep = {
        "w1": _pad2(w1, Dp, H1p).astype(bf16),
        "b1": _pad2(b1[None, :], 1, H1p).astype(f32),
        "w2": _pad2(w2, H1p, H2p).astype(bf16),
        "b2": _pad2(b2[None, :], 1, H2p).astype(f32),
        "w3": _pad2(w3, H2p, H3p).astype(bf16),
        "b3": _pad2(b3[None, :], 1, H3p).astype(f32),
        "w4": _pad2(w4, H3p, Cp).astype(bf16),
        # Padded logits get bias -1e30 (finite in f32) so they never win softmax.
        "b4": _pad2(b4[None, :], 1, Cp, fill=-1e30).astype(f32),
    }
    return jax.tree_util.tree_map(jax.block_until_ready, prep)


def variable_dropout_mlp_forward(x, vimp, prep, *, temp=0.1, num_classes=2,
                                 block_rows=128):
    B, _ = x.shape
    Dp, H1p = prep["w1"].shape
    H2p = prep["w2"].shape[1]
    H3p = prep["w3"].shape[1]
    Cp = prep["w4"].shape[1]
    Bp = _round_up(B, block_rows)

    # Hot-path prep is only: pad x/vimp rows & lanes, pack into one input.
    xp = _pad2(x.astype(jnp.float32), Bp, Dp)
    vp = _pad2(vimp.astype(jnp.float32), Bp, Dp)   # padded vimp=0 -> gate=0
    xv = jnp.concatenate([xp, vp], axis=1)         # (Bp, 2*Dp): one DMA/step

    grid = (Bp // block_rows,)

    row = lambda shape: pl.BlockSpec(shape, lambda i: (i, 0))
    # Grid-invariant weights/biases: constant index_map + single buffering
    # (second pipeline buffer would never be used).
    const = lambda shape: pl.BlockSpec(shape, lambda i: (0, 0),
                                       pipeline_mode=pl.Buffered(1))

    flops = 2 * Bp * (Dp * H1p + H1p * H2p + H2p * H3p + H3p * Cp)
    transcendentals = Bp * (3 * Dp + Cp + 1)
    weight_bytes = sum(int(prep[k].size) * prep[k].dtype.itemsize for k in prep)
    bytes_accessed = int(xv.size) * 4 + Bp * Cp * 4 + weight_bytes

    out = pl.pallas_call(
        functools.partial(_mlp_kernel, temp=float(temp), dp=Dp),
        out_shape=jax.ShapeDtypeStruct((Bp, Cp), jnp.float32),
        grid=grid,
        in_specs=[row((block_rows, 2 * Dp)),
                  const((Dp, H1p)), const((1, H1p)),
                  const((H1p, H2p)), const((1, H2p)),
                  const((H2p, H3p)), const((1, H3p)),
                  const((H3p, Cp)), const((1, Cp))],
        out_specs=row((block_rows, Cp)),
        compiler_params=pltpu.CompilerParams(
            dimension_semantics=("parallel",),
            # ~1.75 MiB single-buffered bf16 weights + double-buffered x/v/out
            # tiles + layer activations; 24 MiB leaves ample compiler slack and
            # fits v7x's 64 MiB per-TC VMEM comfortably.
            vmem_limit_bytes=24 * 1024 * 1024),
        cost_estimate=pl.CostEstimate(flops=flops,
                                      transcendentals=transcendentals,
                                      bytes_accessed=bytes_accessed),
    )(xv, prep["w1"], prep["b1"], prep["w2"], prep["b2"],
      prep["w3"], prep["b3"], prep["w4"], prep["b4"])

    return out[:B, :num_classes]


# ------------------------- pure-JAX reference (un-folded, un-padded, f32) -----
def variable_dropout_mlp_reference(x, vimp, params, *, temp=0.1):
    u = 0.5
    approx = (jnp.log(vimp + EPSILON) - jnp.log(1.0 - vimp + EPSILON)
              + math.log(u + EPSILON) - math.log(1.0 - u + EPSILON))
    gate = jax.nn.sigmoid(approx / temp)
    h = x * gate

    def layer(h, w, b, g, be, rm, rv):
        h = h @ w + b
        h = (h - rm) / jnp.sqrt(rv + 1e-5) * g + be
        return jnp.where(h > 0, h, 0.01 * h)          # eval Dropout = identity

    h = layer(h, params["w1"], params["b1"], params["g1"], params["be1"],
              params["rm1"], params["rv1"])
    h = layer(h, params["w2"], params["b2"], params["g2"], params["be2"],
              params["rm2"], params["rv2"])
    h = layer(h, params["w3"], params["b3"], params["g3"], params["be3"],
              params["rm3"], params["rv3"])
    out = h @ params["w4"] + params["b4"]
    return jax.nn.log_softmax(out, axis=1)


if __name__ == "__main__":
    B, D = 256, 20                  # batch rows x data_x_shape
    H1, H2, H3, C = 1000, 500, 300, 2
    temp = 1.0 / 10.0

    key = jax.random.PRNGKey(0)
    ks = jax.random.split(key, 22)

    x = jax.random.normal(ks[0], (B, D), jnp.float32)
    vimp = jax.random.uniform(ks[1], (B, D), jnp.float32, 0.05, 0.95)

    def linear(kw, kb, fin, fout):
        lim = 1.0 / np.sqrt(fin)
        w = jax.random.uniform(kw, (fin, fout), jnp.float32, -lim, lim)
        b = jax.random.uniform(kb, (fout,), jnp.float32, -lim, lim)
        return w, b

    def bn(kg, kb, km, kv, f):
        return (1.0 + 0.1 * jax.random.normal(kg, (f,), jnp.float32),
                0.1 * jax.random.normal(kb, (f,), jnp.float32),
                0.05 * jax.random.normal(km, (f,), jnp.float32),
                1.0 + 0.2 * jax.random.uniform(kv, (f,), jnp.float32))

    w1, b1 = linear(ks[2], ks[3], D, H1)
    g1, be1, rm1, rv1 = bn(ks[4], ks[5], ks[6], ks[7], H1)
    w2, b2 = linear(ks[8], ks[9], H1, H2)
    g2, be2, rm2, rv2 = bn(ks[10], ks[11], ks[12], ks[13], H2)
    w3, b3 = linear(ks[14], ks[15], H2, H3)
    g3, be3, rm3, rv3 = bn(ks[16], ks[17], ks[18], ks[19], H3)
    w4, b4 = linear(ks[20], ks[21], H3, C)

    params = dict(w1=w1, b1=b1, g1=g1, be1=be1, rm1=rm1, rv1=rv1,
                  w2=w2, b2=b2, g2=g2, be2=be2, rm2=rm2, rv2=rv2,
                  w3=w3, b3=b3, g3=g3, be3=be3, rm3=rm3, rv3=rv3,
                  w4=w4, b4=b4)

    # One-time prep (BN fold, pad, bf16 cast) — NOT inside the jitted hot path.
    prep = prepare_params(params)

    fwd = jax.jit(functools.partial(variable_dropout_mlp_forward,
                                    temp=temp, num_classes=C, block_rows=128))
    out = fwd(x, vimp, prep)
    out = jax.block_until_ready(out)

    ref = variable_dropout_mlp_reference(x, vimp, params, temp=temp)
    # bf16 matmul operands (folded BN weights) -> loosened tolerance vs. f32 ref.
    np.testing.assert_allclose(np.asarray(out), np.asarray(ref),
                               rtol=2e-2, atol=2e-2)

    print("KERNEL_OK")
</pallas_src>

<mosaic_0001>
module attributes {stable_mosaic.version = 11 : i64} {
  func.func @_mlp_kernel(%arg0: i32, %arg1: memref<128x256xf32, #tpu.memory_space<vmem>>, %arg2: memref<128x1024xbf16, #tpu.memory_space<vmem>>, %arg3: memref<1x1024xf32, #tpu.memory_space<vmem>>, %arg4: memref<1024x512xbf16, #tpu.memory_space<vmem>>, %arg5: memref<1x512xf32, #tpu.memory_space<vmem>>, %arg6: memref<512x384xbf16, #tpu.memory_space<vmem>>, %arg7: memref<1x384xf32, #tpu.memory_space<vmem>>, %arg8: memref<384x128xbf16, #tpu.memory_space<vmem>>, %arg9: memref<1x128xf32, #tpu.memory_space<vmem>>, %arg10: memref<128x128xf32, #tpu.memory_space<vmem>>) attributes {dimension_semantics = [#tpu.dimension_semantics<parallel>], iteration_bounds = array<i64: 2>, scalar_prefetch = 0 : i64, scratch_operands = 0 : i64, tpu.core_type = #tpu.core_type<tc>, window_params = [{transform_indices = @transform_0, window_bounds = array<i64: 128, 256>}, {pipeline_mode = #tpu.pipeline_mode<synchronous>, transform_indices = @transform_1, window_bounds = array<i64: 128, 1024>}, {pipeline_mode = #tpu.pipeline_mode<synchronous>, transform_indices = @transform_2, window_bounds = array<i64: 1, 1024>}, {pipeline_mode = #tpu.pipeline_mode<synchronous>, transform_indices = @transform_3, window_bounds = array<i64: 1024, 512>}, {pipeline_mode = #tpu.pipeline_mode<synchronous>, transform_indices = @transform_4, window_bounds = array<i64: 1, 512>}, {pipeline_mode = #tpu.pipeline_mode<synchronous>, transform_indices = @transform_5, window_bounds = array<i64: 512, 384>}, {pipeline_mode = #tpu.pipeline_mode<synchronous>, transform_indices = @transform_6, window_bounds = array<i64: 1, 384>}, {pipeline_mode = #tpu.pipeline_mode<synchronous>, transform_indices = @transform_7, window_bounds = array<i64: 384, 128>}, {pipeline_mode = #tpu.pipeline_mode<synchronous>, transform_indices = @transform_8, window_bounds = array<i64: 1, 128>}, {transform_indices = @transform_9, window_bounds = array<i64: 128, 128>}]} {
    %c0 = arith.constant 0 : index
    %c0_0 = arith.constant 0 : index
    %0 = vector.load %arg1[%c0, %c0_0] : memref<128x256xf32, #tpu.memory_space<vmem>>, vector<128x256xf32>
    %1 = vector.extract_strided_slice %0 {offsets = [0, 0], sizes = [128, 128], strides = [1, 1]} : vector<128x256xf32> to vector<128x128xf32>
    %2 = vector.extract_strided_slice %0 {offsets = [0, 128], sizes = [128, 128], strides = [1, 1]} : vector<128x256xf32> to vector<128x128xf32>
    %cst = arith.constant 2.22044605E-16 : f32
    %3 = vector.broadcast %cst : f32 to vector<128x128xf32>
    %4 = arith.addf %2, %3 : vector<128x128xf32>
    %5 = math.log %4 : vector<128x128xf32>
    %cst_1 = arith.constant 1.000000e+00 : f32
    %6 = vector.broadcast %cst_1 : f32 to vector<128x128xf32>
    %7 = arith.subf %6, %2 : vector<128x128xf32>
    %cst_2 = arith.constant 2.22044605E-16 : f32
    %8 = vector.broadcast %cst_2 : f32 to vector<128x128xf32>
    %9 = arith.addf %7, %8 : vector<128x128xf32>
    %10 = math.log %9 : vector<128x128xf32>
    %11 = arith.subf %5, %10 : vector<128x128xf32>
    %cst_3 = arith.constant 1.000000e+01 : f32
    %12 = vector.broadcast %cst_3 : f32 to vector<128x128xf32>
    %13 = arith.mulf %11, %12 : vector<128x128xf32>
    %14 = arith.negf %13 : vector<128x128xf32>
    %15 = math.exp %14 : vector<128x128xf32>
    %cst_4 = arith.constant 1.000000e+00 : f32
    %16 = vector.broadcast %cst_4 : f32 to vector<128x128xf32>
    %17 = arith.addf %16, %15 : vector<128x128xf32>
    %18 = arith.divf %16, %17 : vector<128x128xf32>
    %19 = arith.mulf %1, %18 : vector<128x128xf32>
    %20 = arith.truncf %19 : vector<128x128xf32> to vector<128x128xbf16>
    %c0_5 = arith.constant 0 : index
    %c0_6 = arith.constant 0 : index
    %21 = vector.load %arg2[%c0_5, %c0_6] : memref<128x1024xbf16, #tpu.memory_space<vmem>>, vector<128x1024xbf16>
    %cst_7 = arith.constant dense<0.000000e+00> : vector<128x1024xf32>
    %22 = tpu.matmul %20, %21, %cst_7 {dimension_numbers = #tpu.dot_dimension_numbers<[1], [0], [0], [1], [0, 0, 1, 1], [], []>} : vector<128x128xbf16>, vector<128x1024xbf16>, vector<128x1024xf32> -> vector<128x1024xf32>
    %c0_8 = arith.constant 0 : index
    %c0_9 = arith.constant 0 : index
    %23 = vector.load %arg3[%c0_8, %c0_9] : memref<1x1024xf32, #tpu.memory_space<vmem>>, vector<1x1024xf32>
    %24 = vector.broadcast %23 : vector<1x1024xf32> to vector<128x1024xf32>
    %25 = arith.addf %22, %24 : vector<128x1024xf32>
    %cst_10 = arith.constant 0.000000e+00 : f32
    %26 = vector.broadcast %cst_10 : f32 to vector<128x1024xf32>
    %27 = arith.cmpf ogt, %25, %26 : vector<128x1024xf32>
    %cst_11 = arith.constant 0.00999999977 : f32
    %28 = vector.broadcast %cst_11 : f32 to vector<128x1024xf32>
    %29 = arith.mulf %28, %25 : vector<128x1024xf32>
    %30 = arith.select %27, %25, %29 : vector<128x1024xi1>, vector<128x1024xf32>
    %31 = arith.truncf %30 : vector<128x1024xf32> to vector<128x1024xbf16>
    %c0_12 = arith.constant 0 : index
    %c0_13 = arith.constant 0 : index
    %32 = vector.load %arg4[%c0_12, %c0_13] : memref<1024x512xbf16, #tpu.memory_space<vmem>>, vector<1024x512xbf16>
    %cst_14 = arith.constant dense<0.000000e+00> : vector<128x512xf32>
    %33 = tpu.matmul %31, %32, %cst_14 {dimension_numbers = #tpu.dot_dimension_numbers<[1], [0], [0], [1], [0, 0, 1, 1], [], []>} : vector<128x1024xbf16>, vector<1024x512xbf16>, vector<128x512xf32> -> vector<128x512xf32>
    %c0_15 = arith.constant 0 : index
    %c0_16 = arith.constant 0 : index
    %34 = vector.load %arg5[%c0_15, %c0_16] : memref<1x512xf32, #tpu.memory_space<vmem>>, vector<1x512xf32>
    %35 = vector.broadcast %34 : vector<1x512xf32> to vector<128x512xf32>
    %36 = arith.addf %33, %35 : vector<128x512xf32>
    %cst_17 = arith.constant 0.000000e+00 : f32
    %37 = vector.broadcast %cst_17 : f32 to vector<128x512xf32>
    %38 = arith.cmpf ogt, %36, %37 : vector<128x512xf32>
    %cst_18 = arith.constant 0.00999999977 : f32
    %39 = vector.broadcast %cst_18 : f32 to vector<128x512xf32>
    %40 = arith.mulf %39, %36 : vector<128x512xf32>
    %41 = arith.select %38, %36, %40 : vector<128x512xi1>, vector<128x512xf32>
    %42 = arith.truncf %41 : vector<128x512xf32> to vector<128x512xbf16>
    %c0_19 = arith.constant 0 : index
    %c0_20 = arith.constant 0 : index
    %43 = vector.load %arg6[%c0_19, %c0_20] : memref<512x384xbf16, #tpu.memory_space<vmem>>, vector<512x384xbf16>
    %cst_21 = arith.constant dense<0.000000e+00> : vector<128x384xf32>
    %44 = tpu.matmul %42, %43, %cst_21 {dimension_numbers = #tpu.dot_dimension_numbers<[1], [0], [0], [1], [0, 0, 1, 1], [], []>} : vector<128x512xbf16>, vector<512x384xbf16>, vector<128x384xf32> -> vector<128x384xf32>
    %c0_22 = arith.constant 0 : index
    %c0_23 = arith.constant 0 : index
    %45 = vector.load %arg7[%c0_22, %c0_23] : memref<1x384xf32, #tpu.memory_space<vmem>>, vector<1x384xf32>
    %46 = vector.broadcast %45 : vector<1x384xf32> to vector<128x384xf32>
    %47 = arith.addf %44, %46 : vector<128x384xf32>
    %cst_24 = arith.constant 0.000000e+00 : f32
    %48 = vector.broadcast %cst_24 : f32 to vector<128x384xf32>
    %49 = arith.cmpf ogt, %47, %48 : vector<128x384xf32>
    %cst_25 = arith.constant 0.00999999977 : f32
    %50 = vector.broadcast %cst_25 : f32 to vector<128x384xf32>
    %51 = arith.mulf %50, %47 : vector<128x384xf32>
    %52 = arith.select %49, %47, %51 : vector<128x384xi1>, vector<128x384xf32>
    %53 = arith.truncf %52 : vector<128x384xf32> to vector<128x384xbf16>
    %c0_26 = arith.constant 0 : index
    %c0_27 = arith.constant 0 : index
    %54 = vector.load %arg8[%c0_26, %c0_27] : memref<384x128xbf16, #tpu.memory_space<vmem>>, vector<384x128xbf16>
    %cst_28 = arith.constant dense<0.000000e+00> : vector<128x128xf32>
    %55 = tpu.matmul %53, %54, %cst_28 {dimension_numbers = #tpu.dot_dimension_numbers<[1], [0], [0], [1], [0, 0, 1, 1], [], []>} : vector<128x384xbf16>, vector<384x128xbf16>, vector<128x128xf32> -> vector<128x128xf32>
    %c0_29 = arith.constant 0 : index
    %c0_30 = arith.constant 0 : index
    %56 = vector.load %arg9[%c0_29, %c0_30] : memref<1x128xf32, #tpu.memory_space<vmem>>, vector<1x128xf32>
    %57 = vector.broadcast %56 : vector<1x128xf32> to vector<128x128xf32>
    %58 = arith.addf %55, %57 : vector<128x128xf32>
    %cst_31 = arith.constant dense<0xFF800000> : vector<128xf32>
    %59 = vector.multi_reduction <maximumf>, %58, %cst_31 [1] : vector<128x128xf32> to vector<128xf32>
    %60 = vector.shape_cast %59 : vector<128xf32> to vector<128x1xf32>
    %61 = vector.broadcast %60 : vector<128x1xf32> to vector<128x128xf32>
    %62 = arith.subf %58, %61 : vector<128x128xf32>
    %63 = math.exp %62 : vector<128x128xf32>
    %cst_32 = arith.constant dense<0.000000e+00> : vector<128xf32>
    %64 = vector.multi_reduction <add>, %63, %cst_32 [1] : vector<128x128xf32> to vector<128xf32>
    %65 = vector.shape_cast %64 : vector<128xf32> to vector<128x1xf32>
    %66 = math.log %65 : vector<128x1xf32>
    %67 = vector.broadcast %66 : vector<128x1xf32> to vector<128x128xf32>
    %68 = arith.subf %62, %67 : vector<128x128xf32>
    %c0_33 = arith.constant 0 : index
    %c0_34 = arith.constant 0 : index
    %69 = vector.load %arg10[%c0_33, %c0_34] : memref<128x128xf32, #tpu.memory_space<vmem>>, vector<128x128xf32>
    tpu.vector_store %arg10[%c0_33, %c0_34], %68 {strides = array<i32>} : memref<128x128xf32, #tpu.memory_space<vmem>>, vector<128x128xf32>,
    return
  }
  func.func @transform_0(%arg0: i32) -> (i32, i32) {
    %c0_i32 = arith.constant 0 : i32
    %c0_i32_0 = arith.constant 0 : i32
    return %arg0, %c0_i32 : i32, i32
  }
  func.func @transform_1(%arg0: i32) -> (i32, i32) {
    %c0_i32 = arith.constant 0 : i32
    %c0_i32_0 = arith.constant 0 : i32
    %c0_i32_1 = arith.constant 0 : i32
    return %c0_i32, %c0_i32_0 : i32, i32
  }
  func.func @transform_2(%arg0: i32) -> (i32, i32) {
    %c0_i32 = arith.constant 0 : i32
    %c0_i32_0 = arith.constant 0 : i32
    %c0_i32_1 = arith.constant 0 : i32
    return %c0_i32, %c0_i32_0 : i32, i32
  }
  func.func @transform_3(%arg0: i32) -> (i32, i32) {
    %c0_i32 = arith.constant 0 : i32
    %c0_i32_0 = arith.constant 0 : i32
    %c0_i32_1 = arith.constant 0 : i32
    return %c0_i32, %c0_i32_0 : i32, i32
  }
  func.func @transform_4(%arg0: i32) -> (i32, i32) {
    %c0_i32 = arith.constant 0 : i32
    %c0_i32_0 = arith.constant 0 : i32
    %c0_i32_1 = arith.constant 0 : i32
    return %c0_i32, %c0_i32_0 : i32, i32
  }
  func.func @transform_5(%arg0: i32) -> (i32, i32) {
    %c0_i32 = arith.constant 0 : i32
    %c0_i32_0 = arith.constant 0 : i32
    %c0_i32_1 = arith.constant 0 : i32
    return %c0_i32, %c0_i32_0 : i32, i32
  }
  func.func @transform_6(%arg0: i32) -> (i32, i32) {
    %c0_i32 = arith.constant 0 : i32
    %c0_i32_0 = arith.constant 0 : i32
    %c0_i32_1 = arith.constant 0 : i32
    return %c0_i32, %c0_i32_0 : i32, i32
  }
  func.func @transform_7(%arg0: i32) -> (i32, i32) {
    %c0_i32 = arith.constant 0 : i32
    %c0_i32_0 = arith.constant 0 : i32
    %c0_i32_1 = arith.constant 0 : i32
    return %c0_i32, %c0_i32_0 : i32, i32
  }
  func.func @transform_8(%arg0: i32) -> (i32, i32) {
    %c0_i32 = arith.constant 0 : i32
    %c0_i32_0 = arith.constant 0 : i32
    %c0_i32_1 = arith.constant 0 : i32
    return %c0_i32, %c0_i32_0 : i32, i32
  }
  func.func @transform_9(%arg0: i32) -> (i32, i32) {
    %c0_i32 = arith.constant 0 : i32
    %c0_i32_0 = arith.constant 0 : i32
    return %arg0, %c0_i32 : i32, i32
  }
}

</mosaic_0001>

<bundles_post_ra>
// kernel: variable_dropout_mlp_forward.1
= control target key start
LH: loop header
LB: loop body
LE: loop exit
PB: predicated region body
PF: predicated region fallthrough
CT: control target
= control target key end

     0   :  { %14 = vsyncpa [#allocation3], 0  ;;  %s8100_s30 = smov 0   ;;  %s10972_s0 = inlined_call_operand.vmem [shape: f32[256,256], index: 0, kind: input, shape index: {}]   ;;  %s10973_s1 = inlined_call_operand.vmem [shape: bf16[128,1024], index: 1, kind: input, shape index: {}]   ;;  %s10974_s2 = inlined_call_operand.vmem [shape: f32[1,1024], index: 2, kind: input, shape index: {}]   ;;  %s10975_s3 = inlined_call_operand.hbm [shape: bf16[1024,512], index: 3, kind: input, shape index: {}]   ;;  %s10976_s4 = inlined_call_operand.vmem [shape: f32[1,512], index: 4, kind: input, shape index: {}]   ;;  %s10977_s5 = inlined_call_operand.vmem [shape: bf16[512,384], index: 5, kind: input, shape index: {}]   ;;  %s10978_s6 = inlined_call_operand.vmem [shape: f32[1,384], index: 6, kind: input, shape index: {}]   ;;  %s10979_s7 = inlined_call_operand.vmem [shape: bf16[384,128], index: 7, kind: input, shape index: {}]   ;;  %s10980_s8 = inlined_call_operand.vmem [shape: f32[1,128], index: 8, kind: input, shape index: {}]   ;;  %s10981_s9 = inlined_call_operand.vmem [shape: f32[256,128], index: 9, kind: output, shape index: {}]  }
   0x1 LB: > { %s6545_s10 = sadd.s32 4294967295, %s8044_s30   ;;  %p6547_p0 = scmp.ge.s32.totalorder %s8044_s30, 1  ;;  %s8044_s30 = sphi %s8100_s30, %s20_s30  }
   0x2   : > { %p245_p1 = scmp.lt.s32.totalorder %s8044_s30, 3  ;;  %s8046_s11 = smov [#allocation2]  }
   0x3   : > { %s263_s12 = sshll.u32 %s8046_s11, 4  ;;  %p8112_p3 = scmp.eq.s32.totalorder %s6545_s10, 0  ;;  %s264_s12 = int_to_ptr.vmem [resolvable:$true] %s263_s12 }
   0x4   : > { %p8108_p2 = pnand %p6547_p0, %p245_p1  ;;  %s8019_s15 = scalar_lea.vmem %s264_s12, 32768 }
   0x5   : > { %p8020_p7 = scmp.ne.s32.totalorder %s264_s12, %s8019_s15  ;;  %p8027_p10 = scmp.lt.s32.totalorder %s264_s12, %s264_s12 }
   0x6   : > { %p7261_p4 = pneg %p8108_p2  ;;  %p8028_p11 = scmp.lt.s32.totalorder %s8019_s15, %s8019_s15 }
   0x8   : > { %p7262_p5 = pnand %p8112_p3, %p7261_p4  ;;  %p8029_p12 = por %p8028_p11, %p8027_p10 }
   0xa   : > { %p8010_p6 = pneg %p7262_p5 }
   0xc   : > { %p8022_p8 = pnand %p8020_p7, %p8010_p6 }
   0xe   : > { %p8023_p9 = pneg %p8022_p8 }
  0x10   : > { %p8030_p13 = pnand %p8029_p12, %p8023_p9 }
  0x12   : > { %8033 = shalt.err (!%p8030_p13)
}
  0x13   : > { %s8047_s16 = smov 256   ;;  %s8048_s17 = smov 16  }
  0x14   : > { %7264 = dma.hbm_to_vmem [thread:$0]  (!%p7262_p5), %s10975_s3, 32768, %s264_s12, [#allocation3], %s8047_s16, %s8047_s16, %s8048_s17  }
  0x15   : > { %304 = sbr.rel (%p8108_p2) target bundleno = 1573 (0x625), region = 56 }
  0x1a   : > { %8039 = dma.done.wait (%p8112_p3), [#allocation3], 32768  }
  0x1b   : > { %8041 = vsyncadd (%p8112_p3), [#allocation3], 4294934528  ;;  %v8049_v0 = vmov 0   ;;  %s6552_s20 = sshll.u32 %s6545_s10, 4  ;;  %v707_v1 = vld [vmem:[%s10973_s1 + $0x1c0] sm:$0xff]  ;;  %v708_v3 = vld [vmem:[%s10973_s1 + $0x1c8] sm:$0xff] }
  0x1c   : > { %1109 = vmatprep.mubr.bf16.mxu0 %v8049_v0  ;;  %1222 = vmatprep.mubr.bf16.mxu1 %v8049_v0  ;;  %p342_p0 = scmp.lt.s32.totalorder %s6552_s20, 31  ;;  %v711_v2 = vld [vmem:[%s10973_s1 + $0x1e0] sm:$0xff]  ;;  %v712_v6 = vld [vmem:[%s10973_s1 + $0x1e8] sm:$0xff] }
  0x1d   : > { %v6630_v4 = vcombine.high %v707_v1, %v711_v2  ;;  %v6629_v5 = vcombine.low %v707_v1, %v711_v2  ;;  %v699_v7 = vld [vmem:[%s10973_s1 + $0x180] sm:$0xff]  ;;  %v6632_v9 = vcombine.high %v708_v3, %v712_v6  ;;  %v6631_v10 = vcombine.low %v708_v3, %v712_v6  ;;  %v700_v12 = vld [vmem:[%s10973_s1 + $0x188] sm:$0xff] }
  0x1e   : > { %v703_v8 = vld [vmem:[%s10973_s1 + $0x1a0] sm:$0xff]  ;;  %s11113_s20 = smov (!%p342_p0, %s6552_s20), 31  ;;  %v704_v13 = vld [vmem:[%s10973_s1 + $0x1a8] sm:$0xff] }
  0x1f   : > { %v6622_v11 = vcombine.high %v699_v7, %v703_v8  ;;  %v691_v14 = vld [vmem:[%s10973_s1 + $0x140] sm:$0xff]  ;;  %1077 = vmatprep.subr.bf16.mxu0 %v6630_v4  ;;  %v6624_v15 = vcombine.high %v700_v12, %v704_v13  ;;  %v692_v17 = vld [vmem:[%s10973_s1 + $0x148] sm:$0xff]  ;;  %1190 = vmatprep.subr.bf16.mxu1 %v6632_v9  ;;  %v6621_v19 = vcombine.low %v699_v7, %v703_v8  ;;  %s7016_s26 = sshll.u32 %s11113_s20, 4  ;;  %s6556_s27 = sshll.u32 %s11113_s20, 3 }
  0x20   : > { %v695_v16 = vld [vmem:[%s10973_s1 + $0x160] sm:$0xff]  ;;  %v696_v18 = vld [vmem:[%s10973_s1 + $0x168] sm:$0xff]  ;;  %1078 = vmatpush1.bf16.msra.mxu0 %v6629_v5  ;;  %1191 = vmatpush1.bf16.msra.mxu1 %v6631_v10  ;;  %v6623_v20 = vcombine.low %v700_v12, %v704_v13  ;;  %s8185_s17 = scalar_lea.vmem %s10972_s0, %s7016_s26  ;;  %s10935_s10 = scalar_lea.vmem %s10981_s9, %s6556_s27 }
  0x21   : > { %1079 = vmatprep.subr.bf16.mxu0 %v6622_v11  ;;  %v6614_v21 = vcombine.high %v691_v14, %v695_v16  ;;  %1192 = vmatprep.subr.bf16.mxu1 %v6624_v15  ;;  %v6616_v22 = vcombine.high %v692_v17, %v696_v18  ;;  %v683_v23 = vld [vmem:[%s10973_s1 + $0x100] sm:$0xff]  ;;  %v684_v25 = vld [vmem:[%s10973_s1 + $0x108] sm:$0xff]  ;;  %v6613_v27 = vcombine.low %v691_v14, %v695_v16  ;;  %v358_v37 = vld [vmem:[%s8185_s17 + $0x18] sm:$0xff] }
  0x22   : > { %v687_v24 = vld [vmem:[%s10973_s1 + $0x120] sm:$0xff]  ;;  %v688_v26 = vld [vmem:[%s10973_s1 + $0x128] sm:$0xff]  ;;  %v6615_v28 = vcombine.low %v692_v17, %v696_v18  ;;  %v388_v42 = vadd.f32 2.220446e-16, %v358_v37  ;;  %v436_v43 = vsub.f32 1.0, %v358_v37  ;;  %v362_v53 = vld [vmem:[%s8185_s17 + $0x38] sm:$0xff] }
  0x23   : > { %v6606_v29 = vcombine.high %v683_v23, %v687_v24  ;;  %v6608_v30 = vcombine.high %v684_v25, %v688_v26  ;;  %v675_v31 = vld [vmem:[%s10973_s1 + $0xc0] sm:$0xff]  ;;  %v676_v33 = vld [vmem:[%s10973_s1 + $0xc8] sm:$0xff]  ;;  %v6605_v36 = vcombine.low %v683_v23, %v687_v24  ;;  %v6607_v40 = vcombine.low %v684_v25, %v688_v26  ;;  %v366_v62 = vld [vmem:[%s8185_s17 + $0x58] sm:$0xff] }
  0x24   : > { %1080 = vmatpush1.bf16.msra.mxu0 %v6621_v19  ;;  %1193 = vmatpush1.bf16.msra.mxu1 %v6623_v20  ;;  %v679_v32 = vld [vmem:[%s10973_s1 + $0xe0] sm:$0xff]  ;;  %v680_v34 = vld [vmem:[%s10973_s1 + $0xe8] sm:$0xff]  ;;  %v452_v52 = vadd.f32 2.220446e-16, %v436_v43  ;;  %v390_v55 = vadd.f32 2.220446e-16, %v362_v53  ;;  %v438_v60 = vsub.f32 1.0, %v362_v53  ;;  %v392_v7 = vadd.f32 2.220446e-16, %v366_v62 }
  0x25   : > { %1081 = vmatprep.subr.bf16.mxu0 %v6614_v21  ;;  %1194 = vmatprep.subr.bf16.mxu1 %v6616_v22  ;;  %v356_v35 = vld [vmem:[%s8185_s17 + $0x8] sm:$0xff]  ;;  %v6598_v41 = vcombine.high %v675_v31, %v679_v32  ;;  %v6600_v44 = vcombine.high %v676_v33, %v680_v34  ;;  %v8204_v45 = vld [vmem:[%s10973_s1 + $0x80] sm:$0xff]  ;;  %v6597_v49 = vcombine.low %v675_v31, %v679_v32  ;;  %v440_v10 = vsub.f32 1.0, %v366_v62  ;;  %v370_v12 = vld [vmem:[%s8185_s17 + $0x78] sm:$0xff] }
  0x26   : > { %v387_v38 = vadd.f32 2.220446e-16, %v356_v35  ;;  %v435_v39 = vsub.f32 1.0, %v356_v35  ;;  %v671_v46 = vld [vmem:[%s10973_s1 + $0xa0] sm:$0xff]  ;;  %v360_v48 = vld [vmem:[%s8185_s17 + $0x28] sm:$0xff]  ;;  %v6599_v57 = vcombine.low %v676_v33, %v680_v34  ;;  %v454_v5 = vadd.f32 2.220446e-16, %v438_v60  ;;  %v8284_v32 = vld [vmem:[%s10973_s1 + $0x1d0] sm:$0xff] }
  0x27   : > { %v8213_v50 = vld [vmem:[%s10973_s1 + $0x88] sm:$0xff]  ;;  %v389_v54 = vadd.f32 2.220446e-16, %v360_v48  ;;  %v437_v56 = vsub.f32 1.0, %v360_v48  ;;  %v6590_v58 = vcombine.high %v8204_v45, %v671_v46  ;;  %v8223_v59 = vld [vmem:[%s10973_s1 + $0x40] sm:$0xff]  ;;  %v6589_v8 = vcombine.low %v8204_v45, %v671_v46  ;;  %v8289_v33 = vld [vmem:[%s10973_s1 + $0x1f0] sm:$0xff] }
  0x28   : > { %1082 = vmatpush1.bf16.msra.mxu0 %v6613_v27  ;;  %1195 = vmatpush1.bf16.msra.mxu1 %v6615_v28  ;;  %7815 = vlog2.f32 %v387_v38  ;;  %v451_v47 = vadd.f32 2.220446e-16, %v435_v39  ;;  %v672_v51 = vld [vmem:[%s10973_s1 + $0xa8] sm:$0xff]  ;;  %v8231_v1 = vld [vmem:[%s10973_s1 + $0x60] sm:$0xff]  ;;  %v456_v19 = vadd.f32 2.220446e-16, %v440_v10  ;;  %v394_v23 = vadd.f32 2.220446e-16, %v370_v12  ;;  %v8296_v37 = vld [vmem:[%s10973_s1 + $0x1d8] sm:$0xff] }
  0x29   : > { %1083 = vmatprep.subr.bf16.mxu0 %v6606_v29  ;;  %1196 = vmatprep.subr.bf16.mxu1 %v6608_v30  ;;  %7817 = vlog2.f32 %v388_v42  ;;  %v364_v61 = vld [vmem:[%s8185_s17 + $0x48] sm:$0xff]  ;;  %v6592_v63 = vcombine.high %v8213_v50, %v672_v51  ;;  %v453_v4 = vadd.f32 2.220446e-16, %v437_v56  ;;  %v6591_v13 = vcombine.low %v8213_v50, %v672_v51  ;;  %v8254_v16 = vld [vmem:[%s10973_s1] sm:$0xff]  ;;  %v374_v30 = vld [vmem:[%s8185_s17 + $0x98] sm:$0xff] }
  0x2a   : > { %7819 = vlog2.f32 %v451_v47  ;;  %v8236_v2 = vld [vmem:[%s10973_s1 + $0x48] sm:$0xff]  ;;  %v391_v6 = vadd.f32 2.220446e-16, %v364_v61  ;;  %v439_v9 = vsub.f32 1.0, %v364_v61  ;;  %v6582_v14 = vcombine.high %v8223_v59, %v8231_v1  ;;  %v8259_v17 = vld [vmem:[%s10973_s1 + $0x20] sm:$0xff]  ;;  %v8301_v38 = vld [vmem:[%s10973_s1 + $0x1f8] sm:$0xff] }
  0x2b   : > { %7821 = vlog2.f32 %v452_v52  ;;  %v8241_v3 = vld [vmem:[%s10973_s1 + $0x68] sm:$0xff]  ;;  %v442_v25 = vsub.f32 1.0, %v370_v12  ;;  %v6581_v27 = vcombine.low %v8223_v59, %v8231_v1  ;;  %v6574_v29 = vcombine.high %v8254_v16, %v8259_v17  ;;  %v378_v50 = vld [vmem:[%s8185_s17 + $0xb8] sm:$0xff] }
  0x2c   : > { %1084 = vmatpush1.bf16.msra.mxu0 %v6605_v36  ;;  %1197 = vmatpush1.bf16.msra.mxu1 %v6607_v40  ;;  %7823 = vlog2.f32 %v389_v54  ;;  %v368_v11 = vld [vmem:[%s8185_s17 + $0x68] sm:$0xff]  ;;  %v6584_v15 = vcombine.high %v8236_v2, %v8241_v3  ;;  %v455_v18 = vadd.f32 2.220446e-16, %v439_v9  ;;  %v6583_v28 = vcombine.low %v8236_v2, %v8241_v3 }
  0x2d   : > { %1085 = vmatprep.subr.bf16.mxu0 %v6598_v41  ;;  %1198 = vmatprep.subr.bf16.mxu1 %v6600_v44  ;;  %7825 = vlog2.f32 %v390_v55  ;;  %v393_v20 = vadd.f32 2.220446e-16, %v368_v11  ;;  %v8264_v21 = vld [vmem:[%s10973_s1 + $0x8] sm:$0xff]  ;;  %v441_v24 = vsub.f32 1.0, %v368_v11  ;;  %v6573_v31 = vcombine.low %v8254_v16, %v8259_v17 }
  0x2e   : > { %7827 = vlog2.f32 %v453_v4  ;;  %v8269_v22 = vld [vmem:[%s10973_s1 + $0x28] sm:$0xff]  ;;  %v458_v35 = vadd.f32 2.220446e-16, %v442_v25  ;;  %v396_v43 = vadd.f32 2.220446e-16, %v374_v30  ;;  %v444_v44 = vsub.f32 1.0, %v374_v30 }
  0x2f   : > { %7829 = vlog2.f32 %v454_v5  ;;  %v372_v26 = vld [vmem:[%s8185_s17 + $0x88] sm:$0xff]  ;;  %v457_v34 = vadd.f32 2.220446e-16, %v441_v24  ;;  %v6576_v36 = vcombine.high %v8264_v21, %v8269_v22  ;;  %v6575_v42 = vcombine.low %v8264_v21, %v8269_v22 }
  0x30   : > { %1086 = vmatpush1.bf16.msra.mxu0 %v6597_v49  ;;  %1199 = vmatpush1.bf16.msra.mxu1 %v6599_v57  ;;  %7831 = vlog2.f32 %v391_v6  ;;  %v395_v39 = vadd.f32 2.220446e-16, %v372_v26  ;;  %v443_v40 = vsub.f32 1.0, %v372_v26  ;;  %v6634_v46 = vcombine.high %v8284_v32, %v8289_v33  ;;  %v376_v49 = vld [vmem:[%s8185_s17 + $0xa8] sm:$0xff]  ;;  %v382_v26 = vld [vmem:[%s8185_s17 + $0xd8] sm:$0xff] }
  0x31   : > { %1087 = vmatprep.subr.bf16.mxu0 %v6590_v58  ;;  %1200 = vmatprep.subr.bf16.mxu1 %v6592_v63  ;;  %7833 = vlog2.f32 %v392_v7  ;;  %v6636_v53 = vcombine.high %v8296_v37, %v8301_v38  ;;  %v460_v54 = vadd.f32 2.220446e-16, %v444_v44  ;;  %v397_v57 = vadd.f32 2.220446e-16, %v376_v49  ;;  %v380_v22 = vld [vmem:[%s8185_s17 + $0xc8] sm:$0xff] }
  0x32   : > { %7835 = vlog2.f32 %v455_v18  ;;  %v459_v48 = vadd.f32 2.220446e-16, %v443_v40  ;;  %v398_v58 = vadd.f32 2.220446e-16, %v378_v50  ;;  %v445_v61 = vsub.f32 1.0, %v376_v49 }
  0x33   : > { %7837 = vlog2.f32 %v456_v19  ;;  %v446_v62 = vsub.f32 1.0, %v378_v50 }
  0x34   : > { %1088 = vmatpush1.bf16.msra.mxu0 %v6589_v8  ;;  %1201 = vmatpush1.bf16.msra.mxu1 %v6591_v13  ;;  %7839 = vlog2.f32 %v393_v20  ;;  %v461_v6 = vadd.f32 2.220446e-16, %v445_v61 }
  0x35   : > { %1089 = vmatprep.subr.bf16.mxu0 %v6582_v14  ;;  %1202 = vmatprep.subr.bf16.mxu1 %v6584_v15  ;;  %v7816_v41 = vpop.eup %7815  ;;  %7841 = vlog2.f32 %v394_v23  ;;  %v462_v10 = vadd.f32 2.220446e-16, %v446_v62 }
  0x36   : > { %v7818_v45 = vpop.eup %7817  ;;  %v404_v47 = vmul.f32 0.6931472, %v7816_v41  ;;  %7843 = vlog2.f32 %v457_v34 }
  0x37   : > { %v7820_v51 = vpop.eup %7819  ;;  %v406_v52 = vmul.f32 0.6931472, %v7818_v45  ;;  %7845 = vlog2.f32 %v458_v35 }
  0x38   : > { %1090 = vmatpush1.bf16.msra.mxu0 %v6581_v27  ;;  %1203 = vmatpush1.bf16.msra.mxu1 %v6583_v28  ;;  %v7822_v55 = vpop.eup %7821  ;;  %v468_v56 = vmul.f32 0.6931472, %v7820_v51  ;;  %7847 = vlog2.f32 %v395_v39  ;;  %v448_v51 = vsub.f32 1.0, %v382_v26 }
  0x39   : > { %1091 = vmatprep.subr.bf16.mxu0 %v6574_v29  ;;  %1204 = vmatprep.subr.bf16.mxu1 %v6576_v36  ;;  %v7824_v59 = vpop.eup %7823  ;;  %v470_v60 = vmul.f32 0.6931472, %v7822_v55  ;;  %7849 = vlog2.f32 %v396_v43  ;;  %v399_v36 = vadd.f32 2.220446e-16, %v380_v22  ;;  %v400_v43 = vadd.f32 2.220446e-16, %v382_v26  ;;  %v386_v26 = vld [vmem:[%s8185_s17 + $0xf8] sm:$0xff] }
  0x3a   : > { %v7826_v63 = vpop.eup %7825  ;;  %v499_v1 = vsub.f32 %v404_v47, %v468_v56  ;;  %v408_v2 = vmul.f32 0.6931472, %v7824_v59  ;;  %7851 = vlog2.f32 %v459_v48  ;;  %v447_v47 = vsub.f32 1.0, %v380_v22 }
  0x3b   : > { %v7828_v3 = vpop.eup %7827  ;;  %v500_v4 = vsub.f32 %v406_v52, %v470_v60  ;;  %v410_v5 = vmul.f32 0.6931472, %v7826_v63  ;;  %7853 = vlog2.f32 %v460_v54 }
  0x3c   : > { %1092 = vmatpush1.bf16.msra.mxu0 %v6573_v31  ;;  %1205 = vmatpush1.bf16.msra.mxu1 %v6575_v42  ;;  %v7830_v7 = vpop.eup %7829  ;;  %v6557_v8 = vmul.f32 -10.0, %v499_v1  ;;  %v472_v9 = vmul.f32 0.6931472, %v7828_v3  ;;  %7855 = vlog2.f32 %v397_v57  ;;  %v463_v63 = vadd.f32 2.220446e-16, %v447_v47 }
  0x3d   : > { %1303 = vmatprep.subr.bf16.mxu0 %v6634_v46  ;;  %1416 = vmatprep.subr.bf16.mxu1 %v6636_v53  ;;  %v7832_v11 = vpop.eup %7831  ;;  %v6558_v12 = vmul.f32 -10.0, %v500_v4  ;;  %v474_v13 = vmul.f32 0.6931472, %v7830_v7  ;;  %7857 = vlog2.f32 %v398_v58  ;;  %v464_v4 = vadd.f32 2.220446e-16, %v448_v51 }
  0x3e   : > { %v7834_v14 = vpop.eup %7833  ;;  %v547_v15 = vmul.f32 1.442695, %v6557_v8  ;;  %v501_v16 = vsub.f32 %v408_v2, %v472_v9  ;;  %v412_v17 = vmul.f32 0.6931472, %v7832_v11  ;;  %7859 = vlog2.f32 %v461_v6 }
  0x3f   : > { %v7836_v18 = vpop.eup %7835  ;;  %v549_v19 = vmul.f32 1.442695, %v6558_v12  ;;  %v502_v20 = vsub.f32 %v410_v5, %v474_v13  ;;  %v414_v21 = vmul.f32 0.6931472, %v7834_v14  ;;  %7861 = vlog2.f32 %v462_v10 }
  0x40   : > { %v7838_v23 = vpop.eup %7837  ;;  %7863 = vpow2.f32 %v547_v15  ;;  %v6559_v24 = vmul.f32 -10.0, %v501_v16  ;;  %v476_v25 = vmul.f32 0.6931472, %v7836_v18 }
  0x41   : > { %v7840_v27 = vpop.eup %7839  ;;  %7865 = vpow2.f32 %v549_v19  ;;  %v6560_v28 = vmul.f32 -10.0, %v502_v20  ;;  %v478_v29 = vmul.f32 0.6931472, %v7838_v23 }
  0x42   : > { %v7842_v30 = vpop.eup %7841  ;;  %v551_v31 = vmul.f32 1.442695, %v6559_v24  ;;  %v503_v34 = vsub.f32 %v412_v17, %v476_v25  ;;  %v416_v35 = vmul.f32 0.6931472, %v7840_v27  ;;  %v384_v24 = vld [vmem:[%s8185_s17 + $0xe8] sm:$0xff] }
  0x43   : > { %v7844_v39 = vpop.eup %7843  ;;  %v553_v40 = vmul.f32 1.442695, %v6560_v28  ;;  %v504_v41 = vsub.f32 %v414_v21, %v478_v29  ;;  %v418_v42 = vmul.f32 0.6931472, %v7842_v30 }
  0x44   : > { %v7846_v44 = vpop.eup %7845  ;;  %7867 = vpow2.f32 %v551_v31  ;;  %v6561_v45 = vmul.f32 -10.0, %v503_v34  ;;  %v480_v46 = vmul.f32 0.6931472, %v7844_v39  ;;  %v401_v39 = vadd.f32 2.220446e-16, %v384_v24 }
  0x45   : > { %v7848_v48 = vpop.eup %7847  ;;  %7869 = vpow2.f32 %v553_v40  ;;  %v6562_v49 = vmul.f32 -10.0, %v504_v41  ;;  %v482_v50 = vmul.f32 0.6931472, %v7846_v44  ;;  %v402_v40 = vadd.f32 2.220446e-16, %v386_v26 }
  0x46   : > { %v7850_v52 = vpop.eup %7849  ;;  %v555_v53 = vmul.f32 1.442695, %v6561_v45  ;;  %v505_v54 = vsub.f32 %v416_v35, %v480_v46  ;;  %v420_v55 = vmul.f32 0.6931472, %v7848_v48  ;;  %7871 = vlog2.f32 %v399_v36 }
  0x47   : > { %v7852_v56 = vpop.eup %7851  ;;  %v557_v57 = vmul.f32 1.442695, %v6562_v49  ;;  %v506_v58 = vsub.f32 %v418_v42, %v482_v50  ;;  %v422_v59 = vmul.f32 0.6931472, %v7850_v52  ;;  %7873 = vlog2.f32 %v400_v43 }
  0x48   : > { %v7854_v60 = vpop.eup %7853  ;;  %7875 = vpow2.f32 %v555_v53  ;;  %v6563_v61 = vmul.f32 -10.0, %v505_v54  ;;  %v484_v62 = vmul.f32 0.6931472, %v7852_v56  ;;  %v449_v43 = vsub.f32 1.0, %v384_v24 }
  0x49   : > { %v7856_v1 = vpop.eup %7855  ;;  %7877 = vpow2.f32 %v557_v57  ;;  %v6564_v2 = vmul.f32 -10.0, %v506_v58  ;;  %v486_v3 = vmul.f32 0.6931472, %v7854_v60  ;;  %v450_v46 = vsub.f32 1.0, %v386_v26 }
  0x4a   : > { %v7858_v5 = vpop.eup %7857  ;;  %v559_v6 = vmul.f32 1.442695, %v6563_v61  ;;  %v507_v7 = vsub.f32 %v420_v55, %v484_v62  ;;  %v424_v8 = vmul.f32 0.6931472, %v7856_v1  ;;  %7879 = vlog2.f32 %v463_v63  ;;  %v357_v63 = vld [vmem:[%s8185_s17 + $0x10] sm:$0xff] }
  0x4b   : > { %v7860_v9 = vpop.eup %7859  ;;  %v561_v10 = vmul.f32 1.442695, %v6564_v2  ;;  %v508_v11 = vsub.f32 %v422_v59, %v486_v3  ;;  %v426_v12 = vmul.f32 0.6931472, %v7858_v5  ;;  %7881 = vlog2.f32 %v464_v4  ;;  %v355_v59 = vld [vmem:[%s8185_s17] sm:$0xff]  ;;  %v701_v4 = vld [vmem:[%s10973_s1 + $0x190] sm:$0xff] }
  0x4c   : > { %v7862_v13 = vpop.eup %7861  ;;  %v488_v14 = vmul.f32 0.6931472, %v7860_v9  ;;  %v6565_v16 = vmul.f32 -10.0, %v507_v7  ;;  %7883 = vpow2.f32 %v559_v6  ;;  %v465_v57 = vadd.f32 2.220446e-16, %v449_v43  ;;  %v702_v9 = vld [vmem:[%s10973_s1 + $0x198] sm:$0xff] }
  0x4d   : > { %v7864_v15 = vpop.eup %7863  ;;  %v490_v17 = vmul.f32 0.6931472, %v7862_v13  ;;  %v6566_v20 = vmul.f32 -10.0, %v508_v11  ;;  %7885 = vpow2.f32 %v561_v10  ;;  %v466_v61 = vadd.f32 2.220446e-16, %v450_v46  ;;  %v706_v10 = vld [vmem:[%s10973_s1 + $0x1b8] sm:$0xff] }
  0x4e   : > { %v7866_v18 = vpop.eup %7865  ;;  %v579_v19 = vadd.f32 1.0, %v7864_v15  ;;  %v509_v21 = vsub.f32 %v424_v8, %v488_v14  ;;  %v563_v28 = vmul.f32 1.442695, %v6565_v16  ;;  %v705_v8 = vld [vmem:[%s10973_s1 + $0x1b0] sm:$0xff]  ;;  %v6633_v13 = vcombine.low %v8284_v32, %v8289_v33  ;;  %v359_v15 = vld [vmem:[%s8185_s17 + $0x20] sm:$0xff]  ;;  %v8350_v33 = vld [vmem:[%s10973_s1 + $0x158] sm:$0xff] }
  0x4f   : > { %v580_v22 = vadd.f32 1.0, %v7866_v18  ;;  %v510_v23 = vsub.f32 %v426_v12, %v490_v17  ;;  %v565_v34 = vmul.f32 1.442695, %v6566_v20  ;;  %v6635_v14 = vcombine.low %v8296_v37, %v8301_v38  ;;  %v361_v16 = vld [vmem:[%s8185_s17 + $0x30] sm:$0xff]  ;;  %v8355_v37 = vld [vmem:[%s10973_s1 + $0x178] sm:$0xff] }
  0x50   : > { %7887 = vrcp.f32 %v579_v19  ;;  %v6567_v25 = vmul.f32 -10.0, %v509_v21  ;;  %v8340_v19 = vld [vmem:[%s10973_s1 + $0x150] sm:$0xff]  ;;  %v6626_v21 = vcombine.high %v701_v4, %v705_v8  ;;  %v686_v43 = vld [vmem:[%s10973_s1 + $0x118] sm:$0xff] }
  0x51   : > { %v7868_v27 = vpop.eup %7867  ;;  %7889 = vrcp.f32 %v580_v22  ;;  %v6568_v29 = vmul.f32 -10.0, %v510_v23  ;;  %v6628_v22 = vcombine.high %v702_v9, %v706_v10  ;;  %v8345_v32 = vld [vmem:[%s10973_s1 + $0x170] sm:$0xff] }
  0x52   : > { %v7870_v30 = vpop.eup %7869  ;;  %v581_v31 = vadd.f32 1.0, %v7868_v27  ;;  %v567_v42 = vmul.f32 1.442695, %v6567_v25 }
  0x53   : > { %v7872_v35 = vpop.eup %7871  ;;  %v582_v36 = vadd.f32 1.0, %v7870_v30  ;;  %v569_v45 = vmul.f32 1.442695, %v6568_v29  ;;  %v6627_v29 = vcombine.low %v702_v9, %v706_v10  ;;  %v673_v9 = vld [vmem:[%s10973_s1 + $0xb0] sm:$0xff] }
  0x54   : > { %v7874_v41 = vpop.eup %7873  ;;  %7891 = vrcp.f32 %v581_v31  ;;  %v428_v49 = vmul.f32 0.6931472, %v7872_v35  ;;  %v6618_v31 = vcombine.high %v8340_v19, %v8345_v32 }
  0x55   : > { %v7876_v44 = vpop.eup %7875  ;;  %7893 = vrcp.f32 %v582_v36  ;;  %v430_v52 = vmul.f32 0.6931472, %v7874_v41  ;;  %v8368_v36 = vld [vmem:[%s10973_s1 + $0x110] sm:$0xff] }
  0x56   : > { %v7878_v47 = vpop.eup %7877  ;;  %v583_v48 = vadd.f32 1.0, %v7876_v44  ;;  %7895 = vpow2.f32 %v563_v28  ;;  %v6625_v28 = vcombine.low %v701_v4, %v705_v8  ;;  %v690_v44 = vld [vmem:[%s10973_s1 + $0x138] sm:$0xff]  ;;  %v669_v8 = vld [vmem:[%s10973_s1 + $0x90] sm:$0xff] }
  0x57   : > { %v7880_v50 = vpop.eup %7879  ;;  %v584_v51 = vadd.f32 1.0, %v7878_v47  ;;  %7897 = vpow2.f32 %v565_v34  ;;  %v6620_v34 = vcombine.high %v8350_v33, %v8355_v37  ;;  %v363_v47 = vld [vmem:[%s8185_s17 + $0x40] sm:$0xff]  ;;  %v6611_v4 = vcombine.low %v686_v43, %v690_v44 }
  0x58   : > { %v7882_v53 = vpop.eup %7881  ;;  %7899 = vrcp.f32 %v583_v48  ;;  %v492_v54 = vmul.f32 0.6931472, %v7880_v50  ;;  %v365_v48 = vld [vmem:[%s8185_s17 + $0x50] sm:$0xff]  ;;  %v6617_v50 = vcombine.low %v8340_v19, %v8345_v32 }
  0x59   : > { %7901 = vrcp.f32 %v584_v51  ;;  %v494_v55 = vmul.f32 0.6931472, %v7882_v53  ;;  %v7884_v58 = vpop.eup %7883  ;;  %v6619_v51 = vcombine.low %v8350_v33, %v8355_v37  ;;  %v661_v37 = vld [vmem:[%s10973_s1 + $0x50] sm:$0xff] }
  0x5a   : > { %v511_v56 = vsub.f32 %v428_v49, %v492_v54  ;;  %7903 = vlog2.f32 %v401_v39  ;;  %v7886_v62 = vpop.eup %7885  ;;  %v585_v5 = vadd.f32 1.0, %v7884_v58  ;;  %v6612_v54 = vcombine.high %v686_v43, %v690_v44  ;;  %v654_v43 = vld [vmem:[%s10973_s1 + $0x18] sm:$0xff] }
  0x5b   : > { %v512_v60 = vsub.f32 %v430_v52, %v494_v55  ;;  %7905 = vlog2.f32 %v402_v40  ;;  %v586_v11 = vadd.f32 1.0, %v7886_v62  ;;  %v8391_v55 = vld [vmem:[%s10973_s1 + $0xd0] sm:$0xff]  ;;  %v682_v62 = vld [vmem:[%s10973_s1 + $0xf8] sm:$0xff] }
  0x5c   : > { %7907 = vpow2.f32 %v567_v42  ;;  %v6569_v6 = vmul.f32 -10.0, %v511_v56  ;;  %v689_v42 = vld [vmem:[%s10973_s1 + $0x130] sm:$0xff]  ;;  %v658_v44 = vld [vmem:[%s10973_s1 + $0x38] sm:$0xff] }
  0x5d   : > { %v7888_v1 = vpop.eup %7887  ;;  %7909 = vpow2.f32 %v569_v45  ;;  %v6570_v12 = vmul.f32 -10.0, %v512_v60  ;;  %v6610_v53 = vcombine.high %v8368_v36, %v689_v42  ;;  %v681_v60 = vld [vmem:[%s10973_s1 + $0xf0] sm:$0xff] }
  0x5e   : > { %v7890_v2 = vpop.eup %7889  ;;  %v627_v3 = vmul.f32 %v7888_v1, %v355_v59  ;;  %7911 = vlog2.f32 %v465_v57  ;;  %v571_v38 = vmul.f32 1.442695, %v6569_v6  ;;  %v6602_v6 = vcombine.high %v8391_v55, %v681_v60 }
  0x5f   : > { %v628_v7 = vmul.f32 %v7890_v2, %v357_v63  ;;  %7913 = vlog2.f32 %v466_v61  ;;  %v573_v26 = vmul.f32 1.442695, %v6570_v12  ;;  %v678_v61 = vld [vmem:[%s10973_s1 + $0xd8] sm:$0xff]  ;;  %v6601_v32 = vcombine.low %v8391_v55, %v681_v60  ;;  %v7281_v60 = vld [vmem:[#allocation2 + $0xe4] ss:$16 sps:$4 sm:$0xff]  }
  0x60   : > { %7915 = vrcp.f32 %v585_v5  ;;  %v6603_v33 = vcombine.low %v678_v61, %v682_v62 }
  0x61   : > { %v7892_v17 = vpop.eup %7891  ;;  %v8335_v18 = vpack.c.bf16 %v628_v7, %v627_v3  ;;  %7917 = vrcp.f32 %v586_v11  ;;  %v6609_v3 = vcombine.low %v8368_v36, %v689_v42  ;;  %v6604_v7 = vcombine.high %v678_v61, %v682_v62  ;;  %v657_v42 = vld [vmem:[%s10973_s1 + $0x30] sm:$0xff] }
  0x62   : > { %v7894_v20 = vpop.eup %7893  ;;  %v629_v24 = vmul.f32 %v7892_v17, %v359_v15  ;;  %7919 = vpow2.f32 %v571_v38  ;;  %v670_v15 = vld [vmem:[%s10973_s1 + $0x98] sm:$0xff]  ;;  %v665_v38 = vld [vmem:[%s10973_s1 + $0x70] sm:$0xff]  ;;  %v6593_v36 = vcombine.low %v669_v8, %v673_v9 }
  0x63   : > { %v7896_v23 = vpop.eup %7895  ;;  %1110 = vmatmul.mubr.bf16.vlgmr.msra.gmra.mxu0 %v8335_v18  ;;  %1223 = vmatmul.mubr.bf16.vlgmr.msra.gmra.mxu1 %v8335_v18  ;;  %v630_v25 = vmul.f32 %v7894_v20, %v361_v16  ;;  %7921 = vpow2.f32 %v573_v26  ;;  %v674_v16 = vld [vmem:[%s10973_s1 + $0xb8] sm:$0xff]  ;;  %v367_v20 = vld [vmem:[%s8185_s17 + $0x60] sm:$0xff]  ;;  %v6594_v26 = vcombine.high %v669_v8, %v673_v9 }
  0x64   : > { %v7898_v27 = vpop.eup %7897  ;;  %1304 = vmatpush1.bf16.msra.mxu0 %v6633_v13  ;;  %1417 = vmatpush1.bf16.msra.mxu1 %v6635_v14  ;;  %v587_v39 = vadd.f32 1.0, %v7896_v23  ;;  %v662_v23 = vld [vmem:[%s10973_s1 + $0x58] sm:$0xff]  ;;  %v7284_v61 = vld [vmem:[#allocation2 + $0x2e4] ss:$16 sps:$4 sm:$0xff]  }
  0x65   : > { %v7900_v30 = vpop.eup %7899  ;;  %1119 = vmatprep.mubr.bf16.mxu0 %v8049_v0  ;;  %1232 = vmatprep.mubr.bf16.mxu1 %v8049_v0  ;;  %v8370_v41 = vpack.c.bf16 %v630_v25, %v629_v24  ;;  %v588_v45 = vadd.f32 1.0, %v7898_v27  ;;  %v666_v24 = vld [vmem:[%s10973_s1 + $0x78] sm:$0xff]  ;;  %v6596_v27 = vcombine.high %v670_v15, %v674_v16 }
  0x66   : > { %v7902_v35 = vpop.eup %7901  ;;  %1305 = vmatprep.subr.bf16.mxu0 %v6626_v21  ;;  %1418 = vmatprep.subr.bf16.mxu1 %v6628_v22  ;;  %7923 = vrcp.f32 %v587_v39  ;;  %v631_v58 = vmul.f32 %v7900_v30, %v363_v47  ;;  %v369_v21 = vld [vmem:[%s8185_s17 + $0x70] sm:$0xff]  ;;  %v6595_v39 = vcombine.low %v670_v15, %v674_v16  ;;  %v6586_v47 = vcombine.high %v661_v37, %v665_v38 }
  0x67   : > { %v7904_v40 = vpop.eup %7903  ;;  %v632_v59 = vmul.f32 %v7902_v35, %v365_v48  ;;  %7925 = vrcp.f32 %v588_v45  ;;  %v371_v45 = vld [vmem:[%s8185_s17 + $0x80] sm:$0xff]  ;;  %v6587_v55 = vcombine.low %v662_v23, %v666_v24 }
  0x68   : > { %v7906_v46 = vpop.eup %7905  ;;  %1306 = vmatpush1.bf16.msra.mxu0 %v6625_v28  ;;  %1419 = vmatpush1.bf16.msra.mxu1 %v6627_v29  ;;  %v432_v56 = vmul.f32 0.6931472, %v7904_v40  ;;  %v653_v40 = vld [vmem:[%s10973_s1 + $0x10] sm:$0xff] }
  0x69   : > { %v7908_v49 = vpop.eup %7907  ;;  %1307 = vmatprep.subr.bf16.mxu0 %v6618_v31  ;;  %1420 = vmatprep.subr.bf16.mxu1 %v6620_v34  ;;  %v434_v63 = vmul.f32 0.6931472, %v7906_v46  ;;  %v8414_v13 = vpack.c.bf16 %v632_v59, %v631_v58  ;;  %v373_v46 = vld [vmem:[%s8185_s17 + $0x90] sm:$0xff]  ;;  %v6577_v62 = vcombine.low %v653_v40, %v657_v42 }
  0x6a   : > { %v7910_v52 = vpop.eup %7909  ;;  %v589_v10 = vadd.f32 1.0, %v7908_v49  ;;  %v6588_v49 = vcombine.high %v662_v23, %v666_v24 }
  0x6b   : > { %v7912_v57 = vpop.eup %7911  ;;  %1120 = vmatmul.mubr.bf16.gmra.mxu0 %v8370_v41  ;;  %1233 = vmatmul.mubr.bf16.gmra.mxu1 %v8370_v41  ;;  %v590_v14 = vadd.f32 1.0, %v7910_v52 }
  0x6c   : > { %v7914_v1 = vpop.eup %7913  ;;  %1129 = vmatprep.mubr.bf16.mxu0 %v8049_v0  ;;  %1242 = vmatprep.mubr.bf16.mxu1 %v8049_v0  ;;  %v496_v2 = vmul.f32 0.6931472, %v7912_v57  ;;  %7927 = vrcp.f32 %v589_v10  ;;  %v6580_v57 = vcombine.high %v654_v43, %v658_v44 }
  0x6d   : > { %1308 = vmatpush1.bf16.msra.mxu0 %v6617_v50  ;;  %1421 = vmatpush1.bf16.msra.mxu1 %v6619_v51  ;;  %v498_v5 = vmul.f32 0.6931472, %v7914_v1  ;;  %v7916_v12 = vpop.eup %7915  ;;  %7929 = vrcp.f32 %v590_v14  ;;  %v375_v1 = vld [vmem:[%s8185_s17 + $0xa0] sm:$0xff]  ;;  %v381_v14 = vld [vmem:[%s8185_s17 + $0xd0] sm:$0xff] }
  0x6e   : > { %1309 = vmatprep.subr.bf16.mxu0 %v6610_v53  ;;  %1422 = vmatprep.subr.bf16.mxu1 %v6612_v54  ;;  %v513_v11 = vsub.f32 %v432_v56, %v496_v2  ;;  %v7918_v19 = vpop.eup %7917  ;;  %v633_v30 = vmul.f32 %v7916_v12, %v367_v20  ;;  %v6585_v54 = vcombine.low %v661_v37, %v665_v38  ;;  %v377_v2 = vld [vmem:[%s8185_s17 + $0xb0] sm:$0xff]  ;;  %v379_v12 = vld [vmem:[%s8185_s17 + $0xc0] sm:$0xff] }
  0x6f   : > { %v514_v17 = vsub.f32 %v434_v63, %v498_v5  ;;  %v7920_v29 = vpop.eup %7919  ;;  %v634_v31 = vmul.f32 %v7918_v19, %v369_v21  ;;  %v6578_v56 = vcombine.high %v653_v40, %v657_v42  ;;  %v6579_v63 = vcombine.low %v654_v43, %v658_v44  ;;  %v383_v21 = vld [vmem:[%s8185_s17 + $0xe0] sm:$0xff] }
  0x70   : > { %v6571_v22 = vmul.f32 -10.0, %v513_v11  ;;  %v7922_v35 = vpop.eup %7921  ;;  %v591_v48 = vadd.f32 1.0, %v7920_v29  ;;  %v7285_v29 = vld [vmem:[#allocation2 + $0xc0] ss:$16 sps:$4 sm:$0xff]   ;;  %v7305_v43 = vld [vmem:[#allocation2 + $0x64] ss:$16 sps:$4 sm:$0xff]  }
  0x71   : > { %1310 = vmatpush1.bf16.msra.mxu0 %v6609_v3  ;;  %1423 = vmatpush1.bf16.msra.mxu1 %v6611_v4  ;;  %v6572_v25 = vmul.f32 -10.0, %v514_v17  ;;  %v8455_v51 = vpack.c.bf16 %v634_v31, %v633_v30  ;;  %v592_v52 = vadd.f32 1.0, %v7922_v35  ;;  %v7288_v30 = vld [vmem:[#allocation2 + $0x2c0] ss:$16 sps:$4 sm:$0xff]   ;;  %v7293_v31 = vld [vmem:[#allocation2 + $0xa4] ss:$16 sps:$4 sm:$0xff]  }
  0x72   : > { %1311 = vmatprep.subr.bf16.mxu0 %v6602_v6  ;;  %1424 = vmatprep.subr.bf16.mxu1 %v6604_v7  ;;  %v575_v28 = vmul.f32 1.442695, %v6571_v22  ;;  %v385_v22 = vld [vmem:[%s8185_s17 + $0xf0] sm:$0xff] }
  0x73   : > { %1130 = vmatmul.mubr.bf16.gmra.mxu0 %v8414_v13  ;;  %1243 = vmatmul.mubr.bf16.gmra.mxu1 %v8414_v13  ;;  %v577_v34 = vmul.f32 1.442695, %v6572_v25  ;;  %v7924_v50 = vpop.eup %7923  ;;  %v7279_v25 = vld [vmem:[#allocation2 + $0xe0] ss:$16 sps:$4 sm:$0xff]   ;;  %v7308_v44 = vld [vmem:[#allocation2 + $0x264] ss:$16 sps:$4 sm:$0xff]  }
  0x74   : > { %1139 = vmatprep.mubr.bf16.mxu0 %v8049_v0  ;;  %1252 = vmatprep.mubr.bf16.mxu1 %v8049_v0  ;;  %7931 = vpow2.f32 %v575_v28  ;;  %v7926_v53 = vpop.eup %7925  ;;  %v635_v58 = vmul.f32 %v7924_v50, %v371_v45  ;;  %v7290_v28 = vld [vmem:[#allocation2 + $0x2c4] ss:$16 sps:$4 sm:$0xff]   ;;  %v7291_v35 = vld [vmem:[#allocation2 + $0xa0] ss:$16 sps:$4 sm:$0xff]  }
  0x75   : > { %1312 = vmatpush1.bf16.msra.mxu0 %v6601_v32  ;;  %1425 = vmatpush1.bf16.msra.mxu1 %v6603_v33  ;;  %7933 = vpow2.f32 %v577_v34  ;;  %v636_v59 = vmul.f32 %v7926_v53, %v373_v46  ;;  %v7296_v34 = vld [vmem:[#allocation2 + $0x2a4] ss:$16 sps:$4 sm:$0xff]   ;;  %v7297_v40 = vld [vmem:[#allocation2 + $0x80] ss:$16 sps:$4 sm:$0xff]  }
  0x76   : > { %1313 = vmatprep.subr.bf16.mxu0 %v6594_v26  ;;  %1426 = vmatprep.subr.bf16.mxu1 %v6596_v27  ;;  %7935 = vrcp.f32 %v591_v48  ;;  %v7282_v26 = vld [vmem:[#allocation2 + $0x2e0] ss:$16 sps:$4 sm:$0xff]   ;;  %v7287_v27 = vld [vmem:[#allocation2 + $0xc4] ss:$16 sps:$4 sm:$0xff]  }
  0x77   : > { %7937 = vrcp.f32 %v592_v52  ;;  %v8463_v4 = vpack.c.bf16 %v636_v59, %v635_v58  ;;  %v7300_v42 = vld [vmem:[#allocation2 + $0x280] ss:$16 sps:$4 sm:$0xff]   ;;  %v7314_v48 = vld [vmem:[#allocation2 + $0x244] ss:$16 sps:$4 sm:$0xff]  }
  0x78   : > { %v7303_v45 = vld [vmem:[#allocation2 + $0x60] ss:$16 sps:$4 sm:$0xff]   ;;  %v7317_v50 = vld [vmem:[#allocation2 + $0x24] ss:$16 sps:$4 sm:$0xff]  }
  0x79   : > { %1314 = vmatpush1.bf16.msra.mxu0 %v6593_v36  ;;  %1427 = vmatpush1.bf16.msra.mxu1 %v6595_v39  ;;  %v7928_v3 = vpop.eup %7927  ;;  %v7294_v36 = vld [vmem:[#allocation2 + $0x2a0] ss:$16 sps:$4 sm:$0xff]   ;;  %v7299_v39 = vld [vmem:[#allocation2 + $0x84] ss:$16 sps:$4 sm:$0xff]  }
  0x7a   : > { %1315 = vmatprep.subr.bf16.mxu0 %v6586_v47  ;;  %1428 = vmatprep.subr.bf16.mxu1 %v6588_v49  ;;  %v7930_v5 = vpop.eup %7929  ;;  %v637_v9 = vmul.f32 %v7928_v3, %v375_v1  ;;  %v7306_v46 = vld [vmem:[#allocation2 + $0x260] ss:$16 sps:$4 sm:$0xff]   ;;  %v7311_v47 = vld [vmem:[#allocation2 + $0x44] ss:$16 sps:$4 sm:$0xff]  }
  0x7b   : > { %1140 = vmatmul.mubr.bf16.gmra.mxu0 %v8455_v51  ;;  %1253 = vmatmul.mubr.bf16.gmra.mxu1 %v8455_v51  ;;  %v638_v10 = vmul.f32 %v7930_v5, %v377_v2  ;;  %v7312_v49 = vld [vmem:[#allocation2 + $0x240] ss:$16 sps:$4 sm:$0xff]   ;;  %v7320_v52 = vld [vmem:[#allocation2 + $0x224] ss:$16 sps:$4 sm:$0xff]  }
  0x7c   : > { %1149 = vmatprep.mubr.bf16.mxu0 %v8049_v0  ;;  %1262 = vmatprep.mubr.bf16.mxu1 %v8049_v0  ;;  %v7315_v53 = vld [vmem:[#allocation2 + $0x20] ss:$16 sps:$4 sm:$0xff]   ;;  %v7329_v58 = vld [vmem:[#allocation2 + $0x1e4] ss:$16 sps:$4 sm:$0xff]  }
  0x7d   : > { %1316 = vmatpush1.bf16.msra.mxu0 %v6585_v54  ;;  %1429 = vmatpush1.bf16.msra.mxu1 %v6587_v55  ;;  %v8471_v16 = vpack.c.bf16 %v638_v10, %v637_v9  ;;  %v7318_v54 = vld [vmem:[#allocation2 + $0x220] ss:$16 sps:$4 sm:$0xff]   ;;  %v7323_v55 = vld [vmem:[#allocation2 + $0x4] ss:$16 sps:$4 sm:$0xff]  }
  0x7e   : > { %1317 = vmatprep.subr.bf16.mxu0 %v6578_v56  ;;  %1430 = vmatprep.subr.bf16.mxu1 %v6580_v57  ;;  %v7326_v56 = vld [vmem:[#allocation2 + $0x204] ss:$16 sps:$4 sm:$0xff]   ;;  %v7324_v57 = vld [vmem:[#allocation2 + $0x200] ss:$16 sps:$4 sm:$0xff]  }
  0x7f   : > { %v7332_v59 = vld [vmem:[#allocation2 + $0x3e4] ss:$16 sps:$4 sm:$0xff]   ;;  %v7336_v1 = vld [vmem:[#allocation2 + $0x3c0] ss:$16 sps:$4 sm:$0xff]  }
  0x80   : > { %v7341_v2 = vld [vmem:[#allocation2 + $0x1a4] ss:$16 sps:$4 sm:$0xff]   ;;  %v7339_v5 = vld [vmem:[#allocation2 + $0x1a0] ss:$16 sps:$4 sm:$0xff]  }
  0x81   : > { %v7932_v6 = vpop.eup %7931  ;;  %1318 = vmatpush1.bf16.msra.mxu0 %v6577_v62  ;;  %1431 = vmatpush1.bf16.msra.mxu1 %v6579_v63  ;;  %v7335_v62 = vld [vmem:[#allocation2 + $0x1c4] ss:$16 sps:$4 sm:$0xff]   ;;  %v7333_v63 = vld [vmem:[#allocation2 + $0x1c0] ss:$16 sps:$4 sm:$0xff]  }
  0x82   : > { %v7934_v7 = vpop.eup %7933  ;;  %v593_v8 = vadd.f32 1.0, %v7932_v6  ;;  %3535 = vmatprep.subr.bf16.mxu0 %v7281_v60  ;;  %3648 = vmatprep.subr.bf16.mxu1 %v7284_v61  ;;  %v7327_v60 = vld [vmem:[#allocation2 + $0x1e0] ss:$16 sps:$4 sm:$0xff]   ;;  %v7344_v3 = vld [vmem:[#allocation2 + $0x3a4] ss:$16 sps:$4 sm:$0xff]  }
  0x83   : > { %1150 = vmatmul.mubr.bf16.gmra.mxu0 %v8463_v4  ;;  %1263 = vmatmul.mubr.bf16.gmra.mxu1 %v8463_v4  ;;  %v594_v11 = vadd.f32 1.0, %v7934_v7  ;;  %v7936_v15 = vpop.eup %7935  ;;  %v7330_v61 = vld [vmem:[#allocation2 + $0x3e0] ss:$16 sps:$4 sm:$0xff]   ;;  %v7347_v7 = vld [vmem:[#allocation2 + $0x184] ss:$16 sps:$4 sm:$0xff]  }
  0x84   : > { %1159 = vmatprep.mubr.bf16.mxu0 %v8049_v0  ;;  %1272 = vmatprep.mubr.bf16.mxu1 %v8049_v0  ;;  %7939 = vrcp.f32 %v593_v8  ;;  %v7938_v17 = vpop.eup %7937  ;;  %v639_v19 = vmul.f32 %v7936_v15, %v379_v12  ;;  %v7342_v6 = vld [vmem:[#allocation2 + $0x3a0] ss:$16 sps:$4 sm:$0xff]   ;;  %v7353_v10 = vld [vmem:[#allocation2 + $0x164] ss:$16 sps:$4 sm:$0xff]  }
  0x85   : > { %7941 = vrcp.f32 %v594_v11  ;;  %v640_v20 = vmul.f32 %v7938_v17, %v381_v14  ;;  %v7345_v8 = vld [vmem:[#allocation2 + $0x180] ss:$16 sps:$4 sm:$0xff]   ;;  %v7356_v11 = vld [vmem:[#allocation2 + $0x364] ss:$16 sps:$4 sm:$0xff]  }
  0x86   : > { %v7348_v9 = vld [vmem:[#allocation2 + $0x380] ss:$16 sps:$4 sm:$0xff]   ;;  %v7359_v15 = vld [vmem:[#allocation2 + $0x144] ss:$16 sps:$4 sm:$0xff]  }
  0x87   : > { %v8479_v32 = vpack.c.bf16 %v640_v20, %v639_v19  ;;  %v7351_v12 = vld [vmem:[#allocation2 + $0x160] ss:$16 sps:$4 sm:$0xff]   ;;  %v7365_v20 = vld [vmem:[#allocation2 + $0x124] ss:$16 sps:$4 sm:$0xff]  }
  0x88   : > { %v7354_v14 = vld [vmem:[#allocation2 + $0x360] ss:$16 sps:$4 sm:$0xff]  }
  0x89   : > { %v7357_v17 = vld [vmem:[#allocation2 + $0x140] ss:$16 sps:$4 sm:$0xff]  }
  0x8a   : > { %v7360_v19 = vld [vmem:[#allocation2 + $0x340] ss:$16 sps:$4 sm:$0xff]  }
  0x8b   : > { %1160 = vmatmul.mubr.bf16.gmra.mxu0 %v8471_v16  ;;  %1273 = vmatmul.mubr.bf16.gmra.mxu1 %v8471_v16 }
  0x8c   : > { %1169 = vmatprep.mubr.bf16.mxu0 %v8049_v0  ;;  %1282 = vmatprep.mubr.bf16.mxu1 %v8049_v0 }
  0x91   : > { %v7940_v33 = vpop.eup %7939 }
  0x92   : > { %v7942_v37 = vpop.eup %7941  ;;  %v641_v38 = vmul.f32 %v7940_v33, %v383_v21  ;;  %v7368_v21 = vld [vmem:[#allocation2 + $0x324] ss:$16 sps:$4 sm:$0xff]   ;;  %v7366_v33 = vld [vmem:[#allocation2 + $0x320] ss:$16 sps:$4 sm:$0xff]  }
  0x93   : > { %1170 = vmatmul.mubr.bf16.gmra.mxu0 %v8479_v32  ;;  %1283 = vmatmul.mubr.bf16.gmra.mxu1 %v8479_v32  ;;  %v642_v23 = vmul.f32 %v7942_v37, %v385_v22  ;;  %v7363_v22 = vld [vmem:[#allocation2 + $0x120] ss:$16 sps:$4 sm:$0xff]   ;;  %v7371_v37 = vld [vmem:[#allocation2 + $0x104] ss:$16 sps:$4 sm:$0xff]  }
  0x94   : > { %1179 = vmatprep.mubr.bf16.mxu0 %v8049_v0  ;;  %1292 = vmatprep.mubr.bf16.mxu1 %v8049_v0 }
  0x95   : > { %v8485_v24 = vpack.c.bf16 %v642_v23, %v641_v38  ;;  %v7374_v38 = vld [vmem:[#allocation2 + $0x304] ss:$16 sps:$4 sm:$0xff]  }
  0x96   : > { %v7377_v23 = vld [vmem:[#allocation2 + $0x4e4] ss:$16 sps:$4 sm:$0xff]  }
  0x9b   : > { %1180 = vmatmul.mubr.bf16.gmra.mxu0 %v8485_v24  ;;  %1293 = vmatmul.mubr.bf16.gmra.mxu1 %v8485_v24 }
  0x9c   : > { %1335 = vmatprep.mubr.bf16.mxu0 %v8049_v0  ;;  %1448 = vmatprep.mubr.bf16.mxu1 %v8049_v0 }
  0xa3   : > { %1336 = vmatmul.mubr.bf16.vlgmr.msra.gmra.mxu0 %v8335_v18  ;;  %1449 = vmatmul.mubr.bf16.vlgmr.msra.gmra.mxu1 %v8335_v18  ;;  %v7302_v18 = vld [vmem:[#allocation2 + $0x284] ss:$16 sps:$4 sm:$0xff]  }
  0xa4   : > { %1345 = vmatprep.mubr.bf16.mxu0 %v8049_v0  ;;  %1458 = vmatprep.mubr.bf16.mxu1 %v8049_v0 }
  0xa5   : > { %3536 = vmatpush1.bf16.msra.mxu0 %v7279_v25  ;;  %3649 = vmatpush1.bf16.msra.mxu1 %v7282_v26  ;;  %v7380_v25 = vld [vmem:[#allocation2 + $0x6e4] ss:$16 sps:$4 sm:$0xff]   ;;  %v717_v26 = vlaneseq }
  0xa6   : > { %3537 = vmatprep.subr.bf16.mxu0 %v7287_v27  ;;  %3650 = vmatprep.subr.bf16.mxu1 %v7290_v28 }
  0xa7   : > { %v8521_v27 = vshrl.u32 %v717_v26, 7 }
  0xa9   : > { %3538 = vmatpush1.bf16.msra.mxu0 %v7285_v29  ;;  %3651 = vmatpush1.bf16.msra.mxu1 %v7288_v30  ;;  %11025 = vst [vmem:[#allocation5_spill] sm:$0xff] %v8521_v27  ;;  %v8524_v28 = vsub.s32 0, %v8521_v27  ;;  %v8532_v29 = vsub.s32 2, %v8521_v27  ;;  %v8535_v30 = vsub.s32 1, %v8521_v27 }
  0xaa   : > { %3539 = vmatprep.subr.bf16.mxu0 %v7293_v31  ;;  %3652 = vmatprep.subr.bf16.mxu1 %v7296_v34  ;;  %v10982_v31 = vsub.s32 3, %v8521_v27 }
  0xab   : > { %1346 = vmatmul.mubr.bf16.gmra.mxu0 %v8370_v41  ;;  %1459 = vmatmul.mubr.bf16.gmra.mxu1 %v8370_v41  ;;  %v7309_v41 = vld [vmem:[#allocation2 + $0x40] ss:$16 sps:$4 sm:$0xff]   ;;  %11026 = vst [vmem:[#allocation6_spill] sm:$0xff] %v8524_v28  ;;  %11027 = vst [vmem:[#allocation7_spill] sm:$0xff] %v8532_v29 }
  0xac   : > { %1355 = vmatprep.mubr.bf16.mxu0 %v8049_v0  ;;  %1468 = vmatprep.mubr.bf16.mxu1 %v8049_v0  ;;  %11028 = vst [vmem:[#allocation8_spill] sm:$0xff] %v8535_v30 }
  0xad   : > { %3540 = vmatpush1.bf16.msra.mxu0 %v7291_v35  ;;  %3653 = vmatpush1.bf16.msra.mxu1 %v7294_v36 }
  0xae   : > { %3541 = vmatprep.subr.bf16.mxu0 %v7299_v39  ;;  %3654 = vmatprep.subr.bf16.mxu1 %v7302_v18 }
  0xb1   : > { %3542 = vmatpush1.bf16.msra.mxu0 %v7297_v40  ;;  %3655 = vmatpush1.bf16.msra.mxu1 %v7300_v42 }
  0xb2   : > { %3543 = vmatprep.subr.bf16.mxu0 %v7305_v43  ;;  %3656 = vmatprep.subr.bf16.mxu1 %v7308_v44 }
  0xb3   : > { %1356 = vmatmul.mubr.bf16.gmra.mxu0 %v8414_v13  ;;  %1469 = vmatmul.mubr.bf16.gmra.mxu1 %v8414_v13  ;;  %v7321_v13 = vld [vmem:[#allocation2] ss:$16 sps:$4 sm:$0xff]  }
  0xb4   : > { %1365 = vmatprep.mubr.bf16.mxu0 %v8049_v0  ;;  %1478 = vmatprep.mubr.bf16.mxu1 %v8049_v0 }
  0xb5   : > { %3544 = vmatpush1.bf16.msra.mxu0 %v7303_v45  ;;  %3657 = vmatpush1.bf16.msra.mxu1 %v7306_v46 }
  0xb6   : > { %3545 = vmatprep.subr.bf16.mxu0 %v7311_v47  ;;  %3658 = vmatprep.subr.bf16.mxu1 %v7314_v48 }
  0xb9   : > { %3546 = vmatpush1.bf16.msra.mxu0 %v7309_v41  ;;  %3659 = vmatpush1.bf16.msra.mxu1 %v7312_v49 }
  0xba   : > { %3547 = vmatprep.subr.bf16.mxu0 %v7317_v50  ;;  %3660 = vmatprep.subr.bf16.mxu1 %v7320_v52 }
  0xbb   : > { %1366 = vmatmul.mubr.bf16.gmra.mxu0 %v8455_v51  ;;  %1479 = vmatmul.mubr.bf16.gmra.mxu1 %v8455_v51  ;;  %v7338_v51 = vld [vmem:[#allocation2 + $0x3c4] ss:$16 sps:$4 sm:$0xff]  }
  0xbc   : > { %1375 = vmatprep.mubr.bf16.mxu0 %v8049_v0  ;;  %1488 = vmatprep.mubr.bf16.mxu1 %v8049_v0 }
  0xbd   : > { %3548 = vmatpush1.bf16.msra.mxu0 %v7315_v53  ;;  %3661 = vmatpush1.bf16.msra.mxu1 %v7318_v54 }
  0xbe   : > { %3549 = vmatprep.subr.bf16.mxu0 %v7323_v55  ;;  %3662 = vmatprep.subr.bf16.mxu1 %v7326_v56 }
  0xc1   : > { %3550 = vmatpush1.bf16.msra.mxu0 %v7321_v13  ;;  %3663 = vmatpush1.bf16.msra.mxu1 %v7324_v57 }
  0xc2   : > { %3551 = vmatprep.subr.bf16.mxu0 %v7329_v58  ;;  %3664 = vmatprep.subr.bf16.mxu1 %v7332_v59 }
  0xc3   : > { %1376 = vmatmul.mubr.bf16.gmra.mxu0 %v8463_v4  ;;  %1489 = vmatmul.mubr.bf16.gmra.mxu1 %v8463_v4  ;;  %v7350_v4 = vld [vmem:[#allocation2 + $0x384] ss:$16 sps:$4 sm:$0xff]  }
  0xc4   : > { %1385 = vmatprep.mubr.bf16.mxu0 %v8049_v0  ;;  %1498 = vmatprep.mubr.bf16.mxu1 %v8049_v0 }
  0xc5   : > { %3552 = vmatpush2.bf16.msra.mxu0 %v7327_v60  ;;  %3665 = vmatpush2.bf16.msra.mxu1 %v7330_v61 }
  0xc6   : > { %3553 = vmatprep.subr.bf16.mxu0 %v7335_v62  ;;  %3666 = vmatprep.subr.bf16.mxu1 %v7338_v51 }
  0xc9   : > { %3554 = vmatpush2.bf16.msra.mxu0 %v7333_v63  ;;  %3667 = vmatpush2.bf16.msra.mxu1 %v7336_v1 }
  0xca   : > { %3555 = vmatprep.subr.bf16.mxu0 %v7341_v2  ;;  %3668 = vmatprep.subr.bf16.mxu1 %v7344_v3 }
  0xcb   : > { %1386 = vmatmul.mubr.bf16.gmra.mxu0 %v8471_v16  ;;  %1499 = vmatmul.mubr.bf16.gmra.mxu1 %v8471_v16  ;;  %v7362_v16 = vld [vmem:[#allocation2 + $0x344] ss:$16 sps:$4 sm:$0xff]  }
  0xcc   : > { %1395 = vmatprep.mubr.bf16.mxu0 %v8049_v0  ;;  %1508 = vmatprep.mubr.bf16.mxu1 %v8049_v0 }
  0xcd   : > { %3556 = vmatpush2.bf16.msra.mxu0 %v7339_v5  ;;  %3669 = vmatpush2.bf16.msra.mxu1 %v7342_v6 }
  0xce   : > { %3557 = vmatprep.subr.bf16.mxu0 %v7347_v7  ;;  %3670 = vmatprep.subr.bf16.mxu1 %v7350_v4 }
  0xd1   : > { %3558 = vmatpush2.bf16.msra.mxu0 %v7345_v8  ;;  %3671 = vmatpush2.bf16.msra.mxu1 %v7348_v9 }
  0xd2   : > { %3559 = vmatprep.subr.bf16.mxu0 %v7353_v10  ;;  %3672 = vmatprep.subr.bf16.mxu1 %v7356_v11 }
  0xd3   : > { %1396 = vmatmul.mubr.bf16.gmra.mxu0 %v8479_v32  ;;  %1509 = vmatmul.mubr.bf16.gmra.mxu1 %v8479_v32  ;;  %v7372_v32 = vld [vmem:[#allocation2 + $0x300] ss:$16 sps:$4 sm:$0xff]  }
  0xd4   : > { %1405 = vmatprep.mubr.bf16.mxu0 %v8049_v0  ;;  %1518 = vmatprep.mubr.bf16.mxu1 %v8049_v0  ;;  %v7369_v0 = vld [vmem:[#allocation2 + $0x100] ss:$16 sps:$4 sm:$0xff]  }
  0xd5   : > { %3560 = vmatpush2.bf16.msra.mxu0 %v7351_v12  ;;  %3673 = vmatpush2.bf16.msra.mxu1 %v7354_v14 }
  0xd6   : > { %3561 = vmatprep.subr.bf16.mxu0 %v7359_v15  ;;  %3674 = vmatprep.subr.bf16.mxu1 %v7362_v16 }
  0xd9   : > { %3562 = vmatpush2.bf16.msra.mxu0 %v7357_v17  ;;  %3675 = vmatpush2.bf16.msra.mxu1 %v7360_v19 }
  0xda   : > { %3563 = vmatprep.subr.bf16.mxu0 %v7365_v20  ;;  %3676 = vmatprep.subr.bf16.mxu1 %v7368_v21 }
  0xdb   : > { %1406 = vmatmul.mubr.bf16.gmra.mxu0 %v8485_v24  ;;  %1519 = vmatmul.mubr.bf16.gmra.mxu1 %v8485_v24  ;;  %v8529_v24 = vld [vmem:[%s10974_s2] sm:$0xff] }
  0xdc   : > { %v8540_v34 = vrot.slane %v8529_v24, %v8524_v28  ;;  %v8544_v36 = vrot.slane %v8529_v24, %v8532_v29  ;;  %v8548_v18 = vrot.slane %v8529_v24, %v8535_v30  ;;  %v8553_v40 = vrot.slane %v8529_v24, %v10982_v31  ;;  %v7431_v31 = vld [vmem:[#allocation2 + $0x5c4] ss:$16 sps:$4 sm:$0xff]  }
  0xdd   : > { %3564 = vmatpush2.bf16.msra.mxu0 %v7363_v22  ;;  %3677 = vmatpush2.bf16.msra.mxu1 %v7366_v33 }
  0xde   : > { %3565 = vmatprep.subr.bf16.mxu0 %v7371_v37  ;;  %3678 = vmatprep.subr.bf16.mxu1 %v7374_v38  ;;  %v7375_v37 = vld [vmem:[#allocation2 + $0x4e0] ss:$16 sps:$4 sm:$0xff]  }
  0xdf   : > { %v7378_v38 = vld [vmem:[#allocation2 + $0x6e0] ss:$16 sps:$4 sm:$0xff]  }
  0xe1   : > { %3566 = vmatpush2.bf16.msra.mxu0 %v7369_v0  ;;  %3679 = vmatpush2.bf16.msra.mxu1 %v7372_v32 }
  0xe2   : > { %3761 = vmatprep.subr.bf16.mxu0 %v7377_v23  ;;  %3874 = vmatprep.subr.bf16.mxu1 %v7380_v25 }
 0x123   : > { %v1111_v35 = vpop.f32.mrf.mxu0  ;;  %v1224_v39 = vpop.f32.mrf.mxu1 }
 0x124   : > { %v1112_v44 = vadd.f32 %v1111_v35, %v8540_v34  ;;  %v1225_v45 = vadd.f32 %v1224_v39, %v8544_v36  ;;  %v7383_v35 = vld [vmem:[#allocation2 + $0x4c4] ss:$16 sps:$4 sm:$0xff]  }
 0x125   : > { %v1113_v42 = vpop.f32.mrf.mxu0  ;;  %v1226_v43 = vpop.f32.mrf.mxu1  ;;  %v7386_v39 = vld [vmem:[#allocation2 + $0x6c4] ss:$16 sps:$4 sm:$0xff]  }
 0x126   : > { %v1114_v48 = vadd.f32 %v1113_v42, %v8548_v18  ;;  %v1227_v41 = vadd.f32 %v1226_v43, %v8553_v40  ;;  %vm1529_vm0 = vcmp.gt.f32.partialorder %v1112_v44, 0.0  ;;  %v1657_v54 = vmul.f32 0.01, %v1112_v44 }
 0x127   : > { %v1115_v46 = vpop.f32.mrf.mxu0  ;;  %v1228_v47 = vpop.f32.mrf.mxu1  ;;  %v1659_v55 = vmul.f32 0.01, %v1225_v45  ;;  %vm1531_vm1 = vcmp.gt.f32.partialorder %v1225_v45, 0.0 }
 0x128   : > { %v1116_v49 = vadd.f32 %v1115_v46, %v8540_v34  ;;  %v1229_v50 = vadd.f32 %v1228_v47, %v8544_v36  ;;  %v1658_v59 = vmul.f32 0.01, %v1114_v48  ;;  %v1660_v60 = vmul.f32 0.01, %v1227_v41 }
 0x129   : > { %v1117_v52 = vpop.f32.mrf.mxu0  ;;  %v1230_v53 = vpop.f32.mrf.mxu1  ;;  %vm1530_vm6 = vcmp.gt.f32.partialorder %v1114_v48, 0.0  ;;  %vm1532_vm7 = vcmp.gt.f32.partialorder %v1227_v41, 0.0  ;;  %v1785_v8 = vsel %vm1529_vm0, %v1112_v44, %v1657_v54  ;;  %v1787_v9 = vsel %vm1531_vm1, %v1225_v45, %v1659_v55 }
 0x12a   : > { %v1118_v56 = vadd.f32 %v1117_v52, %v8548_v18  ;;  %v1231_v13 = vadd.f32 %v1230_v53, %v8553_v40  ;;  %v1665_v61 = vmul.f32 0.01, %v1116_v49  ;;  %v1667_v62 = vmul.f32 0.01, %v1229_v50 }
 0x12b   : > { %v1121_v57 = vpop.f32.mrf.mxu0  ;;  %v1234_v58 = vpop.f32.mrf.mxu1  ;;  %vm1537_vm3 = vcmp.gt.f32.partialorder %v1116_v49, 0.0  ;;  %vm1539_vm4 = vcmp.gt.f32.partialorder %v1229_v50, 0.0  ;;  %v1786_v17 = vsel %vm1530_vm6, %v1114_v48, %v1658_v59  ;;  %v1788_v19 = vsel %vm1532_vm7, %v1227_v41, %v1660_v60  ;;  %v7381_v48 = vld [vmem:[#allocation2 + $0x4c0] ss:$16 sps:$4 sm:$0xff]  }
 0x12c   : > { %vm1538_vm2 = vcmp.gt.f32.partialorder %v1118_v56, 0.0  ;;  %v1666_v51 = vmul.f32 0.01, %v1118_v56  ;;  %vm1540_vm5 = vcmp.gt.f32.partialorder %v1231_v13, 0.0  ;;  %v1668_v2 = vmul.f32 0.01, %v1231_v13 }
 0x12d   : > { %v1123_v63 = vpop.f32.mrf.mxu0  ;;  %v1236_v1 = vpop.f32.mrf.mxu1  ;;  %v1793_v10 = vsel %vm1537_vm3, %v1116_v49, %v1665_v61  ;;  %v1795_v11 = vsel %vm1539_vm4, %v1229_v50, %v1667_v62  ;;  %v1122_v42 = vadd.f32 %v1121_v57, %v8540_v34  ;;  %v1235_v46 = vadd.f32 %v1234_v58, %v8544_v36  ;;  %v7384_v50 = vld [vmem:[#allocation2 + $0x6c0] ss:$16 sps:$4 sm:$0xff]   ;;  %v7389_v57 = vld [vmem:[#allocation2 + $0x4a4] ss:$16 sps:$4 sm:$0xff]  }
 0x12e   : > { %v1124_v3 = vadd.f32 %v1123_v63, %v8548_v18  ;;  %v1794_v7 = vsel %vm1538_vm2, %v1118_v56, %v1666_v51  ;;  %v1796_v4 = vsel %vm1540_vm5, %v1231_v13, %v1668_v2  ;;  %v1237_v16 = vadd.f32 %v1236_v1, %v8553_v40  ;;  %v7392_v61 = vld [vmem:[#allocation2 + $0x6a4] ss:$16 sps:$4 sm:$0xff]  }
 0x12f   : > { %v1125_v5 = vpop.f32.mrf.mxu0  ;;  %v1238_v6 = vpop.f32.mrf.mxu1  ;;  %v8569_v22 = vpack.c.bf16 %v1794_v7, %v1786_v17  ;;  %v8571_v33 = vpack.c.bf16 %v1796_v4, %v1788_v19  ;;  %v8573_v23 = vpack.c.bf16 %v1793_v10, %v1785_v8  ;;  %v8575_v25 = vpack.c.bf16 %v1795_v11, %v1787_v9  ;;  %v7395_v11 = vld [vmem:[#allocation2 + $0x484] ss:$16 sps:$4 sm:$0xff]  }
 0x130   : > { %v1674_v15 = vmul.f32 0.01, %v1124_v3  ;;  %vm1546_vm8 = vcmp.gt.f32.partialorder %v1124_v3, 0.0  ;;  %v1126_v26 = vadd.f32 %v1125_v5, %v8540_v34  ;;  %v1239_v47 = vadd.f32 %v1238_v6, %v8544_v36  ;;  %v7390_v5 = vld [vmem:[#allocation2 + $0x6a0] ss:$16 sps:$4 sm:$0xff]  }
 0x131   : > { %v1127_v12 = vpop.f32.mrf.mxu0  ;;  %v1240_v14 = vpop.f32.mrf.mxu1  ;;  %3567 = vmatprep.mubr.bf16.mxu0 %v8569_v22  ;;  %3680 = vmatprep.mubr.bf16.mxu1 %v8571_v33  ;;  %v1676_v41 = vmul.f32 0.01, %v1237_v16  ;;  %vm1548_vm10 = vcmp.gt.f32.partialorder %v1237_v16, 0.0  ;;  %v1673_v58 = vmul.f32 0.01, %v1122_v42  ;;  %vm1545_vm13 = vcmp.gt.f32.partialorder %v1122_v42, 0.0 }
 0x132   : > { %v1128_v20 = vadd.f32 %v1127_v12, %v8548_v18  ;;  %v1241_v21 = vadd.f32 %v1240_v14, %v8553_v40  ;;  %3568 = vmatmul.mubr.bf16.vlgmr.msra.gmra.mxu0 %v8573_v23  ;;  %3681 = vmatmul.mubr.bf16.vlgmr.msra.gmra.mxu1 %v8575_v25  ;;  %v1802_v54 = vsel %vm1546_vm8, %v1124_v3, %v1674_v15  ;;  %v1681_v56 = vmul.f32 0.01, %v1126_v26  ;;  %v7387_v3 = vld [vmem:[#allocation2 + $0x4a0] ss:$16 sps:$4 sm:$0xff]  }
 0x133   : > { %v1131_v0 = vpop.f32.mrf.mxu0  ;;  %v1244_v32 = vpop.f32.mrf.mxu1  ;;  %3762 = vmatpush1.bf16.msra.mxu0 %v7375_v37  ;;  %3875 = vmatpush1.bf16.msra.mxu1 %v7378_v38  ;;  %vm1553_vm12 = vcmp.gt.f32.partialorder %v1126_v26, 0.0  ;;  %vm1547_vm14 = vcmp.gt.f32.partialorder %v1235_v46, 0.0  ;;  %v1675_v62 = vmul.f32 0.01, %v1235_v46  ;;  %v1683_v51 = vmul.f32 0.01, %v1239_v47 }
 0x134   : > { %vm1554_vm9 = vcmp.gt.f32.partialorder %v1128_v20, 0.0  ;;  %v1682_v43 = vmul.f32 0.01, %v1128_v20  ;;  %v1684_v49 = vmul.f32 0.01, %v1241_v21  ;;  %vm1556_vm11 = vcmp.gt.f32.partialorder %v1241_v21, 0.0  ;;  %3763 = vmatprep.subr.bf16.mxu0 %v7383_v35  ;;  %3876 = vmatprep.subr.bf16.mxu1 %v7386_v39 }
 0x135   : > { %v1133_v44 = vpop.f32.mrf.mxu0  ;;  %v1246_v45 = vpop.f32.mrf.mxu1  ;;  %vm1555_vm15 = vcmp.gt.f32.partialorder %v1239_v47, 0.0  ;;  %v1804_v1 = vsel %vm1548_vm10, %v1237_v16, %v1676_v41  ;;  %v8594_v4 = vadd.f32 %v1131_v0, %v8540_v34  ;;  %v8597_v8 = vadd.f32 %v1244_v32, %v8544_v36  ;;  %v7393_v32 = vld [vmem:[#allocation2 + $0x480] ss:$16 sps:$4 sm:$0xff]   ;;  %v7401_v35 = vld [vmem:[#allocation2 + $0x464] ss:$16 sps:$4 sm:$0xff]  }
 0x136   : > { %v1810_v55 = vsel %vm1554_vm9, %v1128_v20, %v1682_v43  ;;  %v1812_v2 = vsel %vm1556_vm11, %v1241_v21, %v1684_v49  ;;  %v1809_v10 = vsel %vm1553_vm12, %v1126_v26, %v1681_v56  ;;  %v1134_v12 = vadd.f32 %v1133_v44, %v8548_v18  ;;  %v7398_v20 = vld [vmem:[#allocation2 + $0x684] ss:$16 sps:$4 sm:$0xff]   ;;  %v7396_v26 = vld [vmem:[#allocation2 + $0x680] ss:$16 sps:$4 sm:$0xff]  }
 0x137   : > { %v1135_v52 = vpop.f32.mrf.mxu0  ;;  %v1248_v53 = vpop.f32.mrf.mxu1  ;;  %v8587_v13 = vpack.c.bf16 %v1810_v55, %v1802_v54  ;;  %3764 = vmatpush1.bf16.msra.mxu0 %v7381_v48  ;;  %3877 = vmatpush1.bf16.msra.mxu1 %v7384_v50  ;;  %v8599_v9 = vpack.c.bf16 %v1812_v2, %v1804_v1  ;;  %v1247_v14 = vadd.f32 %v1246_v45, %v8553_v40  ;;  %v7404_v48 = vld [vmem:[#allocation2 + $0x664] ss:$16 sps:$4 sm:$0xff]   ;;  %v735_v41 = vsub.s32 4, %v8521_v27  ;;  %v7402_v2 = vld [vmem:[#allocation2 + $0x660] ss:$16 sps:$4 sm:$0xff]  }
 0x138   : > { %3765 = vmatprep.subr.bf16.mxu0 %v7389_v57  ;;  %v8605_v15 = vadd.f32 %v1135_v52, %v8540_v34  ;;  %v1801_v16 = vsel %vm1545_vm13, %v1122_v42, %v1673_v58  ;;  %3878 = vmatprep.subr.bf16.mxu1 %v7392_v61  ;;  %v1803_v38 = vsel %vm1547_vm14, %v1235_v46, %v1675_v62  ;;  %vm1561_vm0 = vcmp.gt.f32.partialorder %v8594_v4, 0.0 }
 0x139   : > { %v1137_v59 = vpop.f32.mrf.mxu0  ;;  %v1250_v60 = vpop.f32.mrf.mxu1  ;;  %3577 = vmatprep.mubr.bf16.mxu0 %v8587_v13  ;;  %3690 = vmatprep.mubr.bf16.mxu1 %v8599_v9  ;;  %v8610_v37 = vpack.c.bf16 %v1809_v10, %v1801_v16  ;;  %v1811_v0 = vsel %vm1555_vm15, %v1239_v47, %v1683_v51  ;;  %v1249_v39 = vadd.f32 %v1248_v53, %v8544_v36  ;;  %v1689_v46 = vmul.f32 0.01, %v8594_v4 }
 0x13a   : > { %v1138_v63 = vadd.f32 %v1137_v59, %v8548_v18  ;;  %v1251_v21 = vadd.f32 %v1250_v60, %v8553_v40  ;;  %v8615_v43 = vpack.c.bf16 %v1811_v0, %v1803_v38  ;;  %v1691_v47 = vmul.f32 0.01, %v8597_v8  ;;  %v7399_v59 = vld [vmem:[#allocation2 + $0x460] ss:$16 sps:$4 sm:$0xff]  }
 0x13b   : > { %v1141_v6 = vpop.f32.mrf.mxu0  ;;  %v1254_v7 = vpop.f32.mrf.mxu1  ;;  %3766 = vmatpush1.bf16.msra.mxu0 %v7387_v3  ;;  %3879 = vmatpush1.bf16.msra.mxu1 %v7390_v5  ;;  %vm1563_vm2 = vcmp.gt.f32.partialorder %v8597_v8, 0.0  ;;  %vm1562_vm3 = vcmp.gt.f32.partialorder %v1134_v12, 0.0  ;;  %v1690_v49 = vmul.f32 0.01, %v1134_v12  ;;  %v1692_v50 = vmul.f32 0.01, %v1247_v14 }
 0x13c   : > { %v1698_v42 = vmul.f32 0.01, %v1138_v63  ;;  %vm1570_vm1 = vcmp.gt.f32.partialorder %v1138_v63, 0.0  ;;  %3578 = vmatmul.mubr.bf16.gmra.mxu0 %v8610_v37  ;;  %3767 = vmatprep.subr.bf16.mxu0 %v7395_v11  ;;  %vm1564_vm4 = vcmp.gt.f32.partialorder %v1247_v14, 0.0  ;;  %vm1569_vm5 = vcmp.gt.f32.partialorder %v8605_v15, 0.0 }
 0x13d   : > { %v1143_v17 = vpop.f32.mrf.mxu0  ;;  %v1256_v19 = vpop.f32.mrf.mxu1  ;;  %3691 = vmatmul.mubr.bf16.gmra.mxu1 %v8615_v43  ;;  %3880 = vmatprep.subr.bf16.mxu1 %v7398_v20  ;;  %v1697_v54 = vmul.f32 0.01, %v8605_v15  ;;  %v1700_v55 = vmul.f32 0.01, %v1251_v21  ;;  %v1699_v56 = vmul.f32 0.01, %v1249_v39  ;;  %v8629_v57 = vadd.f32 %v1141_v6, %v8540_v34 }
 0x13e   : > { %vm1572_vm6 = vcmp.gt.f32.partialorder %v1251_v21, 0.0  ;;  %v1826_v58 = vsel %vm1570_vm1, %v1138_v63, %v1698_v42  ;;  %vm1571_vm7 = vcmp.gt.f32.partialorder %v1249_v39, 0.0  ;;  %v8637_v62 = vadd.f32 %v1254_v7, %v8544_v36  ;;  %v7407_v20 = vld [vmem:[#allocation2 + $0x444] ss:$16 sps:$4 sm:$0xff]  }
 0x13f   : > { %v1145_v44 = vpop.f32.mrf.mxu0  ;;  %v8617_v45 = vpop.f32.mrf.mxu1  ;;  %3768 = vmatpush1.bf16.msra.mxu0 %v7393_v32  ;;  %3881 = vmatpush1.bf16.msra.mxu1 %v7396_v26  ;;  %v8640_v51 = vadd.f32 %v1143_v17, %v8548_v18  ;;  %v8643_v1 = vadd.f32 %v1256_v19, %v8553_v40  ;;  %v1818_v5 = vsel %vm1562_vm3, %v1134_v12, %v1690_v49  ;;  %v7408_v32 = vld [vmem:[#allocation2 + $0x640] ss:$16 sps:$4 sm:$0xff]   ;;  %v7410_v26 = vld [vmem:[#allocation2 + $0x644] ss:$16 sps:$4 sm:$0xff]   ;;  %vm1577_vm8 = vcmp.gt.f32.partialorder %v8629_v57, 0.0 }
 0x140   : > { %3769 = vmatprep.subr.bf16.mxu0 %v7401_v35  ;;  %3882 = vmatprep.subr.bf16.mxu1 %v7404_v48  ;;  %v1820_v6 = vsel %vm1564_vm4, %v1247_v14, %v1692_v50  ;;  %v8657_v11 = vpack.c.bf16 %v1826_v58, %v1818_v5  ;;  %v1828_v16 = vsel %vm1572_vm6, %v1251_v21, %v1700_v55  ;;  %v7405_v21 = vld [vmem:[#allocation2 + $0x440] ss:$16 sps:$4 sm:$0xff]   ;;  %v7413_v48 = vld [vmem:[#allocation2 + $0x424] ss:$16 sps:$4 sm:$0xff]   ;;  %vm1579_vm10 = vcmp.gt.f32.partialorder %v8637_v62, 0.0 }
 0x141   : > { %v1147_v52 = vpop.f32.mrf.mxu0  ;;  %v1260_v53 = vpop.f32.mrf.mxu1  ;;  %v1817_v17 = vsel %vm1561_vm0, %v8594_v4, %v1689_v46  ;;  %v1825_v19 = vsel %vm1569_vm5, %v8605_v15, %v1697_v54  ;;  %v8666_v12 = vpack.c.bf16 %v1828_v16, %v1820_v6  ;;  %v1819_v38 = vsel %vm1563_vm2, %v8597_v8, %v1691_v47  ;;  %v7416_v46 = vld [vmem:[#allocation2 + $0x624] ss:$16 sps:$4 sm:$0xff]  }
 0x142   : > { %v8646_v63 = vadd.f32 %v1147_v52, %v8548_v18  ;;  %v8649_v3 = vadd.f32 %v1260_v53, %v8553_v40  ;;  %v8668_v14 = vpack.c.bf16 %v1825_v19, %v1817_v17  ;;  %v1827_v0 = vsel %vm1571_vm7, %v1249_v39, %v1699_v56  ;;  %3587 = vmatprep.mubr.bf16.mxu0 %v8657_v11  ;;  %v7411_v53 = vld [vmem:[#allocation2 + $0x420] ss:$16 sps:$4 sm:$0xff]  }
 0x143   : > { %v8632_v60 = vpop.f32.mrf.mxu0  ;;  %v8634_v61 = vpop.f32.mrf.mxu1  ;;  %3770 = vmatpush1.bf16.msra.mxu0 %v7399_v59  ;;  %v1146_v15 = vadd.f32 %v1145_v44, %v8540_v34  ;;  %v8680_v42 = vpack.c.bf16 %v1827_v0, %v1819_v38  ;;  %3883 = vmatpush1.bf16.msra.mxu1 %v7402_v2  ;;  %v8683_v8 = vrot.slane %v8529_v24, %v735_v41  ;;  %v1705_v47 = vmul.f32 0.01, %v8629_v57 }
 0x144   : > { %v1259_v49 = vadd.f32 %v8617_v45, %v8544_v36  ;;  %v1714_v50 = vmul.f32 0.01, %v8646_v63  ;;  %3700 = vmatprep.mubr.bf16.mxu1 %v8666_v12  ;;  %3588 = vmatmul.mubr.bf16.gmra.mxu0 %v8668_v14  ;;  %v1707_v41 = vmul.f32 0.01, %v8637_v62  ;;  %v1706_v55 = vmul.f32 0.01, %v8640_v51 }
 0x145   : > { %v8653_v7 = vpop.f32.mrf.mxu0  ;;  %v8655_v10 = vpop.f32.mrf.mxu1  ;;  %11029 = vst [vmem:[#allocation9_spill] sm:$0xff] %v8680_v42  ;;  %vm1586_vm9 = vcmp.gt.f32.partialorder %v8646_v63, 0.0  ;;  %3701 = vmatmul.mubr.bf16.gmra.mxu1 %v8680_v42  ;;  %3771 = vmatprep.subr.bf16.mxu0 %v7407_v20  ;;  %v7414_v45 = vld [vmem:[#allocation2 + $0x620] ss:$16 sps:$4 sm:$0xff]   ;;  %vm1578_vm11 = vcmp.gt.f32.partialorder %v8640_v51, 0.0  ;;  %vm1580_vm12 = vcmp.gt.f32.partialorder %v8643_v1, 0.0  ;;  %v8710_v16 = vadd.f32 %v8632_v60, %v8540_v34 }
 0x146   : > { %v1708_v56 = vmul.f32 0.01, %v8643_v1  ;;  %v1716_v58 = vmul.f32 0.01, %v8649_v3  ;;  %3884 = vmatprep.subr.bf16.mxu1 %v7410_v26  ;;  %vm1585_vm13 = vcmp.gt.f32.partialorder %v1146_v15, 0.0  ;;  %vm1588_vm14 = vcmp.gt.f32.partialorder %v8649_v3, 0.0 }
 0x147   : > { %v8674_v4 = vpop.f32.mrf.mxu0  ;;  %v8676_v35 = vpop.f32.mrf.mxu1  ;;  %3772 = vmatpush1.bf16.msra.mxu0 %v7405_v21  ;;  %v1713_v5 = vmul.f32 0.01, %v1146_v15  ;;  %3885 = vmatpush1.bf16.msra.mxu1 %v7408_v32  ;;  %vm1587_vm15 = vcmp.gt.f32.partialorder %v1259_v49, 0.0  ;;  %v1715_v6 = vmul.f32 0.01, %v1259_v49  ;;  %v1842_v17 = vsel %vm1586_vm9, %v8646_v63, %v1714_v50 }
 0x148   : > { %3773 = vmatprep.subr.bf16.mxu0 %v7413_v48  ;;  %3886 = vmatprep.subr.bf16.mxu1 %v7416_v46  ;;  %v8721_v38 = vadd.f32 %v8634_v61, %v8544_v36  ;;  %v1834_v60 = vsel %vm1578_vm11, %v8640_v51, %v1706_v55  ;;  %v7419_v32 = vld [vmem:[#allocation2 + $0x404] ss:$16 sps:$4 sm:$0xff]   ;;  %v8730_v63 = vadd.f32 %v8653_v7, %v8548_v18  ;;  %vm1593_vm0 = vcmp.gt.f32.partialorder %v8710_v16, 0.0 }
 0x149   : > { %v1157_v44 = vpop.f32.mrf.mxu0  ;;  %v1270_v52 = vpop.f32.mrf.mxu1  ;;  %v8732_v26 = vpack.c.bf16 %v1842_v17, %v1834_v60  ;;  %v1836_v61 = vsel %vm1580_vm12, %v8643_v1, %v1708_v56  ;;  %v1844_v48 = vsel %vm1588_vm14, %v8649_v3, %v1716_v58  ;;  %v7422_v46 = vld [vmem:[#allocation2 + $0x604] ss:$16 sps:$4 sm:$0xff]   ;;  %v8746_v7 = vadd.f32 %v8655_v10, %v8553_v40  ;;  %v7417_v3 = vld [vmem:[#allocation2 + $0x400] ss:$16 sps:$4 sm:$0xff]  }
 0x14a   : > { %v1158_v0 = vadd.f32 %v1157_v44, %v8548_v18  ;;  %v1271_v21 = vadd.f32 %v1270_v52, %v8553_v40  ;;  %v8748_v44 = vpack.c.bf16 %v1844_v48, %v1836_v61  ;;  %v1833_v1 = vsel %vm1577_vm8, %v8629_v57, %v1705_v47  ;;  %v7420_v58 = vld [vmem:[#allocation2 + $0x600] ss:$16 sps:$4 sm:$0xff]   ;;  %v7428_v61 = vld [vmem:[#allocation2 + $0x7e4] ss:$16 sps:$4 sm:$0xff]  }
 0x14b   : > { %v8702_v59 = vpop.f32.mrf.mxu0  ;;  %v8704_v2 = vpop.f32.mrf.mxu1  ;;  %11030 = vst [vmem:[#allocation10_spill] sm:$0xff] %v8732_v26  ;;  %3774 = vmatpush1.bf16.msra.mxu0 %v7411_v53  ;;  %v1841_v52 = vsel %vm1585_vm13, %v1146_v15, %v1713_v5  ;;  %3887 = vmatpush1.bf16.msra.mxu1 %v7414_v45  ;;  %v8756_v53 = vadd.f32 %v8674_v4, %v8540_v34  ;;  %v7425_v15 = vld [vmem:[#allocation2 + $0x5e4] ss:$16 sps:$4 sm:$0xff]   ;;  %v7423_v60 = vld [vmem:[#allocation2 + $0x5e0] ss:$16 sps:$4 sm:$0xff]   ;;  %vm1595_vm3 = vcmp.gt.f32.partialorder %v8721_v38, 0.0 }
 0x14c   : > { %11031 = vst [vmem:[#allocation11_spill] sm:$0xff] %v8748_v44  ;;  %3597 = vmatprep.mubr.bf16.mxu0 %v8732_v26  ;;  %v8759_v55 = vpack.c.bf16 %v1841_v52, %v1833_v1  ;;  %v1835_v10 = vsel %vm1579_vm10, %v8637_v62, %v1707_v41  ;;  %v1843_v56 = vsel %vm1587_vm15, %v1259_v49, %v1715_v6  ;;  %v1730_v5 = vmul.f32 0.01, %v1158_v0  ;;  %v7426_v49 = vld [vmem:[#allocation2 + $0x7e0] ss:$16 sps:$4 sm:$0xff]  }
 0x14d   : > { %v8715_v19 = vpop.f32.mrf.mxu0  ;;  %v8717_v20 = vpop.f32.mrf.mxu1  ;;  %v1269_v45 = vadd.f32 %v8676_v35, %v8544_v36  ;;  %v1732_v4 = vmul.f32 0.01, %v1271_v21  ;;  %3710 = vmatprep.mubr.bf16.mxu1 %v8748_v44  ;;  %v8768_v17 = vpack.c.bf16 %v1843_v56, %v1835_v10  ;;  %3775 = vmatprep.subr.bf16.mxu0 %v7419_v32  ;;  %v1721_v62 = vmul.f32 0.01, %v8710_v16  ;;  %v7483_v44 = vld [vmem:[#allocation2 + $0xa8] ss:$16 sps:$4 sm:$0xff]  }
 0x14e   : > { %11032 = vst [vmem:[#allocation12_spill] sm:$0xff] %v8759_v55  ;;  %vm1602_vm1 = vcmp.gt.f32.partialorder %v1158_v0, 0.0  ;;  %vm1604_vm2 = vcmp.gt.f32.partialorder %v1271_v21, 0.0  ;;  %3598 = vmatmul.mubr.bf16.gmra.mxu0 %v8759_v55  ;;  %3888 = vmatprep.subr.bf16.mxu1 %v7422_v46  ;;  %v1722_v6 = vmul.f32 0.01, %v8730_v63  ;;  %v8783_v48 = vadd.f32 %v8702_v59, %v8540_v34 }
 0x14f   : > { %v8740_v50 = vpop.f32.mrf.mxu0  ;;  %v8742_v51 = vpop.f32.mrf.mxu1  ;;  %11033 = vst [vmem:[#allocation13_spill] sm:$0xff] %v8768_v17  ;;  %v1724_v32 = vmul.f32 0.01, %v8746_v7  ;;  %3711 = vmatmul.mubr.bf16.gmra.mxu1 %v8768_v17  ;;  %3776 = vmatpush1.bf16.msra.mxu0 %v7417_v3  ;;  %v1723_v46 = vmul.f32 0.01, %v8721_v38  ;;  %vm1594_vm4 = vcmp.gt.f32.partialorder %v8730_v63, 0.0  ;;  %v1858_v59 = vsel %vm1602_vm1, %v1158_v0, %v1730_v5 }
 0x150   : > { %vm1596_vm5 = vcmp.gt.f32.partialorder %v8746_v7, 0.0  ;;  %v1729_v1 = vmul.f32 0.01, %v8756_v53  ;;  %3889 = vmatpush1.bf16.msra.mxu1 %v7420_v58  ;;  %vm1601_vm6 = vcmp.gt.f32.partialorder %v8756_v53, 0.0  ;;  %v1731_v56 = vmul.f32 0.01, %v1269_v45  ;;  %3777 = vmatprep.subr.bf16.mxu0 %v7425_v15 }
 0x151   : > { %v1167_v57 = vpop.f32.mrf.mxu0  ;;  %v1280_v47 = vpop.f32.mrf.mxu1  ;;  %v1860_v3 = vsel %vm1604_vm2, %v1271_v21, %v1732_v4  ;;  %vm1603_vm7 = vcmp.gt.f32.partialorder %v1269_v45, 0.0  ;;  %v8798_v54 = vadd.f32 %v8704_v2, %v8544_v36  ;;  %v8802_v58 = vadd.f32 %v8715_v19, %v8548_v18  ;;  %3890 = vmatprep.subr.bf16.mxu1 %v7428_v61  ;;  %v7434_v15 = vld [vmem:[#allocation2 + $0x7c4] ss:$16 sps:$4 sm:$0xff]  }
 0x152   : > { %v8806_v39 = vadd.f32 %v8717_v20, %v8553_v40  ;;  %vm1609_vm8 = vcmp.gt.f32.partialorder %v8783_v48, 0.0  ;;  %v8814_v21 = vadd.f32 %v1167_v57, %v8548_v18  ;;  %v8817_v2 = vadd.f32 %v1280_v47, %v8553_v40 }
 0x153   : > { %v8773_v35 = vpop.f32.mrf.mxu0  ;;  %v8775_v41 = vpop.f32.mrf.mxu1  ;;  %v1850_v19 = vsel %vm1594_vm4, %v8730_v63, %v1722_v6  ;;  %v1852_v20 = vsel %vm1596_vm5, %v8746_v7, %v1724_v32  ;;  %3778 = vmatpush2.bf16.msra.mxu0 %v7423_v60  ;;  %v1849_v57 = vsel %vm1593_vm0, %v8710_v16, %v1721_v62  ;;  %v1857_v47 = vsel %vm1601_vm6, %v8756_v53, %v1729_v1  ;;  %v7429_v63 = vld [vmem:[#allocation2 + $0x5c0] ss:$16 sps:$4 sm:$0xff]  }
 0x154   : > { %v8825_v5 = vpack.c.bf16 %v1858_v59, %v1850_v19  ;;  %v8827_v4 = vpack.c.bf16 %v1860_v3, %v1852_v20  ;;  %3891 = vmatpush2.bf16.msra.mxu1 %v7426_v49  ;;  %v8837_v7 = vadd.f32 %v8740_v50, %v8540_v34  ;;  %v8839_v60 = vpack.c.bf16 %v1857_v47, %v1849_v57  ;;  %v7432_v62 = vld [vmem:[#allocation2 + $0x7c0] ss:$16 sps:$4 sm:$0xff]   ;;  %v7437_v59 = vld [vmem:[#allocation2 + $0x5a4] ss:$16 sps:$4 sm:$0xff]  }
 0x155   : > { %v8789_v52 = vpop.f32.mrf.mxu0  ;;  %v8791_v10 = vpop.f32.mrf.mxu1  ;;  %v1851_v32 = vsel %vm1595_vm3, %v8721_v38, %v1723_v46  ;;  %v1859_v16 = vsel %vm1603_vm7, %v1269_v45, %v1731_v56  ;;  %3779 = vmatprep.subr.bf16.mxu0 %v7431_v31  ;;  %v1737_v53 = vmul.f32 0.01, %v8783_v48  ;;  %vm1611_vm9 = vcmp.gt.f32.partialorder %v8798_v54, 0.0  ;;  %v7435_v1 = vld [vmem:[#allocation2 + $0x5a0] ss:$16 sps:$4 sm:$0xff]   ;;  %3892 = vmatprep.subr.bf16.mxu1 %v7434_v15 }
 0x156   : > { %11034 = vst [vmem:[#allocation14_spill] sm:$0xff] %v8825_v5  ;;  %11035 = vst [vmem:[#allocation15_spill] sm:$0xff] %v8827_v4  ;;  %v1279_v49 = vadd.f32 %v8742_v51, %v8544_v36  ;;  %3607 = vmatprep.mubr.bf16.mxu0 %v8825_v5  ;;  %3720 = vmatprep.mubr.bf16.mxu1 %v8827_v4  ;;  %v8851_v50 = vpack.c.bf16 %v1859_v16, %v1851_v32  ;;  %v7440_v38 = vld [vmem:[#allocation2 + $0x7a4] ss:$16 sps:$4 sm:$0xff]   ;;  %v1739_v45 = vmul.f32 0.01, %v8798_v54 }
 0x157   : > { %v8808_v29 = vpop.f32.mrf.mxu0  ;;  %v8810_v0 = vpop.f32.mrf.mxu1  ;;  %11036 = vst [vmem:[#allocation16_spill] sm:$0xff] %v8839_v60  ;;  %v1746_v56 = vmul.f32 0.01, %v8814_v21  ;;  %v1748_v3 = vmul.f32 0.01, %v8817_v2  ;;  %3608 = vmatmul.mubr.bf16.gmra.mxu0 %v8839_v60  ;;  %v11038_v20 = vsub.s32 6, %v8521_v27  ;;  %v8881_v28 = vadd.f32 %v8773_v35, %v8540_v34 }
 0x158   : > { %11037 = vst [vmem:[#allocation17_spill] sm:$0xff] %v8851_v50  ;;  %v7438_v51 = vld [vmem:[#allocation2 + $0x7a0] ss:$16 sps:$4 sm:$0xff]   ;;  %v7443_v19 = vld [vmem:[#allocation2 + $0x584] ss:$16 sps:$4 sm:$0xff]   ;;  %vm1618_vm10 = vcmp.gt.f32.partialorder %v8814_v21, 0.0  ;;  %3721 = vmatmul.mubr.bf16.gmra.mxu1 %v8851_v50  ;;  %3780 = vmatpush2.bf16.msra.mxu0 %v7429_v63  ;;  %v8885_v63 = vadd.f32 %v8775_v41, %v8544_v36 }
 0x159   : > { %v1177_v61 = vpop.f32.mrf.mxu0  ;;  %v1290_v6 = vpop.f32.mrf.mxu1  ;;  %v8864_v57 = vrot.slane %v8529_v24, %v11038_v20  ;;  %v1738_v47 = vmul.f32 0.01, %v8802_v58  ;;  %v1740_v32 = vmul.f32 0.01, %v8806_v39  ;;  %vm1620_vm11 = vcmp.gt.f32.partialorder %v8817_v2, 0.0  ;;  %3893 = vmatpush2.bf16.msra.mxu1 %v7432_v62  ;;  %3781 = vmatprep.subr.bf16.mxu0 %v7437_v59 }
 0x15a   : > { %vm1610_vm12 = vcmp.gt.f32.partialorder %v8802_v58, 0.0  ;;  %vm1612_vm13 = vcmp.gt.f32.partialorder %v8806_v39, 0.0  ;;  %vm1617_vm14 = vcmp.gt.f32.partialorder %v8837_v7, 0.0  ;;  %v1745_v20 = vmul.f32 0.01, %v8837_v7  ;;  %3894 = vmatprep.subr.bf16.mxu1 %v7440_v38 }
 0x15b   : > { %v8853_v46 = vpop.f32.mrf.mxu0  ;;  %v8855_v31 = vpop.f32.mrf.mxu1  ;;  %vm1619_vm15 = vcmp.gt.f32.partialorder %v1279_v49, 0.0  ;;  %v1747_v30 = vmul.f32 0.01, %v1279_v49  ;;  %v7446_v50 = vld [vmem:[#allocation2 + $0x784] ss:$16 sps:$4 sm:$0xff]   ;;  %v8893_v62 = vadd.f32 %v8789_v52, %v8548_v18  ;;  %v8897_v59 = vadd.f32 %v8791_v10, %v8553_v40 }
 0x15c   : > { %v1874_v35 = vsel %vm1618_vm10, %v8814_v21, %v1746_v56  ;;  %v1876_v41 = vsel %vm1620_vm11, %v8817_v2, %v1748_v3  ;;  %v8907_v38 = vadd.f32 %v8808_v29, %v8540_v34  ;;  %v1178_v17 = vadd.f32 %v1177_v61, %v8548_v18  ;;  %3782 = vmatpush2.bf16.msra.mxu0 %v7435_v1  ;;  %v7441_v21 = vld [vmem:[#allocation2 + $0x580] ss:$16 sps:$4 sm:$0xff]  }
 0x15d   : > { %v8871_v16 = vpop.f32.mrf.mxu0  ;;  %v8873_v15 = vpop.f32.mrf.mxu1  ;;  %v1866_v52 = vsel %vm1610_vm12, %v8802_v58, %v1738_v47  ;;  %v1868_v10 = vsel %vm1612_vm13, %v8806_v39, %v1740_v32  ;;  %v1291_v2 = vadd.f32 %v1290_v6, %v8553_v40  ;;  %3895 = vmatpush2.bf16.msra.mxu1 %v7438_v51  ;;  %3783 = vmatprep.subr.bf16.mxu0 %v7443_v19  ;;  %v7444_v1 = vld [vmem:[#allocation2 + $0x780] ss:$16 sps:$4 sm:$0xff]   ;;  %v7449_v32 = vld [vmem:[#allocation2 + $0x564] ss:$16 sps:$4 sm:$0xff]   ;;  %vm1625_vm0 = vcmp.gt.f32.partialorder %v8881_v28, 0.0 }
 0x15e   : > { %v8921_v29 = vpack.c.bf16 %v1874_v35, %v1866_v52  ;;  %v8923_v3 = vpack.c.bf16 %v1876_v41, %v1868_v10  ;;  %v1865_v58 = vsel %vm1609_vm8, %v8783_v48, %v1737_v53  ;;  %v1873_v39 = vsel %vm1617_vm14, %v8837_v7, %v1745_v20  ;;  %3896 = vmatprep.subr.bf16.mxu1 %v7446_v50  ;;  %v7447_v47 = vld [vmem:[#allocation2 + $0x560] ss:$16 sps:$4 sm:$0xff]  }
 0x15f   : > { %v8887_v60 = vpop.f32.mrf.mxu0  ;;  %v8889_v4 = vpop.f32.mrf.mxu1  ;;  %v1867_v61 = vsel %vm1611_vm9, %v8798_v54, %v1739_v45  ;;  %v1875_v6 = vsel %vm1619_vm15, %v1279_v49, %v1747_v30  ;;  %v1289_v48 = vadd.f32 %v8810_v0, %v8544_v36  ;;  %v8943_v7 = vpack.c.bf16 %v1873_v39, %v1865_v58  ;;  %v7452_v30 = vld [vmem:[#allocation2 + $0x764] ss:$16 sps:$4 sm:$0xff]   ;;  %v7450_v20 = vld [vmem:[#allocation2 + $0x760] ss:$16 sps:$4 sm:$0xff]  }
 0x160   : > { %11039 = vst [vmem:[#allocation18_spill] sm:$0xff] %v8921_v29  ;;  %11040 = vst [vmem:[#allocation19_spill] sm:$0xff] %v8923_v3  ;;  %3617 = vmatprep.mubr.bf16.mxu0 %v8921_v29  ;;  %3730 = vmatprep.mubr.bf16.mxu1 %v8923_v3  ;;  %v8945_v54 = vpack.c.bf16 %v1875_v6, %v1867_v61  ;;  %v7455_v49 = vld [vmem:[#allocation2 + $0x544] ss:$16 sps:$4 sm:$0xff]   ;;  %v1754_v50 = vmul.f32 0.01, %v8893_v62  ;;  %v8967_v61 = vadd.f32 %v8853_v46, %v8540_v34 }
 0x161   : > { %v8916_v56 = vpop.f32.mrf.mxu0  ;;  %v8918_v5 = vpop.f32.mrf.mxu1  ;;  %11041 = vst [vmem:[#allocation20_spill] sm:$0xff] %v8943_v7  ;;  %v1762_v45 = vmul.f32 0.01, %v1178_v17  ;;  %3784 = vmatpush2.bf16.msra.mxu0 %v7441_v21  ;;  %v11043_v0 = vsub.s32 5, %v8521_v27  ;;  %v1753_v10 = vmul.f32 0.01, %v8881_v28  ;;  %3897 = vmatpush2.bf16.msra.mxu1 %v7444_v1  ;;  %v8987_v29 = vadd.f32 %v8855_v31, %v8544_v36 }
 0x162   : > { %11042 = vst [vmem:[#allocation21_spill] sm:$0xff] %v8945_v54  ;;  %vm1626_vm1 = vcmp.gt.f32.partialorder %v8893_v62, 0.0  ;;  %vm1634_vm2 = vcmp.gt.f32.partialorder %v1178_v17, 0.0  ;;  %v1764_v58 = vmul.f32 0.01, %v1291_v2  ;;  %3618 = vmatmul.mubr.bf16.gmra.mxu0 %v8943_v7  ;;  %3731 = vmatmul.mubr.bf16.gmra.mxu1 %v8945_v54  ;;  %vm1636_vm3 = vcmp.gt.f32.partialorder %v1291_v2, 0.0 }
 0x163   : > { %v8935_v51 = vpop.f32.mrf.mxu0  ;;  %v8937_v19 = vpop.f32.mrf.mxu1  ;;  %v8953_v35 = vrot.slane %v8529_v24, %v11043_v0  ;;  %v1755_v21 = vmul.f32 0.01, %v8885_v63  ;;  %v1756_v39 = vmul.f32 0.01, %v8897_v59  ;;  %3785 = vmatprep.subr.bf16.mxu0 %v7449_v32  ;;  %vm1627_vm4 = vcmp.gt.f32.partialorder %v8885_v63, 0.0  ;;  %3898 = vmatprep.subr.bf16.mxu1 %v7452_v30 }
 0x164   : > { %vm1628_vm5 = vcmp.gt.f32.partialorder %v8897_v59, 0.0  ;;  %v1761_v53 = vmul.f32 0.01, %v8907_v38  ;;  %v1763_v54 = vmul.f32 0.01, %v1289_v48  ;;  %vm1633_vm6 = vcmp.gt.f32.partialorder %v8907_v38, 0.0 }
 0x165   : > { %v8955_v41 = vpop.f32.mrf.mxu0  ;;  %v8957_v52 = vpop.f32.mrf.mxu1  ;;  %vm1635_vm7 = vcmp.gt.f32.partialorder %v1289_v48, 0.0  ;;  %v1882_v46 = vsel %vm1626_vm1, %v8893_v62, %v1754_v50  ;;  %v1890_v1 = vsel %vm1634_vm2, %v1178_v17, %v1762_v45  ;;  %3786 = vmatpush2.bf16.msra.mxu0 %v7447_v47  ;;  %v7453_v32 = vld [vmem:[#allocation2 + $0x540] ss:$16 sps:$4 sm:$0xff]   ;;  %v8991_v30 = vadd.f32 %v8871_v16, %v8548_v18  ;;  %v7458_v17 = vld [vmem:[#allocation2 + $0x744] ss:$16 sps:$4 sm:$0xff]   ;;  %3899 = vmatpush2.bf16.msra.mxu1 %v7450_v20 }
 0x166   : > { %v8993_v55 = vpack.c.bf16 %v1890_v1, %v1882_v46  ;;  %v1892_v62 = vsel %vm1636_vm3, %v1291_v2, %v1764_v58  ;;  %3787 = vmatprep.subr.bf16.mxu0 %v7455_v49  ;;  %vm1641_vm8 = vcmp.gt.f32.partialorder %v8967_v61, 0.0  ;;  %v8999_v47 = vadd.f32 %v8916_v56, %v8548_v18  ;;  %v7461_v45 = vld [vmem:[#allocation2 + $0x524] ss:$16 sps:$4 sm:$0xff]   ;;  %3900 = vmatprep.subr.bf16.mxu1 %v7458_v17 }
 0x167   : > { %v8969_v6 = vpop.f32.mrf.mxu0  ;;  %v8971_v0 = vpop.f32.mrf.mxu1  ;;  %v9003_v31 = vadd.f32 %v8918_v5, %v8553_v40  ;;  %v1884_v16 = vsel %vm1628_vm5, %v8897_v59, %v1756_v39  ;;  %v1881_v2 = vsel %vm1625_vm0, %v8881_v28, %v1753_v10  ;;  %v1889_v5 = vsel %vm1633_vm6, %v8907_v38, %v1761_v53  ;;  %v7456_v28 = vld [vmem:[#allocation2 + $0x740] ss:$16 sps:$4 sm:$0xff]   ;;  %v7464_v53 = vld [vmem:[#allocation2 + $0x724] ss:$16 sps:$4 sm:$0xff]  }
 0x168   : > { %11044 = vst [vmem:[#allocation22_spill] sm:$0xff] %v8993_v55  ;;  %3627 = vmatprep.mubr.bf16.mxu0 %v8993_v55  ;;  %v9016_v18 = vpack.c.bf16 %v1892_v62, %v1884_v16  ;;  %v1883_v59 = vsel %vm1627_vm4, %v8885_v63, %v1755_v21  ;;  %v1891_v56 = vsel %vm1635_vm7, %v1289_v48, %v1763_v54  ;;  %v7459_v38 = vld [vmem:[#allocation2 + $0x520] ss:$16 sps:$4 sm:$0xff]   ;;  %v7467_v48 = vld [vmem:[#allocation2 + $0x504] ss:$16 sps:$4 sm:$0xff]   ;;  %vm1643_vm9 = vcmp.gt.f32.partialorder %v8987_v29, 0.0 }
 0x169   : > { %v8981_v7 = vpop.f32.mrf.mxu0  ;;  %v8983_v3 = vpop.f32.mrf.mxu1  ;;  %v1297_v20 = vadd.f32 %v8873_v15, %v8553_v40  ;;  %v9029_v10 = vadd.f32 %v8887_v60, %v8540_v34  ;;  %v9031_v58 = vpack.c.bf16 %v1889_v5, %v1881_v2  ;;  %v9033_v39 = vpack.c.bf16 %v1891_v56, %v1883_v59  ;;  %3788 = vmatpush2.bf16.msra.mxu0 %v7453_v32  ;;  %v7462_v60 = vld [vmem:[#allocation2 + $0x720] ss:$16 sps:$4 sm:$0xff]   ;;  %v7473_v5 = vld [vmem:[#allocation2 + $0xec] ss:$16 sps:$4 sm:$0xff]  }
 0x16a   : > { %11045 = vst [vmem:[#allocation23_spill] sm:$0xff] %v9016_v18  ;;  %v1769_v54 = vmul.f32 0.01, %v8967_v61  ;;  %v9042_v40 = vmul.f32 0.01, %v8987_v29  ;;  %v9046_v34 = vadd.f32 %v8889_v4, %v8544_v36  ;;  %3740 = vmatprep.mubr.bf16.mxu1 %v9016_v18  ;;  %v11048_v32 = vsub.s32 7, %v8521_v27  ;;  %3901 = vmatpush2.bf16.msra.mxu1 %v7456_v28 }
 0x16b   : > { %v9011_v49 = vpop.f32.mrf.mxu0  ;;  %v9013_v50 = vpop.f32.mrf.mxu1  ;;  %11046 = vst [vmem:[#allocation24_spill] sm:$0xff] %v9031_v58  ;;  %11047 = vst [vmem:[#allocation25_spill] sm:$0xff] %v9033_v39  ;;  %v1770_v15 = vmul.f32 0.01, %v8991_v30  ;;  %v1778_v21 = vmul.f32 0.01, %v8999_v47  ;;  %3628 = vmatmul.mubr.bf16.gmra.mxu0 %v9031_v58  ;;  %3741 = vmatmul.mubr.bf16.gmra.mxu1 %v9033_v39  ;;  %v9067_v16 = vadd.f32 %v8935_v51, %v8683_v8 }
 0x16c   : > { %v1780_v1 = vmul.f32 0.01, %v9003_v31  ;;  %v9057_v62 = vrot.slane %v8529_v24, %v11048_v32  ;;  %v7465_v36 = vld [vmem:[#allocation2 + $0x500] ss:$16 sps:$4 sm:$0xff]   ;;  %vm1650_vm10 = vcmp.gt.f32.partialorder %v8999_v47, 0.0  ;;  %vm1652_vm11 = vcmp.gt.f32.partialorder %v9003_v31, 0.0  ;;  %3789 = vmatprep.subr.bf16.mxu0 %v7461_v45  ;;  %3902 = vmatprep.subr.bf16.mxu1 %v7464_v53 }
 0x16d   : > { %v9035_v46 = vpop.f32.mrf.mxu0  ;;  %v9037_v63 = vpop.f32.mrf.mxu1  ;;  %v1342_v2 = vadd.f32 %v8969_v6, %v8683_v8  ;;  %v7470_v24 = vld [vmem:[#allocation2 + $0x704] ss:$16 sps:$4 sm:$0xff]   ;;  %vm1642_vm12 = vcmp.gt.f32.partialorder %v8991_v30, 0.0  ;;  %vm1644_vm13 = vcmp.gt.f32.partialorder %v1297_v20, 0.0  ;;  %v1772_v59 = vmul.f32 0.01, %v1297_v20  ;;  %3790 = vmatpush2.bf16.msra.mxu0 %v7459_v38 }
 0x16e   : > { %vm1649_vm14 = vcmp.gt.f32.partialorder %v9029_v10, 0.0  ;;  %v1777_v51 = vmul.f32 0.01, %v9029_v10  ;;  %vm1651_vm15 = vcmp.gt.f32.partialorder %v9046_v34, 0.0  ;;  %v1779_v6 = vmul.f32 0.01, %v9046_v34  ;;  %3791 = vmatprep.subr.bf16.mxu0 %v7467_v48  ;;  %3903 = vmatpush2.bf16.msra.mxu1 %v7462_v60 }
 0x16f   : > { %v9059_v4 = vpop.f32.mrf.mxu0  ;;  %v9061_v17 = vpop.f32.mrf.mxu1  ;;  %v1451_v28 = vadd.f32 %v8937_v19, %v8864_v57  ;;  %v9084_v45 = vadd.f32 %v8955_v41, %v8953_v35  ;;  %v9088_v38 = vadd.f32 %v8957_v52, %v9057_v62  ;;  %v1906_v53 = vsel %vm1650_vm10, %v8999_v47, %v1778_v21  ;;  %v7468_v58 = vld [vmem:[#allocation2 + $0x700] ss:$16 sps:$4 sm:$0xff]   ;;  %3904 = vmatprep.subr.bf16.mxu1 %v7470_v24  ;;  %v7476_v60 = vld [vmem:[#allocation2 + $0x2ec] ss:$16 sps:$4 sm:$0xff]  }
 0x170   : > { %v1908_v27 = vsel %vm1652_vm11, %v9003_v31, %v1780_v1  ;;  %v1661_v48 = vmul.f32 0.01, %v9067_v16  ;;  %vm1541_vm0 = vcmp.gt.f32.partialorder %v1342_v2, 0.0  ;;  %v1455_v41 = vadd.f32 %v8971_v0, %v8864_v57 }
 0x171   : > { %v9073_v56 = vpop.f32.mrf.mxu0  ;;  %v9075_v32 = vpop.f32.mrf.mxu1  ;;  %v1898_v52 = vsel %vm1642_vm12, %v8991_v30, %v1770_v15  ;;  %v1669_v47 = vmul.f32 0.01, %v1342_v2  ;;  %v1344_v21 = vadd.f32 %v8981_v7, %v8953_v35  ;;  %v1900_v1 = vsel %vm1644_vm13, %v1297_v20, %v1772_v59  ;;  %3792 = vmatpush2.bf16.msra.mxu0 %v7465_v36 }
 0x172   : > { %v9108_v31 = vpack.c.bf16 %v1906_v53, %v1898_v52  ;;  %v1457_v0 = vadd.f32 %v8983_v3, %v9057_v62  ;;  %v9117_v30 = vpack.c.bf16 %v1908_v27, %v1900_v1  ;;  %v1897_v7 = vsel %vm1641_vm8, %v8967_v61, %v1769_v54  ;;  %3987 = vmatprep.subr.bf16.mxu0 %v7473_v5 }
 0x173   : > { %v9096_v39 = vpop.f32.mrf.mxu0  ;;  %v9098_v19 = vpop.f32.mrf.mxu1  ;;  %v1905_v20 = vsel %vm1649_vm14, %v9029_v10, %v1777_v51  ;;  %v1663_v15 = vmul.f32 0.01, %v1451_v28  ;;  %v1899_v27 = vsel %vm1643_vm9, %v8987_v29, %v9042_v40  ;;  %v1907_v3 = vsel %vm1651_vm15, %v9046_v34, %v1779_v6  ;;  %3905 = vmatpush2.bf16.msra.mxu1 %v7468_v58 }
 0x174   : > { %11049 = vst [vmem:[#allocation26_spill] sm:$0xff] %v9108_v31  ;;  %11050 = vst [vmem:[#allocation27_spill] sm:$0xff] %v9117_v30  ;;  %3637 = vmatprep.mubr.bf16.mxu0 %v9108_v31  ;;  %v9126_v36 = vpack.c.bf16 %v1905_v20, %v1897_v7  ;;  %vm1533_vm1 = vcmp.gt.f32.partialorder %v9067_v16, 0.0  ;;  %vm1535_vm2 = vcmp.gt.f32.partialorder %v1451_v28, 0.0  ;;  %v1671_v10 = vmul.f32 0.01, %v1455_v41  ;;  %3750 = vmatprep.mubr.bf16.mxu1 %v9117_v30 }
 0x175   : > { %v9111_v18 = vpop.f32.mrf.mxu0  ;;  %v9113_v55 = vpop.f32.mrf.mxu1  ;;  %v9141_v24 = vpack.c.bf16 %v1907_v3, %v1899_v27  ;;  %v1662_v5 = vmul.f32 0.01, %v9084_v45  ;;  %v1797_v29 = vsel %vm1541_vm0, %v1342_v2, %v1669_v47  ;;  %vm1543_vm3 = vcmp.gt.f32.partialorder %v1455_v41, 0.0  ;;  %4100 = vmatprep.subr.bf16.mxu1 %v7476_v60  ;;  %v7471_v27 = vld [vmem:[#allocation2 + $0xe8] ss:$16 sps:$4 sm:$0xff]  }
 0x176   : > { %11051 = vst [vmem:[#allocation28_spill] sm:$0xff] %v9126_v36  ;;  %v1670_v40 = vmul.f32 0.01, %v1344_v21  ;;  %3638 = vmatmul.mubr.bf16.gmra.mxu0 %v9126_v36  ;;  %vm1534_vm4 = vcmp.gt.f32.partialorder %v9084_v45, 0.0  ;;  %vm1536_vm5 = vcmp.gt.f32.partialorder %v9088_v38, 0.0  ;;  %vm1542_vm6 = vcmp.gt.f32.partialorder %v1344_v21, 0.0 }
 0x177   : > { %v9135_v61 = vpop.f32.mrf.mxu0  ;;  %v9137_v54 = vpop.f32.mrf.mxu1  ;;  %11052 = vst [vmem:[#allocation29_spill] sm:$0xff] %v9141_v24  ;;  %v1672_v51 = vmul.f32 0.01, %v1457_v0  ;;  %3751 = vmatmul.mubr.bf16.gmra.mxu1 %v9141_v24  ;;  %v1789_v2 = vsel %vm1533_vm1, %v9067_v16, %v1661_v48  ;;  %v1791_v6 = vsel %vm1535_vm2, %v1451_v28, %v1663_v15  ;;  %v1664_v58 = vmul.f32 0.01, %v9088_v38 }
 0x178   : > { %vm1544_vm7 = vcmp.gt.f32.partialorder %v1457_v0, 0.0  ;;  %v9162_v47 = vpack.c.bf16 %v1797_v29, %v1789_v2  ;;  %v1799_v1 = vsel %vm1543_vm3, %v1455_v41, %v1671_v10  ;;  %v9167_v7 = vadd.f32 %v9011_v49, %v8683_v8  ;;  %v7474_v10 = vld [vmem:[#allocation2 + $0x2e8] ss:$16 sps:$4 sm:$0xff]   ;;  %v7488_v30 = vld [vmem:[#allocation2 + $0x2ac] ss:$16 sps:$4 sm:$0xff]  }
 0x179   : > { %v9146_v34 = vpop.f32.mrf.mxu0  ;;  %v9148_v59 = vpop.f32.mrf.mxu1  ;;  %v9171_v16 = vadd.f32 %v9013_v50, %v8864_v57  ;;  %v9175_v28 = vadd.f32 %v9035_v46, %v8953_v35  ;;  %v9179_v48 = vadd.f32 %v9037_v63, %v9057_v62  ;;  %v1790_v41 = vsel %vm1534_vm4, %v9084_v45, %v1662_v5 }
 0x17a   : > { %11053 = vst [vmem:[#allocation30_spill] sm:$0xff] %v9162_v47  ;;  %v1798_v20 = vsel %vm1542_vm6, %v1344_v21, %v1670_v40  ;;  %v1354_v50 = vadd.f32 %v9073_v56, %v8953_v35  ;;  %v1467_v46 = vadd.f32 %v9075_v32, %v9057_v62  ;;  %v1800_v63 = vsel %vm1544_vm7, %v1457_v0, %v1672_v51  ;;  %v7479_v32 = vld [vmem:[#allocation2 + $0xcc] ss:$16 sps:$4 sm:$0xff]  }
 0x17b   : > { %v9158_v53 = vpop.f32.mrf.mxu0  ;;  %v9160_v52 = vpop.f32.mrf.mxu1  ;;  %v9193_v15 = vpack.c.bf16 %v1798_v20, %v1790_v41  ;;  %v9196_v3 = vpack.c.bf16 %v1799_v1, %v1791_v6  ;;  %v1352_v45 = vadd.f32 %v9059_v4, %v8683_v8  ;;  %v9202_v21 = vadd.f32 %v9061_v17, %v8864_v57  ;;  %v7477_v17 = vld [vmem:[#allocation2 + $0xc8] ss:$16 sps:$4 sm:$0xff]   ;;  %v7482_v40 = vld [vmem:[#allocation2 + $0x2cc] ss:$16 sps:$4 sm:$0xff]  }
 0x17c   : > { %v1792_v56 = vsel %vm1536_vm5, %v9088_v38, %v1664_v58  ;;  %vm1549_vm8 = vcmp.gt.f32.partialorder %v9167_v7, 0.0  ;;  %v1677_v0 = vmul.f32 0.01, %v9167_v7  ;;  %vm1551_vm9 = vcmp.gt.f32.partialorder %v9171_v16, 0.0  ;;  %v7485_v6 = vld [vmem:[#allocation2 + $0xac] ss:$16 sps:$4 sm:$0xff]  }
 0x17d   : > { %v9185_v49 = vpop.f32.mrf.mxu0  ;;  %v9187_v60 = vpop.f32.mrf.mxu1  ;;  %11054 = vst [vmem:[#allocation31_spill] sm:$0xff] %v9193_v15  ;;  %11055 = vst [vmem:[#allocation32_spill] sm:$0xff] %v9196_v3  ;;  %3793 = vmatprep.mubr.bf16.mxu0 %v9193_v15  ;;  %v9215_v4 = vpack.c.bf16 %v1800_v63, %v1792_v56  ;;  %v1679_v38 = vmul.f32 0.01, %v9171_v16  ;;  %vm1550_vm10 = vcmp.gt.f32.partialorder %v9175_v28, 0.0  ;;  %v9223_v2 = vadd.f32 %v9096_v39, %v8683_v8 }
 0x17e   : > { %v1678_v51 = vmul.f32 0.01, %v9175_v28  ;;  %3794 = vmatmul.mubr.bf16.vlgmr.msra.gmra.mxu0 %v9162_v47  ;;  %v1680_v41 = vmul.f32 0.01, %v9179_v48  ;;  %v1686_v20 = vmul.f32 0.01, %v1354_v50  ;;  %v9254_v15 = vadd.f32 %v9146_v34, %v8953_v35 }
 0x17f   : > { %v9207_v5 = vpop.f32.mrf.mxu0  ;;  %v9209_v29 = vpop.f32.mrf.mxu1  ;;  %11056 = vst [vmem:[#allocation33_spill] sm:$0xff] %v9215_v4  ;;  %v1688_v63 = vmul.f32 0.01, %v1467_v46  ;;  %3906 = vmatprep.mubr.bf16.mxu1 %v9215_v4  ;;  %3988 = vmatpush1.bf16.msra.mxu0 %v7471_v27  ;;  %vm1552_vm11 = vcmp.gt.f32.partialorder %v9179_v48, 0.0  ;;  %v1685_v56 = vmul.f32 0.01, %v1352_v45  ;;  %v9241_v27 = vadd.f32 %v9098_v19, %v8864_v57 }
 0x180   : > { %vm1558_vm12 = vcmp.gt.f32.partialorder %v1354_v50, 0.0  ;;  %vm1560_vm13 = vcmp.gt.f32.partialorder %v1467_v46, 0.0  ;;  %3907 = vmatmul.mubr.bf16.vlgmr.msra.gmra.mxu1 %v9196_v3  ;;  %3989 = vmatprep.subr.bf16.mxu0 %v7479_v32  ;;  %vm1557_vm14 = vcmp.gt.f32.partialorder %v1352_v45, 0.0  ;;  %vm1559_vm15 = vcmp.gt.f32.partialorder %v9202_v21, 0.0  ;;  %v7480_v4 = vld [vmem:[#allocation2 + $0x2c8] ss:$16 sps:$4 sm:$0xff]  }
 0x181   : > { %v9225_v58 = vpop.f32.mrf.mxu0  ;;  %v9227_v1 = vpop.f32.mrf.mxu1  ;;  %v1687_v24 = vmul.f32 0.01, %v9202_v21  ;;  %4101 = vmatpush1.bf16.msra.mxu1 %v7474_v10  ;;  %vm1565_vm0 = vcmp.gt.f32.partialorder %v9223_v2, 0.0  ;;  %v9246_v32 = vadd.f32 %v9111_v18, %v8953_v35  ;;  %v9250_v3 = vadd.f32 %v9113_v55, %v9057_v62 }
 0x182   : > { %4102 = vmatprep.subr.bf16.mxu1 %v7482_v40  ;;  %v9258_v19 = vadd.f32 %v9148_v59, %v9057_v62  ;;  %v1806_v18 = vsel %vm1550_vm10, %v9175_v28, %v1678_v51  ;;  %v1814_v55 = vsel %vm1558_vm12, %v1354_v50, %v1686_v20  ;;  %v1808_v34 = vsel %vm1552_vm11, %v9179_v48, %v1680_v41 }
 0x183   : > { %v9233_v39 = vpop.f32.mrf.mxu0  ;;  %v9235_v47 = vpop.f32.mrf.mxu1  ;;  %3990 = vmatpush1.bf16.msra.mxu0 %v7477_v17  ;;  %v1816_v40 = vsel %vm1560_vm13, %v1467_v46, %v1688_v63  ;;  %v9272_v59 = vpack.c.bf16 %v1814_v55, %v1806_v18  ;;  %v1805_v17 = vsel %vm1549_vm8, %v9167_v7, %v1677_v0  ;;  %v1813_v28 = vsel %vm1557_vm14, %v1352_v45, %v1685_v56  ;;  %v7486_v45 = vld [vmem:[#allocation2 + $0x2a8] ss:$16 sps:$4 sm:$0xff]   ;;  %v7491_v0 = vld [vmem:[#allocation2 + $0x8c] ss:$16 sps:$4 sm:$0xff]  }
 0x184   : > { %v9274_v31 = vpack.c.bf16 %v1816_v40, %v1808_v34  ;;  %3991 = vmatprep.subr.bf16.mxu0 %v7485_v6  ;;  %v9286_v48 = vadd.f32 %v9135_v61, %v8683_v8  ;;  %v9288_v46 = vpack.c.bf16 %v1813_v28, %v1805_v17  ;;  %v1807_v6 = vsel %vm1551_vm9, %v9171_v16, %v1679_v38  ;;  %v7489_v16 = vld [vmem:[#allocation2 + $0x88] ss:$16 sps:$4 sm:$0xff]   ;;  %v7494_v38 = vld [vmem:[#allocation2 + $0x28c] ss:$16 sps:$4 sm:$0xff]  }
 0x185   : > { %v9260_v10 = vpop.f32.mrf.mxu0  ;;  %v9262_v36 = vpop.f32.mrf.mxu1  ;;  %11057 = vst [vmem:[#allocation34_spill] sm:$0xff] %v9272_v59  ;;  %4103 = vmatpush1.bf16.msra.mxu1 %v7480_v4  ;;  %v1815_v7 = vsel %vm1559_vm15, %v9202_v21, %v1687_v24  ;;  %v1693_v41 = vmul.f32 0.01, %v9223_v2  ;;  %vm1567_vm1 = vcmp.gt.f32.partialorder %v9241_v27, 0.0  ;;  %v1475_v61 = vadd.f32 %v9137_v54, %v8864_v57  ;;  %3803 = vmatprep.mubr.bf16.mxu0 %v9272_v59  ;;  %v7492_v54 = vld [vmem:[#allocation2 + $0x288] ss:$16 sps:$4 sm:$0xff]  }
 0x186   : > { %11058 = vst [vmem:[#allocation35_spill] sm:$0xff] %v9274_v31  ;;  %11059 = vst [vmem:[#allocation36_spill] sm:$0xff] %v9288_v46  ;;  %3916 = vmatprep.mubr.bf16.mxu1 %v9274_v31  ;;  %v9302_v4 = vpack.c.bf16 %v1815_v7, %v1807_v6  ;;  %v1695_v21 = vmul.f32 0.01, %v9241_v27  ;;  %v1702_v63 = vmul.f32 0.01, %v9254_v15  ;;  %3804 = vmatmul.mubr.bf16.gmra.mxu0 %v9288_v46 }
 0x187   : > { %v9280_v50 = vpop.f32.mrf.mxu0  ;;  %v9282_v51 = vpop.f32.mrf.mxu1  ;;  %v1704_v56 = vmul.f32 0.01, %v9258_v19  ;;  %4104 = vmatprep.subr.bf16.mxu1 %v7488_v30  ;;  %v7497_v18 = vld [vmem:[#allocation2 + $0x6c] ss:$16 sps:$4 sm:$0xff]   ;;  %v1694_v55 = vmul.f32 0.01, %v9246_v32  ;;  %3992 = vmatpush1.bf16.msra.mxu0 %v7483_v44  ;;  %v9326_v30 = vadd.f32 %v9158_v53, %v8683_v8  ;;  %v9331_v7 = vadd.f32 %v9160_v52, %v8864_v57 }
 0x188   : > { %11060 = vst [vmem:[#allocation37_spill] sm:$0xff] %v9302_v4  ;;  %v1696_v34 = vmul.f32 0.01, %v9250_v3  ;;  %vm1574_vm2 = vcmp.gt.f32.partialorder %v9254_v15, 0.0  ;;  %vm1576_vm3 = vcmp.gt.f32.partialorder %v9258_v19, 0.0  ;;  %3917 = vmatmul.mubr.bf16.gmra.mxu1 %v9302_v4  ;;  %vm1566_vm4 = vcmp.gt.f32.partialorder %v9246_v32, 0.0  ;;  %3993 = vmatprep.subr.bf16.mxu0 %v7491_v0 }
 0x189   : > { %v9304_v20 = vpop.f32.mrf.mxu0  ;;  %v9306_v24 = vpop.f32.mrf.mxu1  ;;  %vm1568_vm5 = vcmp.gt.f32.partialorder %v9250_v3, 0.0  ;;  %vm1573_vm6 = vcmp.gt.f32.partialorder %v9286_v48, 0.0  ;;  %4105 = vmatpush1.bf16.msra.mxu1 %v7486_v45  ;;  %v7500_v28 = vld [vmem:[#allocation2 + $0x26c] ss:$16 sps:$4 sm:$0xff]   ;;  %v1701_v6 = vmul.f32 0.01, %v9286_v48  ;;  %v9339_v53 = vadd.f32 %v9185_v49, %v8953_v35 }
 0x18a   : > { %vm1575_vm7 = vcmp.gt.f32.partialorder %v1475_v61, 0.0  ;;  %v1703_v44 = vmul.f32 0.01, %v1475_v61  ;;  %4106 = vmatprep.subr.bf16.mxu1 %v7494_v38  ;;  %v9343_v45 = vadd.f32 %v9187_v60, %v9057_v62  ;;  %v1830_v0 = vsel %vm1574_vm2, %v9254_v15, %v1702_v63  ;;  %v7495_v63 = vld [vmem:[#allocation2 + $0x68] ss:$16 sps:$4 sm:$0xff]  }
 0x18b   : > { %v9317_v40 = vpop.f32.mrf.mxu0  ;;  %v9319_v17 = vpop.f32.mrf.mxu1  ;;  %v1832_v52 = vsel %vm1576_vm3, %v9258_v19, %v1704_v56  ;;  %3994 = vmatpush1.bf16.msra.mxu0 %v7489_v16  ;;  %v9353_v38 = vadd.f32 %v9207_v5, %v8683_v8  ;;  %v9357_v49 = vadd.f32 %v9225_v58, %v8953_v35  ;;  %v1822_v60 = vsel %vm1566_vm4, %v9246_v32, %v1694_v55  ;;  %v7498_v55 = vld [vmem:[#allocation2 + $0x268] ss:$16 sps:$4 sm:$0xff]  }
 0x18c   : > { %v1824_v15 = vsel %vm1568_vm5, %v9250_v3, %v1696_v34  ;;  %vm1581_vm8 = vcmp.gt.f32.partialorder %v9326_v30, 0.0  ;;  %v9371_v5 = vmul.f32 0.01, %v9326_v30  ;;  %v9373_v58 = vpack.c.bf16 %v1830_v0, %v1822_v60  ;;  %3995 = vmatprep.subr.bf16.mxu0 %v7497_v18  ;;  %v7503_v34 = vld [vmem:[#allocation2 + $0x4c] ss:$16 sps:$4 sm:$0xff]  }
 0x18d   : > { %v9333_v4 = vpop.f32.mrf.mxu0  ;;  %v9335_v46 = vpop.f32.mrf.mxu1  ;;  %4107 = vmatpush1.bf16.msra.mxu1 %v7492_v54  ;;  %v9375_v16 = vpack.c.bf16 %v1832_v52, %v1824_v15  ;;  %v1821_v3 = vsel %vm1565_vm0, %v9223_v2, %v1693_v41  ;;  %vm1583_vm9 = vcmp.gt.f32.partialorder %v9331_v7, 0.0  ;;  %v1829_v32 = vsel %vm1573_vm6, %v9286_v48, %v1701_v6  ;;  %v7504_v6 = vld [vmem:[#allocation2 + $0x248] ss:$16 sps:$4 sm:$0xff]  }
 0x18e   : > { %11061 = vst [vmem:[#allocation38_spill] sm:$0xff] %v9373_v58  ;;  %v1823_v56 = vsel %vm1567_vm1, %v9241_v27, %v1695_v21  ;;  %v1831_v54 = vsel %vm1575_vm7, %v1475_v61, %v1703_v44  ;;  %4108 = vmatprep.subr.bf16.mxu1 %v7500_v28  ;;  %v1378_v18 = vadd.f32 %v9233_v39, %v8683_v8  ;;  %v9395_v41 = vmul.f32 0.01, %v9331_v7  ;;  %v7501_v39 = vld [vmem:[#allocation2 + $0x48] ss:$16 sps:$4 sm:$0xff]  }
 0x18f   : > { %v9365_v31 = vpop.f32.mrf.mxu0  ;;  %v9367_v19 = vpop.f32.mrf.mxu1  ;;  %11062 = vst [vmem:[#allocation39_spill] sm:$0xff] %v9375_v16  ;;  %v9399_v48 = vadd.f32 %v9209_v29, %v8864_v57  ;;  %3813 = vmatprep.mubr.bf16.mxu0 %v9373_v58  ;;  %3926 = vmatprep.mubr.bf16.mxu1 %v9375_v16  ;;  %v9403_v27 = vpack.c.bf16 %v1829_v32, %v1821_v3  ;;  %v7506_v21 = vld [vmem:[#allocation2 + $0x24c] ss:$16 sps:$4 sm:$0xff]   ;;  %vm1582_vm10 = vcmp.gt.f32.partialorder %v9339_v53, 0.0  ;;  %v1710_v28 = vmul.f32 0.01, %v9339_v53 }
 0x190   : > { %v9405_v61 = vpack.c.bf16 %v1831_v54, %v1823_v56  ;;  %vm1584_vm11 = vcmp.gt.f32.partialorder %v9343_v45, 0.0  ;;  %v1487_v29 = vadd.f32 %v9227_v1, %v9057_v62  ;;  %3996 = vmatpush1.bf16.msra.mxu0 %v7495_v63  ;;  %v1712_v44 = vmul.f32 0.01, %v9343_v45  ;;  %v7509_v3 = vld [vmem:[#allocation2 + $0x2c] ss:$16 sps:$4 sm:$0xff]  }
 0x191   : > { %v9390_v0 = vpop.f32.mrf.mxu0  ;;  %v9392_v2 = vpop.f32.mrf.mxu1  ;;  %11063 = vst [vmem:[#allocation40_spill] sm:$0xff] %v9403_v27  ;;  %v1718_v52 = vmul.f32 0.01, %v9357_v49  ;;  %3814 = vmatmul.mubr.bf16.gmra.mxu0 %v9403_v27  ;;  %v9418_v60 = vadd.f32 %v9235_v47, %v8864_v57  ;;  %v1382_v15 = vadd.f32 %v9280_v50, %v8683_v8  ;;  %vm1589_vm12 = vcmp.gt.f32.partialorder %v9353_v38, 0.0  ;;  %4109 = vmatpush1.bf16.msra.mxu1 %v7498_v55  ;;  %v7507_v32 = vld [vmem:[#allocation2 + $0x28] ss:$16 sps:$4 sm:$0xff]  }
 0x192   : > { %11064 = vst [vmem:[#allocation41_spill] sm:$0xff] %v9405_v61  ;;  %3927 = vmatmul.mubr.bf16.gmra.mxu1 %v9405_v61  ;;  %vm1590_vm13 = vcmp.gt.f32.partialorder %v9357_v49, 0.0  ;;  %v1725_v1 = vmul.f32 0.01, %v1378_v18  ;;  %3997 = vmatprep.subr.bf16.mxu0 %v7503_v34  ;;  %v1495_v63 = vadd.f32 %v9282_v51, %v8864_v57  ;;  %v7512_v56 = vld [vmem:[#allocation2 + $0x22c] ss:$16 sps:$4 sm:$0xff]   ;;  %v9436_v51 = vadd.f32 %v9260_v10, %v8953_v35 }
 0x193   : > { %v9426_v54 = vpop.f32.mrf.mxu0  ;;  %v9428_v47 = vpop.f32.mrf.mxu1  ;;  %v1717_v61 = vmul.f32 0.01, %v9353_v38  ;;  %vm1591_vm14 = vcmp.gt.f32.partialorder %v9399_v48, 0.0  ;;  %vm1597_vm15 = vcmp.gt.f32.partialorder %v1378_v18, 0.0  ;;  %4110 = vmatprep.subr.bf16.mxu1 %v7506_v21  ;;  %v1733_v50 = vmul.f32 0.01, %v1382_v15 }
 0x194   : > { %v1719_v27 = vmul.f32 0.01, %v9399_v48  ;;  %vm1592_vm0 = vcmp.gt.f32.partialorder %v1487_v29, 0.0  ;;  %v1720_v55 = vmul.f32 0.01, %v1487_v29  ;;  %3998 = vmatpush1.bf16.msra.mxu0 %v7501_v39  ;;  %vm1605_vm1 = vcmp.gt.f32.partialorder %v1382_v15, 0.0 }
 0x195   : > { %vm1599_vm2 = vcmp.gt.f32.partialorder %v9418_v60, 0.0  ;;  %v9440_v34 = vadd.f32 %v9262_v36, %v9057_v62  ;;  %v1846_v21 = vsel %vm1590_vm13, %v9357_v49, %v1718_v52  ;;  %3999 = vmatprep.subr.bf16.mxu0 %v7509_v3  ;;  %v1853_v16 = vsel %vm1597_vm15, %v1378_v18, %v1725_v1  ;;  %4111 = vmatpush1.bf16.msra.mxu1 %v7504_v6  ;;  %v7510_v10 = vld [vmem:[#allocation2 + $0x228] ss:$16 sps:$4 sm:$0xff]   ;;  %v9449_v42 = vpop.f32.mrf.mxu0  ;;  %v9451_v26 = vpop.f32.mrf.mxu1  ;;  %v7521_v1 = vld [vmem:[#allocation2 + $0x1ec] ss:$16 sps:$4 sm:$0xff]  }
 0x196   : > { %v1727_v58 = vmul.f32 0.01, %v9418_v60  ;;  %v1735_v39 = vmul.f32 0.01, %v1495_v63  ;;  %v1838_v59 = vsel %vm1582_vm10, %v9339_v53, %v1710_v28  ;;  %v1861_v36 = vsel %vm1605_vm1, %v1382_v15, %v1733_v50  ;;  %4112 = vmatprep.subr.bf16.mxu1 %v7512_v56  ;;  %v7516_v3 = vld [vmem:[#allocation2 + $0x208] ss:$16 sps:$4 sm:$0xff]  }
 0x197   : > { %vm1607_vm3 = vcmp.gt.f32.partialorder %v1495_v63, 0.0  ;;  %v1384_v49 = vadd.f32 %v9304_v20, %v8953_v35  ;;  %v9455_v52 = vpack.c.bf16 %v1846_v21, %v1838_v59  ;;  %v1840_v18 = vsel %vm1584_vm11, %v9343_v45, %v1712_v44  ;;  %v7515_v20 = vld [vmem:[#allocation2 + $0xc] ss:$16 sps:$4 sm:$0xff]  }
 0x198   : > { %v1848_v6 = vsel %vm1592_vm0, %v1487_v29, %v1720_v55  ;;  %v1837_v53 = vsel %vm1581_vm8, %v9326_v30, %v9371_v5  ;;  %v1845_v28 = vsel %vm1589_vm12, %v9353_v38, %v1717_v61  ;;  %4000 = vmatpush1.bf16.msra.mxu0 %v7507_v32  ;;  %v1839_v45 = vsel %vm1583_vm9, %v9331_v7, %v9395_v41  ;;  %v7513_v5 = vld [vmem:[#allocation2 + $0x8] ss:$16 sps:$4 sm:$0xff]   ;;  %v7518_v29 = vld [vmem:[#allocation2 + $0x20c] ss:$16 sps:$4 sm:$0xff]   ;;  %v9486_v32 = vpop.f32.mrf.mxu0  ;;  %v9488_v7 = vpop.f32.mrf.mxu1 }
 0x199   : > { %3823 = vmatprep.mubr.bf16.mxu0 %v9455_v52  ;;  %v9469_v59 = vpack.c.bf16 %v1848_v6, %v1840_v18  ;;  %v9471_v15 = vpack.c.bf16 %v1845_v28, %v1837_v53  ;;  %v1847_v30 = vsel %vm1591_vm14, %v9399_v48, %v1719_v27  ;;  %vm1598_vm4 = vcmp.gt.f32.partialorder %v9436_v51, 0.0  ;;  %4113 = vmatpush1.bf16.msra.mxu1 %v7510_v10  ;;  %v7522_v10 = vld [vmem:[#allocation2 + $0x3e8] ss:$16 sps:$4 sm:$0xff]   ;;  %v7527_v53 = vld [vmem:[#allocation2 + $0x1cc] ss:$16 sps:$4 sm:$0xff]  }
 0x19a   : > { %v1863_v38 = vsel %vm1607_vm3, %v1495_v63, %v1735_v39  ;;  %v1497_v61 = vadd.f32 %v9306_v24, %v9057_v62  ;;  %v9484_v44 = vpack.c.bf16 %v1847_v30, %v1839_v45  ;;  %v1726_v41 = vmul.f32 0.01, %v9436_v51  ;;  %v7524_v63 = vld [vmem:[#allocation2 + $0x3ec] ss:$16 sps:$4 sm:$0xff]   ;;  %4001 = vmatprep.subr.bf16.mxu0 %v7515_v20  ;;  %4114 = vmatprep.subr.bf16.mxu1 %v7518_v29 }
 0x19b   : > { %v1734_v48 = vmul.f32 0.01, %v1384_v49  ;;  %3936 = vmatprep.mubr.bf16.mxu1 %v9469_v59  ;;  %3824 = vmatmul.mubr.bf16.gmra.mxu0 %v9471_v15  ;;  %v1388_v27 = vadd.f32 %v9317_v40, %v8683_v8  ;;  %v1392_v24 = vadd.f32 %v9365_v31, %v8683_v8  ;;  %v1855_v56 = vsel %vm1599_vm2, %v9418_v60, %v1727_v58  ;;  %v7519_v58 = vld [vmem:[#allocation2 + $0x1e8] ss:$16 sps:$4 sm:$0xff]   ;;  %v7530_v45 = vld [vmem:[#allocation2 + $0x3cc] ss:$16 sps:$4 sm:$0xff]  }
 0x19c   : > { %vm1600_vm5 = vcmp.gt.f32.partialorder %v9440_v34, 0.0  ;;  %v9501_v50 = vpack.c.bf16 %v1861_v36, %v1853_v16  ;;  %vm1606_vm6 = vcmp.gt.f32.partialorder %v1384_v49, 0.0  ;;  %3937 = vmatmul.mubr.bf16.gmra.mxu1 %v9484_v44  ;;  %v1728_v55 = vmul.f32 0.01, %v9440_v34  ;;  %4002 = vmatpush1.bf16.msra.mxu0 %v7513_v5  ;;  %v9521_v36 = vpop.f32.mrf.mxu1 }
 0x19d   : > { %v9505_v21 = vpack.c.bf16 %v1863_v38, %v1855_v56  ;;  %v1501_v31 = vadd.f32 %v9319_v17, %v8864_v57  ;;  %v9511_v40 = vadd.f32 %v9333_v4, %v8953_v35  ;;  %vm1608_vm7 = vcmp.gt.f32.partialorder %v1497_v61, 0.0  ;;  %4115 = vmatpush1.bf16.msra.mxu1 %v7516_v3  ;;  %4003 = vmatprep.subr.bf16.mxu0 %v7521_v1  ;;  %v9519_v17 = vpop.f32.mrf.mxu0  ;;  %v7533_v38 = vld [vmem:[#allocation2 + $0x1ac] ss:$16 sps:$4 sm:$0xff]  }
 0x19e   : > { %v1736_v16 = vmul.f32 0.01, %v1497_v61  ;;  %v9515_v60 = vadd.f32 %v9335_v46, %v9057_v62  ;;  %v1505_v39 = vadd.f32 %v9367_v19, %v8864_v57  ;;  %vm1613_vm8 = vcmp.gt.f32.partialorder %v1388_v27, 0.0  ;;  %4116 = vmatprep.subr.bf16.mxu1 %v7524_v63  ;;  %v7525_v46 = vld [vmem:[#allocation2 + $0x1c8] ss:$16 sps:$4 sm:$0xff]   ;;  %v9544_v1 = vpop.f32.mrf.mxu1 }
 0x19f   : > { %v1749_v4 = vmul.f32 0.01, %v1392_v24  ;;  %v1854_v18 = vsel %vm1598_vm4, %v9436_v51, %v1726_v41  ;;  %v1862_v6 = vsel %vm1606_vm6, %v1384_v49, %v1734_v48  ;;  %v1741_v28 = vmul.f32 0.01, %v1388_v27  ;;  %v9542_v3 = vpop.f32.mrf.mxu0 }
 0x1a0   : > { %vm1621_vm9 = vcmp.gt.f32.partialorder %v1392_v24, 0.0  ;;  %v1394_v19 = vadd.f32 %v9390_v0, %v8953_v35  ;;  %v9529_v20 = vpack.c.bf16 %v1862_v6, %v1854_v18  ;;  %vm1615_vm10 = vcmp.gt.f32.partialorder %v1501_v31, 0.0  ;;  %4004 = vmatpush2.bf16.msra.mxu0 %v7519_v58 }
 0x1a1   : > { %v1743_v30 = vmul.f32 0.01, %v1501_v31  ;;  %vm1614_vm11 = vcmp.gt.f32.partialorder %v9511_v40, 0.0  ;;  %v1742_v5 = vmul.f32 0.01, %v9511_v40  ;;  %v9535_v49 = vadd.f32 %v9392_v2, %v9057_v62  ;;  %4117 = vmatpush2.bf16.msra.mxu1 %v7522_v10  ;;  %4005 = vmatprep.subr.bf16.mxu0 %v7527_v53 }
 0x1a2   : > { %v1751_v51 = vmul.f32 0.01, %v1505_v39  ;;  %3833 = vmatprep.mubr.bf16.mxu0 %v9529_v20  ;;  %v1856_v0 = vsel %vm1600_vm5, %v9440_v34, %v1728_v55  ;;  %v1864_v29 = vsel %vm1608_vm7, %v1497_v61, %v1736_v16  ;;  %v1877_v41 = vsel %vm1621_vm9, %v1392_v24, %v1749_v4  ;;  %v7528_v34 = vld [vmem:[#allocation2 + $0x3c8] ss:$16 sps:$4 sm:$0xff]   ;;  %4118 = vmatprep.subr.bf16.mxu1 %v7530_v45  ;;  %v7536_v55 = vld [vmem:[#allocation2 + $0x3ac] ss:$16 sps:$4 sm:$0xff]  }
 0x1a3   : > { %vm1623_vm12 = vcmp.gt.f32.partialorder %v1505_v39, 0.0  ;;  %v9547_v48 = vpack.c.bf16 %v1864_v29, %v1856_v0  ;;  %3834 = vmatmul.mubr.bf16.gmra.mxu0 %v9501_v50  ;;  %v9552_v2 = vadd.f32 %v9426_v54, %v8683_v8  ;;  %v1869_v61 = vsel %vm1613_vm8, %v1388_v27, %v1741_v28  ;;  %v7531_v27 = vld [vmem:[#allocation2 + $0x1a8] ss:$16 sps:$4 sm:$0xff]   ;;  %v7539_v4 = vld [vmem:[#allocation2 + $0x18c] ss:$16 sps:$4 sm:$0xff]  }
 0x1a4   : > { %v1750_v63 = vmul.f32 0.01, %v1394_v19  ;;  %v1402_v56 = vadd.f32 %v9486_v32, %v8683_v8  ;;  %v1515_v24 = vadd.f32 %v9488_v7, %v8864_v57  ;;  %v1871_v58 = vsel %vm1615_vm10, %v1501_v31, %v1743_v30  ;;  %4006 = vmatpush2.bf16.msra.mxu0 %v7525_v46  ;;  %v1409_v7 = vpop.f32.mrf.mxu0  ;;  %v1522_v31 = vpop.f32.mrf.mxu1  ;;  %v7534_v53 = vld [vmem:[#allocation2 + $0x3a8] ss:$16 sps:$4 sm:$0xff]   ;;  %v7542_v0 = vld [vmem:[#allocation2 + $0x38c] ss:$16 sps:$4 sm:$0xff]  }
 0x1a5   : > { %vm1616_vm13 = vcmp.gt.f32.partialorder %v9515_v60, 0.0  ;;  %v1744_v54 = vmul.f32 0.01, %v9515_v60  ;;  %vm1622_vm14 = vcmp.gt.f32.partialorder %v1394_v19, 0.0  ;;  %3946 = vmatprep.mubr.bf16.mxu1 %v9547_v48  ;;  %v9563_v16 = vpack.c.bf16 %v1877_v41, %v1869_v61  ;;  %4007 = vmatprep.subr.bf16.mxu0 %v7533_v38 }
 0x1a6   : > { %v1879_v10 = vsel %vm1623_vm12, %v1505_v39, %v1751_v51  ;;  %vm1624_vm15 = vcmp.gt.f32.partialorder %v9535_v49, 0.0  ;;  %3947 = vmatmul.mubr.bf16.gmra.mxu1 %v9505_v21  ;;  %v1511_v32 = vadd.f32 %v9428_v47, %v8864_v57  ;;  %v1752_v18 = vmul.f32 0.01, %v9535_v49 }
 0x1a7   : > { %v1757_v6 = vmul.f32 0.01, %v9552_v2  ;;  %v9574_v46 = vadd.f32 %v9449_v42, %v8953_v35  ;;  %v9578_v39 = vadd.f32 %v9451_v26, %v9057_v62  ;;  %4119 = vmatpush2.bf16.msra.mxu1 %v7528_v34  ;;  %v1765_v28 = vmul.f32 0.01, %v1402_v56  ;;  %v7537_v26 = vld [vmem:[#allocation2 + $0x188] ss:$16 sps:$4 sm:$0xff]  }
 0x1a8   : > { %v1767_v47 = vmul.f32 0.01, %v1515_v24  ;;  %v1870_v45 = vsel %vm1614_vm11, %v9511_v40, %v1742_v5  ;;  %v1878_v30 = vsel %vm1622_vm14, %v1394_v19, %v1750_v63  ;;  %4120 = vmatprep.subr.bf16.mxu1 %v7536_v55  ;;  %vm1637_vm0 = vcmp.gt.f32.partialorder %v1402_v56, 0.0  ;;  %4008 = vmatpush2.bf16.msra.mxu0 %v7531_v27  ;;  %v1411_v40 = vpop.f32.mrf.mxu0  ;;  %v1524_v19 = vpop.f32.mrf.mxu1  ;;  %v7545_v5 = vld [vmem:[#allocation2 + $0x16c] ss:$16 sps:$4 sm:$0xff]  }
 0x1a9   : > { %vm1639_vm1 = vcmp.gt.f32.partialorder %v1515_v24, 0.0  ;;  %v1404_v42 = vadd.f32 %v9519_v17, %v8953_v35  ;;  %v9586_v51 = vpack.c.bf16 %v1878_v30, %v1870_v45  ;;  %v9588_v29 = vpack.c.bf16 %v1879_v10, %v1871_v58  ;;  %4009 = vmatprep.subr.bf16.mxu0 %v7539_v4  ;;  %v7540_v58 = vld [vmem:[#allocation2 + $0x388] ss:$16 sps:$4 sm:$0xff]  }
 0x1aa   : > { %vm1629_vm2 = vcmp.gt.f32.partialorder %v9552_v2, 0.0  ;;  %vm1631_vm3 = vcmp.gt.f32.partialorder %v1511_v32, 0.0  ;;  %v1759_v38 = vmul.f32 0.01, %v1511_v32  ;;  %vm1630_vm4 = vcmp.gt.f32.partialorder %v9574_v46, 0.0  ;;  %v1526_v4 = vpop.f32.mrf.mxu1 }
 0x1ab   : > { %v1517_v17 = vadd.f32 %v9521_v36, %v9057_v62  ;;  %3843 = vmatprep.mubr.bf16.mxu0 %v9586_v51  ;;  %v1872_v41 = vsel %vm1616_vm13, %v9515_v60, %v1744_v54  ;;  %v1880_v34 = vsel %vm1624_vm15, %v9535_v49, %v1752_v18  ;;  %4121 = vmatpush2.bf16.msra.mxu1 %v7534_v53  ;;  %v7543_v27 = vld [vmem:[#allocation2 + $0x168] ss:$16 sps:$4 sm:$0xff]   ;;  %v1758_v54 = vmul.f32 0.01, %v9574_v46  ;;  %v7551_v53 = vld [vmem:[#allocation2 + $0x14c] ss:$16 sps:$4 sm:$0xff]  }
 0x1ac   : > { %v1893_v61 = vsel %vm1637_vm0, %v1402_v56, %v1765_v28  ;;  %v1895_v63 = vsel %vm1639_vm1, %v1515_v24, %v1767_v47  ;;  %v9603_v55 = vpack.c.bf16 %v1880_v34, %v1872_v41  ;;  %3844 = vmatmul.mubr.bf16.gmra.mxu0 %v9563_v16  ;;  %v1410_v36 = vadd.f32 %v1409_v7, %v8953_v35  ;;  %v1413_v7 = vpop.f32.mrf.mxu0  ;;  %v7546_v30 = vld [vmem:[#allocation2 + $0x368] ss:$16 sps:$4 sm:$0xff]   ;;  %v7557_v34 = vld [vmem:[#allocation2 + $0x12c] ss:$16 sps:$4 sm:$0xff]  }
 0x1ad   : > { %v1885_v60 = vsel %vm1629_vm2, %v9552_v2, %v1757_v6  ;;  %vm1632_vm5 = vcmp.gt.f32.partialorder %v9578_v39, 0.0  ;;  %v1766_v49 = vmul.f32 0.01, %v1404_v42  ;;  %4010 = vmatpush2.bf16.msra.mxu0 %v7537_v26  ;;  %4122 = vmatprep.subr.bf16.mxu1 %v7542_v0  ;;  %v1887_v56 = vsel %vm1631_vm3, %v1511_v32, %v1759_v38  ;;  %v7548_v2 = vld [vmem:[#allocation2 + $0x36c] ss:$16 sps:$4 sm:$0xff]  }
 0x1ae   : > { %v1760_v24 = vmul.f32 0.01, %v9578_v39  ;;  %vm1638_vm6 = vcmp.gt.f32.partialorder %v1404_v42, 0.0  ;;  %3956 = vmatprep.mubr.bf16.mxu1 %v9603_v55  ;;  %v1523_v10 = vadd.f32 %v1522_v31, %v9057_v62  ;;  %4011 = vmatprep.subr.bf16.mxu0 %v7545_v5  ;;  %v9616_v18 = vpack.c.bf16 %v1893_v61, %v1885_v60  ;;  %v7549_v5 = vld [vmem:[#allocation2 + $0x148] ss:$16 sps:$4 sm:$0xff]  }
 0x1af   : > { %v9618_v6 = vpack.c.bf16 %v1895_v63, %v1887_v56  ;;  %vm1640_vm7 = vcmp.gt.f32.partialorder %v1517_v17, 0.0  ;;  %3957 = vmatmul.mubr.bf16.gmra.mxu1 %v9588_v29  ;;  %v1412_v32 = vadd.f32 %v1411_v40, %v8683_v8  ;;  %v1768_v28 = vmul.f32 0.01, %v1517_v17 }
 0x1b0   : > { %v1408_v47 = vadd.f32 %v9542_v3, %v8683_v8  ;;  %v9626_v31 = vadd.f32 %v9544_v1, %v8864_v57  ;;  %v1774_v45 = vmul.f32 0.01, %v1410_v36  ;;  %4123 = vmatpush2.bf16.msra.mxu1 %v7540_v58  ;;  %v1414_v26 = vadd.f32 %v1413_v7, %v8953_v35  ;;  %v7554_v8 = vld [vmem:[#allocation2 + $0x34c] ss:$16 sps:$4 sm:$0xff]  }
 0x1b1   : > { %v1527_v0 = vadd.f32 %v1526_v4, %v9057_v62  ;;  %v1886_v38 = vsel %vm1630_vm4, %v9574_v46, %v1758_v54  ;;  %v1894_v40 = vsel %vm1638_vm6, %v1404_v42, %v1766_v49  ;;  %4012 = vmatpush2.bf16.msra.mxu0 %v7543_v27  ;;  %vm1646_vm8 = vcmp.gt.f32.partialorder %v1410_v36, 0.0  ;;  %4124 = vmatprep.subr.bf16.mxu1 %v7548_v2  ;;  %v7560_v49 = vld [vmem:[#allocation2 + $0x32c] ss:$16 sps:$4 sm:$0xff]   ;;  %v7558_v4 = vld [vmem:[#allocation2 + $0x328] ss:$16 sps:$4 sm:$0xff]  }
 0x1b2   : > { %v1776_v3 = vmul.f32 0.01, %v1523_v10  ;;  %v1525_v1 = vadd.f32 %v1524_v19, %v8864_v57  ;;  %v9635_v41 = vpack.c.bf16 %v1894_v40, %v1886_v38  ;;  %vm1648_vm9 = vcmp.gt.f32.partialorder %v1523_v10, 0.0  ;;  %4013 = vmatprep.subr.bf16.mxu0 %v7551_v53  ;;  %v7552_v19 = vld [vmem:[#allocation2 + $0x348] ss:$16 sps:$4 sm:$0xff]  }
 0x1b3   : > { %v1781_v35 = vmul.f32 0.01, %v1412_v32  ;;  %vm1654_vm10 = vcmp.gt.f32.partialorder %v1414_v26, 0.0  ;;  %v1782_v62 = vmul.f32 0.01, %v1414_v26  ;;  %vm1656_vm11 = vcmp.gt.f32.partialorder %v1527_v0, 0.0 }
 0x1b4   : > { %v1784_v46 = vmul.f32 0.01, %v1527_v0  ;;  %3853 = vmatprep.mubr.bf16.mxu0 %v9635_v41  ;;  %v1888_v42 = vsel %vm1632_vm5, %v9578_v39, %v1760_v24  ;;  %v1896_v61 = vsel %vm1640_vm7, %v1517_v17, %v1768_v28  ;;  %4125 = vmatpush2.bf16.msra.mxu1 %v7546_v30  ;;  %vm1653_vm12 = vcmp.gt.f32.partialorder %v1412_v32, 0.0  ;;  %v7555_v17 = vld [vmem:[#allocation2 + $0x128] ss:$16 sps:$4 sm:$0xff]  }
 0x1b5   : > { %v9642_v57 = vpack.c.bf16 %v1896_v61, %v1888_v42  ;;  %3854 = vmatmul.mubr.bf16.gmra.mxu0 %v9616_v18  ;;  %4126 = vmatprep.subr.bf16.mxu1 %v7554_v8  ;;  %v1902_v63 = vsel %vm1646_vm8, %v1410_v36, %v1774_v45  ;;  %v1910_v58 = vsel %vm1654_vm10, %v1414_v26, %v1782_v62  ;;  %v1773_v27 = vmul.f32 0.01, %v1408_v47  ;;  %v7563_v7 = vld [vmem:[#allocation2 + $0x10c] ss:$16 sps:$4 sm:$0xff]   ;;  %v7561_v53 = vld [vmem:[#allocation2 + $0x108] ss:$16 sps:$4 sm:$0xff]  }
 0x1b6   : > { %4014 = vmatpush2.bf16.msra.mxu0 %v7549_v5  ;;  %v9646_v60 = vpack.c.bf16 %v1910_v58, %v1902_v63  ;;  %v1904_v54 = vsel %vm1648_vm9, %v1523_v10, %v1776_v3  ;;  %v1912_v39 = vsel %vm1656_vm11, %v1527_v0, %v1784_v46  ;;  %vm1645_vm13 = vcmp.gt.f32.partialorder %v1408_v47, 0.0  ;;  %v7566_v45 = vld [vmem:[#allocation2 + $0x30c] ss:$16 sps:$4 sm:$0xff]   ;;  %v7564_v0 = vld [vmem:[#allocation2 + $0x308] ss:$16 sps:$4 sm:$0xff]   ;;  %v11067_v58 = vld [vmem:[#allocation11_spill] sm:$0xff] }
 0x1b7   : > { %v1783_v56 = vmul.f32 0.01, %v1525_v1  ;;  %3966 = vmatprep.mubr.bf16.mxu1 %v9642_v57  ;;  %v9651_v24 = vpack.c.bf16 %v1912_v39, %v1904_v54  ;;  %4015 = vmatprep.subr.bf16.mxu0 %v7557_v34  ;;  %v1909_v36 = vsel %vm1653_vm12, %v1412_v32, %v1781_v35  ;;  %vm1655_vm14 = vcmp.gt.f32.partialorder %v1525_v1, 0.0  ;;  %v7569_v30 = vld [vmem:[#allocation2 + $0x4ec] ss:$16 sps:$4 sm:$0xff]  }
 0x1b8   : > { %3967 = vmatmul.mubr.bf16.gmra.mxu1 %v9618_v6  ;;  %3863 = vmatprep.mubr.bf16.mxu0 %v9646_v60  ;;  %v1775_v10 = vmul.f32 0.01, %v9626_v31  ;;  %v1901_v2 = vsel %vm1645_vm13, %v1408_v47, %v1773_v27  ;;  %vm1647_vm15 = vcmp.gt.f32.partialorder %v9626_v31, 0.0  ;;  %v7572_v47 = vld [vmem:[#allocation2 + $0x6ec] ss:$16 sps:$4 sm:$0xff]  }
 0x1b9   : > { %4127 = vmatpush2.bf16.msra.mxu1 %v7552_v19  ;;  %3976 = vmatprep.mubr.bf16.mxu1 %v9651_v24  ;;  %v9659_v28 = vpack.c.bf16 %v1909_v36, %v1901_v2  ;;  %v1911_v32 = vsel %vm1655_vm14, %v1525_v1, %v1783_v56  ;;  %v7567_v40 = vld [vmem:[#allocation2 + $0x4e8] ss:$16 sps:$4 sm:$0xff]   ;;  %v7581_v3 = vld [vmem:[#allocation2 + $0x4ac] ss:$16 sps:$4 sm:$0xff]   ;;  %v11071_v2 = vld [vmem:[#allocation15_spill] sm:$0xff] }
 0x1ba   : > { %4016 = vmatpush2.bf16.msra.mxu0 %v7555_v17  ;;  %4128 = vmatprep.subr.bf16.mxu1 %v7560_v49  ;;  %v1903_v26 = vsel %vm1647_vm15, %v9626_v31, %v1775_v10  ;;  %v7575_v31 = vld [vmem:[#allocation2 + $0x4cc] ss:$16 sps:$4 sm:$0xff]   ;;  %v7570_v5 = vld [vmem:[#allocation2 + $0x6e8] ss:$16 sps:$4 sm:$0xff]  }
 0x1bb   : > { %4017 = vmatprep.subr.bf16.mxu0 %v7563_v7  ;;  %v9663_v38 = vpack.c.bf16 %v1911_v32, %v1903_v26  ;;  %v7573_v8 = vld [vmem:[#allocation2 + $0x4c8] ss:$16 sps:$4 sm:$0xff]   ;;  %v7584_v34 = vld [vmem:[#allocation2 + $0x6ac] ss:$16 sps:$4 sm:$0xff]  }
 0x1bc   : > { %v7579_v1 = vld [vmem:[#allocation2 + $0x4a8] ss:$16 sps:$4 sm:$0xff]   ;;  %v7590_v62 = vld [vmem:[#allocation2 + $0x68c] ss:$16 sps:$4 sm:$0xff]  }
 0x1bd   : > { %3864 = vmatmul.mubr.bf16.gmra.mxu0 %v9659_v28  ;;  %4129 = vmatpush2.bf16.msra.mxu1 %v7558_v4  ;;  %v7585_v35 = vld [vmem:[#allocation2 + $0x488] ss:$16 sps:$4 sm:$0xff]   ;;  %v7596_v42 = vld [vmem:[#allocation2 + $0x66c] ss:$16 sps:$4 sm:$0xff]   ;;  %v11070_v4 = vld [vmem:[#allocation13_spill] sm:$0xff] }
 0x1be   : > { %4019 = vmatprep.mubr.bf16.mxu0 %v8569_v22  ;;  %4018 = vmatpush2.bf16.msra.mxu0 %v7561_v53  ;;  %v7578_v22 = vld [vmem:[#allocation2 + $0x6cc] ss:$16 sps:$4 sm:$0xff]   ;;  %v7591_v46 = vld [vmem:[#allocation2 + $0x468] ss:$16 sps:$4 sm:$0xff]  }
 0x1bf   : > { %4130 = vmatprep.subr.bf16.mxu1 %v7566_v45  ;;  %4213 = vmatprep.subr.bf16.mxu0 %v7569_v30  ;;  %v7594_v61 = vld [vmem:[#allocation2 + $0x668] ss:$16 sps:$4 sm:$0xff]   ;;  %v7602_v19 = vld [vmem:[#allocation2 + $0x64c] ss:$16 sps:$4 sm:$0xff]  }
 0x1c0   : > { %3977 = vmatmul.mubr.bf16.gmra.mxu1 %v9663_v38  ;;  %v11065_v63 = vld [vmem:[#allocation10_spill] sm:$0xff]  ;;  %v11068_v17 = vld [vmem:[#allocation12_spill] sm:$0xff] }
 0x1c1   : > { %4132 = vmatprep.mubr.bf16.mxu1 %v8571_v33  ;;  %4131 = vmatpush2.bf16.msra.mxu1 %v7564_v0  ;;  %v7576_v33 = vld [vmem:[#allocation2 + $0x6c8] ss:$16 sps:$4 sm:$0xff]   ;;  %v7608_v39 = vld [vmem:[#allocation2 + $0x62c] ss:$16 sps:$4 sm:$0xff]  }
 0x1c2   : > { %4326 = vmatprep.subr.bf16.mxu1 %v7572_v47  ;;  %v7600_v27 = vld [vmem:[#allocation2 + $0x648] ss:$16 sps:$4 sm:$0xff]   ;;  %v7614_v7 = vld [vmem:[#allocation2 + $0x60c] ss:$16 sps:$4 sm:$0xff]  }
 0x1c3   : > { %v7603_v54 = vld [vmem:[#allocation2 + $0x428] ss:$16 sps:$4 sm:$0xff]   ;;  %v7617_v10 = vld [vmem:[#allocation2 + $0x5ec] ss:$16 sps:$4 sm:$0xff]  }
 0x1c4   : > { %v7606_v49 = vld [vmem:[#allocation2 + $0x628] ss:$16 sps:$4 sm:$0xff]   ;;  %v7620_v45 = vld [vmem:[#allocation2 + $0x7ec] ss:$16 sps:$4 sm:$0xff]  }
 0x1c5   : > { %4020 = vmatmul.mubr.bf16.vlgmr.msra.gmra.mxu0 %v8573_v23  ;;  %v7587_v23 = vld [vmem:[#allocation2 + $0x48c] ss:$16 sps:$4 sm:$0xff]   ;;  %v7609_v56 = vld [vmem:[#allocation2 + $0x408] ss:$16 sps:$4 sm:$0xff]  }
 0x1c6   : > { %4214 = vmatpush1.bf16.msra.mxu0 %v7567_v40  ;;  %4029 = vmatprep.mubr.bf16.mxu0 %v8587_v13  ;;  %v7582_v13 = vld [vmem:[#allocation2 + $0x6a8] ss:$16 sps:$4 sm:$0xff]   ;;  %v7623_v30 = vld [vmem:[#allocation2 + $0x5cc] ss:$16 sps:$4 sm:$0xff]  }
 0x1c7   : > { %4215 = vmatprep.subr.bf16.mxu0 %v7575_v31  ;;  %v11069_v36 = vld [vmem:[#allocation14_spill] sm:$0xff]  ;;  %v11072_v26 = vld [vmem:[#allocation16_spill] sm:$0xff] }
 0x1c8   : > { %4133 = vmatmul.mubr.bf16.vlgmr.msra.gmra.mxu1 %v8575_v25  ;;  %v7593_v25 = vld [vmem:[#allocation2 + $0x46c] ss:$16 sps:$4 sm:$0xff]   ;;  %v7612_v53 = vld [vmem:[#allocation2 + $0x608] ss:$16 sps:$4 sm:$0xff]  }
 0x1c9   : > { %4142 = vmatprep.mubr.bf16.mxu1 %v8599_v9  ;;  %4327 = vmatpush1.bf16.msra.mxu1 %v7570_v5  ;;  %v7588_v9 = vld [vmem:[#allocation2 + $0x688] ss:$16 sps:$4 sm:$0xff]   ;;  %v7626_v40 = vld [vmem:[#allocation2 + $0x7cc] ss:$16 sps:$4 sm:$0xff]  }
 0x1ca   : > { %4216 = vmatpush1.bf16.msra.mxu0 %v7573_v8  ;;  %4328 = vmatprep.subr.bf16.mxu1 %v7578_v22  ;;  %v7615_v32 = vld [vmem:[#allocation2 + $0x5e8] ss:$16 sps:$4 sm:$0xff]   ;;  %v7629_v5 = vld [vmem:[#allocation2 + $0x5ac] ss:$16 sps:$4 sm:$0xff]   ;;  %v11074_v8 = vld [vmem:[#allocation17_spill] sm:$0xff] }
 0x1cb   : > { %4217 = vmatprep.subr.bf16.mxu0 %v7581_v3  ;;  %v7618_v0 = vld [vmem:[#allocation2 + $0x7e8] ss:$16 sps:$4 sm:$0xff]   ;;  %v11075_v22 = vld [vmem:[#allocation19_spill] sm:$0xff] }
 0x1cc   : > { %v7621_v47 = vld [vmem:[#allocation2 + $0x5c8] ss:$16 sps:$4 sm:$0xff]  }
 0x1cd   : > { %4329 = vmatpush1.bf16.msra.mxu1 %v7576_v33  ;;  %4030 = vmatmul.mubr.bf16.gmra.mxu0 %v8610_v37  ;;  %v7599_v37 = vld [vmem:[#allocation2 + $0x44c] ss:$16 sps:$4 sm:$0xff]   ;;  %v7624_v3 = vld [vmem:[#allocation2 + $0x7c8] ss:$16 sps:$4 sm:$0xff]  }
 0x1ce   : > { %4218 = vmatpush1.bf16.msra.mxu0 %v7579_v1  ;;  %4330 = vmatprep.subr.bf16.mxu1 %v7584_v34  ;;  %v11073_v31 = vld [vmem:[#allocation18_spill] sm:$0xff] }
 0x1cf   : > { %4039 = vmatprep.mubr.bf16.mxu0 %v8657_v11  ;;  %4219 = vmatprep.subr.bf16.mxu0 %v7587_v23  ;;  %v7597_v11 = vld [vmem:[#allocation2 + $0x448] ss:$16 sps:$4 sm:$0xff]   ;;  %v7632_v1 = vld [vmem:[#allocation2 + $0x7ac] ss:$16 sps:$4 sm:$0xff]  }
 0x1d0   : > { %4143 = vmatmul.mubr.bf16.gmra.mxu1 %v8615_v43  ;;  %v7605_v43 = vld [vmem:[#allocation2 + $0x42c] ss:$16 sps:$4 sm:$0xff]   ;;  %v7627_v33 = vld [vmem:[#allocation2 + $0x5a8] ss:$16 sps:$4 sm:$0xff]  }
 0x1d1   : > { %4152 = vmatprep.mubr.bf16.mxu1 %v8666_v12  ;;  %4331 = vmatpush1.bf16.msra.mxu1 %v7582_v13  ;;  %v11066_v12 = vld [vmem:[#allocation9_spill] sm:$0xff]  ;;  %v7635_v34 = vld [vmem:[#allocation2 + $0x58c] ss:$16 sps:$4 sm:$0xff]   ;;  %v7630_v13 = vld [vmem:[#allocation2 + $0x7a8] ss:$16 sps:$4 sm:$0xff]  }
 0x1d2   : > { %4220 = vmatpush1.bf16.msra.mxu0 %v7585_v35  ;;  %4332 = vmatprep.subr.bf16.mxu1 %v7590_v62  ;;  %v11076_v23 = vld [vmem:[#allocation20_spill] sm:$0xff]  ;;  %v2233_v35 = vld [vmem:[%s10976_s4] sm:$0xf] }
 0x1d3   : > { %4221 = vmatprep.subr.bf16.mxu0 %v7593_v25  ;;  %v7633_v62 = vld [vmem:[#allocation2 + $0x588] ss:$16 sps:$4 sm:$0xff]   ;;  %v7638_v25 = vld [vmem:[#allocation2 + $0x78c] ss:$16 sps:$4 sm:$0xff]  }
 0x1d5   : > { %4333 = vmatpush1.bf16.msra.mxu1 %v7588_v9  ;;  %4040 = vmatmul.mubr.bf16.gmra.mxu0 %v8668_v14  ;;  %v7611_v14 = vld [vmem:[#allocation2 + $0x40c] ss:$16 sps:$4 sm:$0xff]  }
 0x1d6   : > { %4222 = vmatpush1.bf16.msra.mxu0 %v7591_v46  ;;  %4334 = vmatprep.subr.bf16.mxu1 %v7596_v42  ;;  %v11077_v9 = vld [vmem:[#allocation22_spill] sm:$0xff]  ;;  %v11078_v42 = vld [vmem:[#allocation21_spill] sm:$0xff] }
 0x1d7   : > { %4049 = vmatprep.mubr.bf16.mxu0 %v11065_v63  ;;  %4223 = vmatprep.subr.bf16.mxu0 %v7599_v37  ;;  %v7641_v46 = vld [vmem:[#allocation2 + $0x56c] ss:$16 sps:$4 sm:$0xff]   ;;  %v7639_v63 = vld [vmem:[#allocation2 + $0x568] ss:$16 sps:$4 sm:$0xff]  }
 0x1d8   : > { %4153 = vmatmul.mubr.bf16.gmra.mxu1 %v11066_v12  ;;  %v11079_v37 = vld [vmem:[#allocation6_spill] sm:$0xff]  ;;  %v11081_v12 = vld [vmem:[#allocation8_spill] sm:$0xff] }
 0x1d9   : > { %4162 = vmatprep.mubr.bf16.mxu1 %v11067_v58  ;;  %4335 = vmatpush1.bf16.msra.mxu1 %v7594_v61  ;;  %v9695_v61 = vrot.slane %v2233_v35, %v11079_v37  ;;  %v9699_v58 = vrot.slane %v2233_v35, %v11081_v12 }
 0x1da   : > { %4224 = vmatpush1.bf16.msra.mxu0 %v7597_v11  ;;  %4336 = vmatprep.subr.bf16.mxu1 %v7602_v19  ;;  %v11080_v11 = vld [vmem:[#allocation23_spill] sm:$0xff]  ;;  %v7636_v19 = vld [vmem:[#allocation2 + $0x788] ss:$16 sps:$4 sm:$0xff]  }
 0x1db   : > { %4225 = vmatprep.subr.bf16.mxu0 %v7605_v43  ;;  %v7644_v43 = vld [vmem:[#allocation2 + $0x76c] ss:$16 sps:$4 sm:$0xff]  }
 0x1dd   : > { %4337 = vmatpush1.bf16.msra.mxu1 %v7600_v27  ;;  %4050 = vmatmul.mubr.bf16.gmra.mxu0 %v11068_v17  ;;  %v7647_v27 = vld [vmem:[#allocation2 + $0x54c] ss:$16 sps:$4 sm:$0xff]  }
 0x1de   : > { %4226 = vmatpush1.bf16.msra.mxu0 %v7603_v54  ;;  %4338 = vmatprep.subr.bf16.mxu1 %v7608_v39  ;;  %v11082_v17 = vld [vmem:[#allocation24_spill] sm:$0xff] }
 0x1df   : > { %4059 = vmatprep.mubr.bf16.mxu0 %v11069_v36  ;;  %4227 = vmatprep.subr.bf16.mxu0 %v7611_v14  ;;  %v7645_v36 = vld [vmem:[#allocation2 + $0x548] ss:$16 sps:$4 sm:$0xff]  }
 0x1e0   : > { %4163 = vmatmul.mubr.bf16.gmra.mxu1 %v11070_v4 }
 0x1e1   : > { %4172 = vmatprep.mubr.bf16.mxu1 %v11071_v2  ;;  %4339 = vmatpush1.bf16.msra.mxu1 %v7606_v49  ;;  %v7642_v49 = vld [vmem:[#allocation2 + $0x768] ss:$16 sps:$4 sm:$0xff]  }
 0x1e2   : > { %4228 = vmatpush1.bf16.msra.mxu0 %v7609_v56  ;;  %4340 = vmatprep.subr.bf16.mxu1 %v7614_v7 }
 0x1e3   : > { %4229 = vmatprep.subr.bf16.mxu0 %v7617_v10  ;;  %v7650_v10 = vld [vmem:[#allocation2 + $0x74c] ss:$16 sps:$4 sm:$0xff]  }
 0x1e5   : > { %4341 = vmatpush1.bf16.msra.mxu1 %v7612_v53  ;;  %4060 = vmatmul.mubr.bf16.gmra.mxu0 %v11072_v26  ;;  %v11083_v53 = vld [vmem:[#allocation26_spill] sm:$0xff]  ;;  %v11084_v26 = vld [vmem:[#allocation25_spill] sm:$0xff] }
 0x1e6   : > { %4230 = vmatpush2.bf16.msra.mxu0 %v7615_v32  ;;  %4342 = vmatprep.subr.bf16.mxu1 %v7620_v45  ;;  %v7653_v32 = vld [vmem:[#allocation2 + $0x52c] ss:$16 sps:$4 sm:$0xff]  }
 0x1e7   : > { %4069 = vmatprep.mubr.bf16.mxu0 %v11073_v31  ;;  %4231 = vmatprep.subr.bf16.mxu0 %v7623_v30 }
 0x1e8   : > { %4173 = vmatmul.mubr.bf16.gmra.mxu1 %v11074_v8  ;;  %v7656_v8 = vld [vmem:[#allocation2 + $0x72c] ss:$16 sps:$4 sm:$0xff]  }
 0x1e9   : > { %4182 = vmatprep.mubr.bf16.mxu1 %v11075_v22  ;;  %4343 = vmatpush2.bf16.msra.mxu1 %v7618_v0 }
 0x1ea   : > { %4232 = vmatpush2.bf16.msra.mxu0 %v7621_v47  ;;  %4344 = vmatprep.subr.bf16.mxu1 %v7626_v40  ;;  %v11085_v47 = vld [vmem:[#allocation27_spill] sm:$0xff]  ;;  %v7648_v40 = vld [vmem:[#allocation2 + $0x748] ss:$16 sps:$4 sm:$0xff]  }
 0x1eb   : > { %4233 = vmatprep.subr.bf16.mxu0 %v7629_v5  ;;  %v7651_v5 = vld [vmem:[#allocation2 + $0x528] ss:$16 sps:$4 sm:$0xff]  }
 0x1ed   : > { %4345 = vmatpush2.bf16.msra.mxu1 %v7624_v3  ;;  %4070 = vmatmul.mubr.bf16.gmra.mxu0 %v11076_v23  ;;  %v7659_v3 = vld [vmem:[#allocation2 + $0x50c] ss:$16 sps:$4 sm:$0xff]   ;;  %v7657_v23 = vld [vmem:[#allocation2 + $0x508] ss:$16 sps:$4 sm:$0xff]  }
 0x1ee   : > { %4234 = vmatpush2.bf16.msra.mxu0 %v7627_v33  ;;  %4346 = vmatprep.subr.bf16.mxu1 %v7632_v1  ;;  %v11086_v33 = vld [vmem:[#allocation28_spill] sm:$0xff] }
 0x1ef   : > { %4079 = vmatprep.mubr.bf16.mxu0 %v11077_v9  ;;  %4235 = vmatprep.subr.bf16.mxu0 %v7635_v34  ;;  %v7654_v1 = vld [vmem:[#allocation2 + $0x728] ss:$16 sps:$4 sm:$0xff]  }
 0x1f0   : > { %4183 = vmatmul.mubr.bf16.gmra.mxu1 %v11078_v42  ;;  %v11088_v42 = vld [vmem:[#allocation29_spill] sm:$0xff] }
 0x1f1   : > { %4192 = vmatprep.mubr.bf16.mxu1 %v11080_v11  ;;  %4347 = vmatpush2.bf16.msra.mxu1 %v7630_v13  ;;  %v7662_v13 = vld [vmem:[#allocation2 + $0x70c] ss:$16 sps:$4 sm:$0xff]  }
 0x1f2   : > { %4236 = vmatpush2.bf16.msra.mxu0 %v7633_v62  ;;  %4348 = vmatprep.subr.bf16.mxu1 %v7638_v25  ;;  %v3569_v54 = vpop.f32.mrf.mxu0  ;;  %v3682_v39 = vpop.f32.mrf.mxu1  ;;  %v11087_v25 = vld [vmem:[#allocation31_spill] sm:$0xff] }
 0x1f3   : > { %4237 = vmatprep.subr.bf16.mxu0 %v7641_v46  ;;  %v3570_v14 = vadd.f32 %v3569_v54, %v9695_v61  ;;  %v7665_v46 = vld [vmem:[%s10977_s5 + $0xac] ss:$12 sps:$4 sm:$0xff]  }
 0x1f4   : > { %v3571_v56 = vpop.f32.mrf.mxu0  ;;  %v3684_v7 = vpop.f32.mrf.mxu1 }
 0x1f5   : > { %4349 = vmatpush2.bf16.msra.mxu1 %v7636_v19  ;;  %4080 = vmatmul.mubr.bf16.gmra.mxu0 %v11082_v17  ;;  %v9703_v4 = vadd.f32 %v3682_v39, %v3570_v14  ;;  %v3572_v2 = vadd.f32 %v3571_v56, %v9699_v58  ;;  %v7663_v17 = vld [vmem:[%s10977_s5 + $0xa8] ss:$12 sps:$4 sm:$0xff]  }
 0x1f6   : > { %4238 = vmatpush2.bf16.msra.mxu0 %v7639_v63  ;;  %4350 = vmatprep.subr.bf16.mxu1 %v7644_v43  ;;  %v9707_v45 = vpop.f32.mrf.mxu0  ;;  %v9709_v30 = vpop.f32.mrf.mxu1  ;;  %v11089_v43 = vld [vmem:[#allocation33_spill] sm:$0xff] }
 0x1f7   : > { %4089 = vmatprep.mubr.bf16.mxu0 %v11083_v53  ;;  %4239 = vmatprep.subr.bf16.mxu0 %v7647_v27  ;;  %v9712_v0 = vadd.f32 %v3684_v7, %v3572_v2  ;;  %v7660_v27 = vld [vmem:[#allocation2 + $0x708] ss:$16 sps:$4 sm:$0xff]   ;;  %v7668_v56 = vld [vmem:[%s10977_s5 + $0x94] ss:$12 sps:$4 sm:$0xff]   ;;  %v7666_v53 = vld [vmem:[%s10977_s5 + $0x90] ss:$12 sps:$4 sm:$0xff]  }
 0x1f8   : > { %4193 = vmatmul.mubr.bf16.gmra.mxu1 %v11084_v26  ;;  %v9715_v31 = vpop.f32.mrf.mxu0  ;;  %v9717_v22 = vpop.f32.mrf.mxu1 }
 0x1f9   : > { %4202 = vmatprep.mubr.bf16.mxu1 %v11085_v47  ;;  %4351 = vmatpush2.bf16.msra.mxu1 %v7642_v49  ;;  %v7671_v47 = vld [vmem:[%s10977_s5 + $0x7c] ss:$12 sps:$4 sm:$0xff]  }
 0x1fa   : > { %4240 = vmatpush2.bf16.msra.mxu0 %v7645_v36  ;;  %4352 = vmatprep.subr.bf16.mxu1 %v7650_v10  ;;  %v11090_v36 = vld [vmem:[#allocation30_spill] sm:$0xff] }
 0x1fb   : > { %4241 = vmatprep.subr.bf16.mxu0 %v7653_v32  ;;  %v11091_v10 = vld [vmem:[#allocation34_spill] sm:$0xff] }
 0x1fc   : > { %v3579_v34 = vpop.f32.mrf.mxu0 }
 0x1fd   : > { %4353 = vmatpush2.bf16.msra.mxu1 %v7648_v40  ;;  %4090 = vmatmul.mubr.bf16.gmra.mxu0 %v11086_v33  ;;  %v3580_v35 = vadd.f32 %v3579_v34, %v9695_v61  ;;  %v3692_v62 = vpop.f32.mrf.mxu1  ;;  %v11092_v40 = vld [vmem:[#allocation32_spill] sm:$0xff] }
 0x1fe   : > { %4242 = vmatpush2.bf16.msra.mxu0 %v7651_v5  ;;  %4354 = vmatprep.subr.bf16.mxu1 %v7656_v8  ;;  %v3581_v9 = vpop.f32.mrf.mxu0  ;;  %v11093_v8 = vld [vmem:[#allocation35_spill] sm:$0xff] }
 0x1ff   : > { %4245 = vmatprep.mubr.bf16.mxu0 %v11087_v25  ;;  %4243 = vmatprep.subr.bf16.mxu0 %v7659_v3  ;;  %v9726_v11 = vadd.f32 %v3692_v62, %v3580_v35  ;;  %v3582_v19 = vadd.f32 %v3581_v9, %v9699_v58  ;;  %v3694_v63 = vpop.f32.mrf.mxu1  ;;  %v7674_v25 = vld [vmem:[%s10977_s5 + $0x64] ss:$12 sps:$4 sm:$0xff]  }
 0x200   : > { %4203 = vmatmul.mubr.bf16.gmra.mxu1 %v11088_v42  ;;  %v9730_v54 = vpop.f32.mrf.mxu0 }
 0x201   : > { %4355 = vmatpush2.bf16.msra.mxu1 %v7654_v1  ;;  %4358 = vmatprep.mubr.bf16.mxu1 %v11089_v43  ;;  %v9732_v39 = vadd.f32 %v3694_v63, %v3582_v19  ;;  %v9734_v14 = vpop.f32.mrf.mxu1  ;;  %v11095_v43 = vld [vmem:[#allocation38_spill] sm:$0xff] }
 0x202   : > { %4244 = vmatpush2.bf16.msra.mxu0 %v7657_v23  ;;  %4356 = vmatprep.subr.bf16.mxu1 %v7662_v13  ;;  %v9739_v49 = vpop.f32.mrf.mxu0  ;;  %v7669_v23 = vld [vmem:[%s10977_s5 + $0x78] ss:$12 sps:$4 sm:$0xff]  }
 0x203   : > { %5320 = vmatprep.subr.bf16.mxu0 %v7665_v46  ;;  %v9744_v7 = vpop.f32.mrf.mxu1  ;;  %v11094_v46 = vld [vmem:[#allocation36_spill] sm:$0xff] }
 0x204   : > { %v3589_v2 = vpop.f32.mrf.mxu0 }
 0x205   : > { %4357 = vmatpush2.bf16.msra.mxu1 %v7660_v27  ;;  %4246 = vmatmul.mubr.bf16.vlgmr.msra.gmra.mxu0 %v11090_v36  ;;  %v3590_v32 = vadd.f32 %v3589_v2, %v9695_v61  ;;  %v3702_v26 = vpop.f32.mrf.mxu1  ;;  %v7672_v27 = vld [vmem:[%s10977_s5 + $0x60] ss:$12 sps:$4 sm:$0xff]   ;;  %v11097_v2 = vld [vmem:[#allocation39_spill] sm:$0xff] }
 0x206   : > { %4255 = vmatprep.mubr.bf16.mxu0 %v11091_v10  ;;  %5321 = vmatpush1.bf16.msra.mxu0 %v7663_v17  ;;  %v3591_v5 = vpop.f32.mrf.mxu0  ;;  %v11096_v36 = vld [vmem:[#allocation37_spill] sm:$0xff] }
 0x207   : > { %5322 = vmatprep.subr.bf16.mxu0 %v7668_v56  ;;  %v9757_v3 = vadd.f32 %v3702_v26, %v3590_v32  ;;  %v3592_v33 = vadd.f32 %v3591_v5, %v9699_v58  ;;  %v3704_v1 = vpop.f32.mrf.mxu1  ;;  %v7677_v56 = vld [vmem:[%s10977_s5 + $0x4c] ss:$12 sps:$4 sm:$0xff]  }
 0x208   : > { %4359 = vmatmul.mubr.bf16.vlgmr.msra.gmra.mxu1 %v11092_v40  ;;  %v3593_v34 = vpop.f32.mrf.mxu0 }
 0x209   : > { %4368 = vmatprep.mubr.bf16.mxu1 %v11093_v8  ;;  %v9763_v13 = vadd.f32 %v3704_v1, %v3592_v33  ;;  %v3594_v35 = vadd.f32 %v3593_v34, %v9695_v61  ;;  %v3706_v62 = vpop.f32.mrf.mxu1  ;;  %v7680_v33 = vld [vmem:[%s10977_s5 + $0x34] ss:$12 sps:$4 sm:$0xff]   ;;  %v11098_v34 = vld [vmem:[#allocation40_spill] sm:$0xff] }
 0x20a   : > { %5323 = vmatpush1.bf16.msra.mxu0 %v7666_v53  ;;  %v3595_v9 = vpop.f32.mrf.mxu0 }
 0x20b   : > { %5324 = vmatprep.subr.bf16.mxu0 %v7671_v47  ;;  %v9770_v42 = vadd.f32 %v3706_v62, %v3594_v35  ;;  %v3596_v19 = vadd.f32 %v3595_v9, %v9699_v58  ;;  %v3708_v63 = vpop.f32.mrf.mxu1  ;;  %v7675_v47 = vld [vmem:[%s10977_s5 + $0x48] ss:$12 sps:$4 sm:$0xff]   ;;  %v7678_v9 = vld [vmem:[%s10977_s5 + $0x30] ss:$12 sps:$4 sm:$0xff]  }
 0x20d   : > { %4256 = vmatmul.mubr.bf16.gmra.mxu0 %v11094_v46  ;;  %v9777_v17 = vadd.f32 %v3708_v63, %v3596_v19 }
 0x20e   : > { %4265 = vmatprep.mubr.bf16.mxu0 %v11095_v43  ;;  %5325 = vmatpush1.bf16.msra.mxu0 %v7669_v23  ;;  %v3599_v10 = vpop.f32.mrf.mxu0  ;;  %v7683_v43 = vld [vmem:[%s10977_s5 + $0x1c] ss:$12 sps:$4 sm:$0xff]  }
 0x20f   : > { %5326 = vmatprep.subr.bf16.mxu0 %v7674_v25  ;;  %v3600_v53 = vadd.f32 %v3599_v10, %v9695_v61  ;;  %v3712_v32 = vpop.f32.mrf.mxu1  ;;  %v7729_v10 = vld [vmem:[%s10977_s5 + $0x22c] ss:$12 sps:$4 sm:$0xff]  }
 0x210   : > { %4369 = vmatmul.mubr.bf16.gmra.mxu1 %v11096_v36  ;;  %v3601_v26 = vpop.f32.mrf.mxu0  ;;  %v7727_v36 = vld [vmem:[%s10977_s5 + $0x228] ss:$12 sps:$4 sm:$0xff]   ;;  %5433 = vmatprep.subr.bf16.mxu1 %v7729_v10 }
 0x211   : > { %4378 = vmatprep.mubr.bf16.mxu1 %v11097_v2  ;;  %v9788_v40 = vadd.f32 %v3712_v32, %v3600_v53  ;;  %v3602_v5 = vadd.f32 %v3601_v26, %v9699_v58  ;;  %v3714_v8 = vpop.f32.mrf.mxu1  ;;  %v7681_v32 = vld [vmem:[%s10977_s5 + $0x18] ss:$12 sps:$4 sm:$0xff]   ;;  %5434 = vmatpush1.bf16.msra.mxu1 %v7727_v36 }
 0x212   : > { %5327 = vmatpush1.bf16.msra.mxu0 %v7672_v27  ;;  %v3603_v1 = vpop.f32.mrf.mxu0  ;;  %v11099_v27 = vld [vmem:[#allocation41_spill] sm:$0xff] }
 0x213   : > { %5328 = vmatprep.subr.bf16.mxu0 %v7677_v56  ;;  %v9795_v23 = vadd.f32 %v3714_v8, %v3602_v5  ;;  %v3604_v35 = vadd.f32 %v3603_v1, %v9695_v61  ;;  %v3716_v62 = vpop.f32.mrf.mxu1  ;;  %v7686_v26 = vld [vmem:[%s10977_s5 + $0x4] ss:$12 sps:$4 sm:$0xff]  }
 0x214   : > { %v3605_v25 = vpop.f32.mrf.mxu0  ;;  %v7730_v1 = vld [vmem:[%s10977_s5 + $0x210] ss:$12 sps:$4 sm:$0xff]  }
 0x215   : > { %4266 = vmatmul.mubr.bf16.gmra.mxu0 %v11098_v34  ;;  %v9802_v46 = vadd.f32 %v3716_v62, %v3604_v35  ;;  %v3606_v19 = vadd.f32 %v3605_v25, %v9699_v58  ;;  %v3718_v63 = vpop.f32.mrf.mxu1  ;;  %v7732_v34 = vld [vmem:[%s10977_s5 + $0x214] ss:$12 sps:$4 sm:$0xff]  }
 0x216   : > { %4275 = vmatprep.mubr.bf16.mxu0 %v9455_v52  ;;  %5329 = vmatpush1.bf16.msra.mxu0 %v7675_v47 }
 0x217   : > { %5330 = vmatprep.subr.bf16.mxu0 %v7680_v33  ;;  %v9810_v52 = vadd.f32 %v3718_v63, %v3606_v19  ;;  %v3609_v56 = vpop.f32.mrf.mxu0  ;;  %v7689_v19 = vld [vmem:[%s10977_s5 + $0x16c] ss:$12 sps:$4 sm:$0xff]   ;;  %5435 = vmatprep.subr.bf16.mxu1 %v7732_v34 }
 0x218   : > { %4379 = vmatmul.mubr.bf16.gmra.mxu1 %v11099_v27  ;;  %v3610_v2 = vadd.f32 %v3609_v56, %v9695_v61  ;;  %v3722_v53 = vpop.f32.mrf.mxu1  ;;  %v7735_v27 = vld [vmem:[%s10977_s5 + $0x1fc] ss:$12 sps:$4 sm:$0xff]  }
 0x219   : > { %4388 = vmatprep.mubr.bf16.mxu1 %v9469_v59  ;;  %v3611_v59 = vpop.f32.mrf.mxu0  ;;  %5436 = vmatpush1.bf16.msra.mxu1 %v7730_v1  ;;  %v7695_v1 = vld [vmem:[%s10977_s5 + $0x13c] ss:$12 sps:$4 sm:$0xff]  }
 0x21a   : > { %5331 = vmatpush1.bf16.msra.mxu0 %v7678_v9  ;;  %v9825_v47 = vadd.f32 %v3722_v53, %v3610_v2  ;;  %v3612_v5 = vadd.f32 %v3611_v59, %v9699_v58  ;;  %v3724_v8 = vpop.f32.mrf.mxu1  ;;  %5437 = vmatprep.subr.bf16.mxu1 %v7735_v27  ;;  %v7738_v59 = vld [vmem:[%s10977_s5 + $0x1e4] ss:$12 sps:$4 sm:$0xff]  }
 0x21b   : > { %5332 = vmatprep.subr.bf16.mxu0 %v7683_v43  ;;  %v3613_v33 = vpop.f32.mrf.mxu0  ;;  %v7733_v43 = vld [vmem:[%s10977_s5 + $0x1f8] ss:$12 sps:$4 sm:$0xff]  }
 0x21c   : > { %v9836_v35 = vadd.f32 %v3724_v8, %v3612_v5  ;;  %v3614_v62 = vadd.f32 %v3613_v33, %v9695_v61  ;;  %v3726_v25 = vpop.f32.mrf.mxu1 }
 0x21d   : > { %4276 = vmatmul.mubr.bf16.gmra.mxu0 %v9471_v15  ;;  %v7684_v15 = vld [vmem:[%s10977_s5] ss:$12 sps:$4 sm:$0xff]   ;;  %v9842_v9 = vpop.f32.mrf.mxu0  ;;  %5438 = vmatpush1.bf16.msra.mxu1 %v7733_v43  ;;  %v7698_v43 = vld [vmem:[%s10977_s5 + $0x124] ss:$12 sps:$4 sm:$0xff]  }
 0x21e   : > { %4285 = vmatprep.mubr.bf16.mxu0 %v9529_v20  ;;  %5333 = vmatpush1.bf16.msra.mxu0 %v7681_v32  ;;  %v9848_v20 = vadd.f32 %v3726_v25, %v3614_v62  ;;  %v9850_v63 = vpop.f32.mrf.mxu1  ;;  %v7736_v32 = vld [vmem:[%s10977_s5 + $0x1e0] ss:$12 sps:$4 sm:$0xff]  }
 0x21f   : > { %5334 = vmatprep.subr.bf16.mxu0 %v7686_v26  ;;  %5439 = vmatprep.subr.bf16.mxu1 %v7738_v59  ;;  %v7701_v59 = vld [vmem:[%s10977_s5 + $0x10c] ss:$12 sps:$4 sm:$0xff]  }
 0x220   : > { %4389 = vmatmul.mubr.bf16.gmra.mxu1 %v9484_v44  ;;  %v7687_v44 = vld [vmem:[%s10977_s5 + $0x168] ss:$12 sps:$4 sm:$0xff]  }
 0x221   : > { %4398 = vmatprep.mubr.bf16.mxu1 %v9547_v48  ;;  %v7692_v48 = vld [vmem:[%s10977_s5 + $0x154] ss:$12 sps:$4 sm:$0xff]   ;;  %5440 = vmatpush1.bf16.msra.mxu1 %v7736_v32 }
 0x222   : > { %5335 = vmatpush1.bf16.msra.mxu0 %v7684_v15  ;;  %v3619_v56 = vpop.f32.mrf.mxu0  ;;  %v3732_v36 = vpop.f32.mrf.mxu1  ;;  %v7739_v15 = vld [vmem:[%s10977_s5 + $0x1c8] ss:$12 sps:$4 sm:$0xff]  }
 0x223   : > { %5336 = vmatprep.subr.bf16.mxu0 %v7689_v19  ;;  %v3620_v10 = vadd.f32 %v3619_v56, %v9695_v61  ;;  %v7741_v19 = vld [vmem:[%s10977_s5 + $0x1cc] ss:$12 sps:$4 sm:$0xff]  }
 0x224   : > { %v3621_v2 = vpop.f32.mrf.mxu0  ;;  %v3734_v53 = vpop.f32.mrf.mxu1  ;;  %5441 = vmatprep.subr.bf16.mxu1 %v7741_v19  ;;  %v7704_v19 = vld [vmem:[%s10977_s5 + $0xf4] ss:$12 sps:$4 sm:$0xff]  }
 0x225   : > { %4286 = vmatmul.mubr.bf16.gmra.mxu0 %v9501_v50  ;;  %v9874_v26 = vadd.f32 %v3732_v36, %v3620_v10  ;;  %v3622_v5 = vadd.f32 %v3621_v2, %v9699_v58  ;;  %v7690_v50 = vld [vmem:[%s10977_s5 + $0x150] ss:$12 sps:$4 sm:$0xff]   ;;  %5442 = vmatpush1.bf16.msra.mxu1 %v7739_v15 }
 0x226   : > { %4295 = vmatprep.mubr.bf16.mxu0 %v9586_v51  ;;  %5337 = vmatpush2.bf16.msra.mxu0 %v7687_v44  ;;  %v3623_v8 = vpop.f32.mrf.mxu0  ;;  %v3736_v33 = vpop.f32.mrf.mxu1  ;;  %v7742_v36 = vld [vmem:[%s10977_s5 + $0x1b0] ss:$12 sps:$4 sm:$0xff]  }
 0x227   : > { %5338 = vmatprep.subr.bf16.mxu0 %v7692_v48  ;;  %v9884_v51 = vadd.f32 %v3734_v53, %v3622_v5  ;;  %v3624_v34 = vadd.f32 %v3623_v8, %v9695_v61  ;;  %v7744_v48 = vld [vmem:[%s10977_s5 + $0x1b4] ss:$12 sps:$4 sm:$0xff]  }
 0x228   : > { %4399 = vmatmul.mubr.bf16.gmra.mxu1 %v9505_v21  ;;  %v9888_v62 = vpop.f32.mrf.mxu0  ;;  %v9890_v25 = vpop.f32.mrf.mxu1  ;;  %5443 = vmatprep.subr.bf16.mxu1 %v7744_v48 }
 0x229   : > { %4408 = vmatprep.mubr.bf16.mxu1 %v9603_v55  ;;  %v9898_v21 = vadd.f32 %v3736_v33, %v3624_v34  ;;  %v7693_v55 = vld [vmem:[%s10977_s5 + $0x138] ss:$12 sps:$4 sm:$0xff]   ;;  %5444 = vmatpush1.bf16.msra.mxu1 %v7742_v36  ;;  %v7707_v36 = vld [vmem:[%s10977_s5 + $0xdc] ss:$12 sps:$4 sm:$0xff]  }
 0x22a   : > { %5339 = vmatpush2.bf16.msra.mxu0 %v7690_v50  ;;  %v7745_v33 = vld [vmem:[%s10977_s5 + $0x198] ss:$12 sps:$4 sm:$0xff]  }
 0x22b   : > { %5340 = vmatprep.subr.bf16.mxu0 %v7695_v1  ;;  %v3629_v27 = vpop.f32.mrf.mxu0  ;;  %v3742_v44 = vpop.f32.mrf.mxu1  ;;  %v7747_v1 = vld [vmem:[%s10977_s5 + $0x19c] ss:$12 sps:$4 sm:$0xff]  }
 0x22c   : > { %v3630_v56 = vadd.f32 %v3629_v27, %v9695_v61  ;;  %5445 = vmatprep.subr.bf16.mxu1 %v7747_v1  ;;  %v3574_v1 = vadd.f32 %v9707_v45, %v9695_v61  ;;  %v7711_v45 = vld [vmem:[%s10977_s5 + $0x170] ss:$12 sps:$4 sm:$0xff]  }
 0x22d   : > { %4296 = vmatmul.mubr.bf16.gmra.mxu0 %v9563_v16  ;;  %v3631_v10 = vpop.f32.mrf.mxu0  ;;  %v3744_v2 = vpop.f32.mrf.mxu1  ;;  %v7696_v16 = vld [vmem:[%s10977_s5 + $0x120] ss:$12 sps:$4 sm:$0xff]   ;;  %5446 = vmatpush1.bf16.msra.mxu1 %v7745_v33 }
 0x22e   : > { %4305 = vmatprep.mubr.bf16.mxu0 %v9635_v41  ;;  %5341 = vmatpush2.bf16.msra.mxu0 %v7693_v55  ;;  %v9918_v53 = vadd.f32 %v3742_v44, %v3630_v56  ;;  %v3632_v32 = vadd.f32 %v3631_v10, %v9699_v58  ;;  %v7748_v55 = vld [vmem:[%s10977_s5 + $0x180] ss:$12 sps:$4 sm:$0xff]   ;;  %v7702_v44 = vld [vmem:[%s10977_s5 + $0xf0] ss:$12 sps:$4 sm:$0xff]  }
 0x22f   : > { %5342 = vmatprep.subr.bf16.mxu0 %v7698_v43  ;;  %v3633_v41 = vpop.f32.mrf.mxu0  ;;  %v3746_v5 = vpop.f32.mrf.mxu1  ;;  %v7750_v43 = vld [vmem:[%s10977_s5 + $0x184] ss:$12 sps:$4 sm:$0xff]  }
 0x230   : > { %4409 = vmatmul.mubr.bf16.gmra.mxu1 %v9588_v29  ;;  %v9926_v50 = vadd.f32 %v3744_v2, %v3632_v32  ;;  %v3634_v8 = vadd.f32 %v3633_v41, %v9695_v61  ;;  %v7699_v29 = vld [vmem:[%s10977_s5 + $0x108] ss:$12 sps:$4 sm:$0xff]   ;;  %5447 = vmatprep.subr.bf16.mxu1 %v7750_v43  ;;  %v7753_v32 = vld [vmem:[%s10977_s5 + $0x2ec] ss:$12 sps:$4 sm:$0xff]   ;;  %v7754_v43 = vld [vmem:[%s10977_s5 + $0x2d0] ss:$12 sps:$4 sm:$0xff]  }
 0x231   : > { %4418 = vmatprep.mubr.bf16.mxu1 %v9642_v57  ;;  %v9935_v34 = vpop.f32.mrf.mxu0  ;;  %v9942_v15 = vpop.f32.mrf.mxu1  ;;  %5448 = vmatpush1.bf16.msra.mxu1 %v7748_v55 }
 0x232   : > { %5343 = vmatpush2.bf16.msra.mxu0 %v7696_v16  ;;  %v9940_v57 = vadd.f32 %v3746_v5, %v3634_v8  ;;  %v7751_v16 = vld [vmem:[%s10977_s5 + $0x2e8] ss:$12 sps:$4 sm:$0xff]   ;;  %v7710_v8 = vld [vmem:[%s10977_s5 + $0xc4] ss:$12 sps:$4 sm:$0xff]   ;;  %5449 = vmatprep.subr.bf16.mxu1 %v7753_v32 }
 0x233   : > { %5344 = vmatprep.subr.bf16.mxu0 %v7701_v59  ;;  %v7759_v32 = vld [vmem:[%s10977_s5 + $0x2bc] ss:$12 sps:$4 sm:$0xff]  }
 0x235   : > { %4306 = vmatmul.mubr.bf16.gmra.mxu0 %v9616_v18  ;;  %5450 = vmatpush2.bf16.msra.mxu1 %v7751_v16  ;;  %v7757_v16 = vld [vmem:[%s10977_s5 + $0x2b8] ss:$12 sps:$4 sm:$0xff]  }
 0x236   : > { %4315 = vmatprep.mubr.bf16.mxu0 %v9646_v60  ;;  %v3639_v27 = vpop.f32.mrf.mxu0  ;;  %5345 = vmatpush2.bf16.msra.mxu0 %v7699_v29 }
 0x237   : > { %v3640_v56 = vadd.f32 %v3639_v27, %v9695_v61  ;;  %v3752_v18 = vpop.f32.mrf.mxu1  ;;  %5346 = vmatprep.subr.bf16.mxu0 %v7704_v19  ;;  %v7756_v27 = vld [vmem:[%s10977_s5 + $0x2d4] ss:$12 sps:$4 sm:$0xff]  }
 0x238   : > { %4419 = vmatmul.mubr.bf16.gmra.mxu1 %v9618_v6  ;;  %v3641_v48 = vpop.f32.mrf.mxu0  ;;  %v7705_v6 = vld [vmem:[%s10977_s5 + $0xd8] ss:$12 sps:$4 sm:$0xff]   ;;  %5451 = vmatprep.subr.bf16.mxu1 %v7756_v27 }
 0x239   : > { %4428 = vmatprep.mubr.bf16.mxu1 %v9651_v24  ;;  %v9964_v60 = vadd.f32 %v3752_v18, %v3640_v56  ;;  %v3642_v10 = vadd.f32 %v3641_v48, %v9699_v58  ;;  %v3754_v2 = vpop.f32.mrf.mxu1  ;;  %v3576_v56 = vadd.f32 %v9715_v31, %v9699_v58  ;;  %v3687_v48 = vadd.f32 %v9709_v30, %v3574_v1  ;;  %v7762_v27 = vld [vmem:[%s10977_s5 + $0x2a4] ss:$12 sps:$4 sm:$0xff]  }
 0x23a   : > { %v3643_v59 = vpop.f32.mrf.mxu0  ;;  %5347 = vmatpush2.bf16.msra.mxu0 %v7702_v44  ;;  %5452 = vmatpush2.bf16.msra.mxu1 %v7754_v43 }
 0x23b   : > { %v9976_v24 = vadd.f32 %v3754_v2, %v3642_v10  ;;  %v3644_v41 = vadd.f32 %v3643_v59, %v9695_v61  ;;  %v3756_v5 = vpop.f32.mrf.mxu1  ;;  %5348 = vmatprep.subr.bf16.mxu0 %v7707_v36  ;;  %5453 = vmatprep.subr.bf16.mxu1 %v7759_v32  ;;  %v3689_v30 = vadd.f32 %v9717_v22, %v3576_v56 }
 0x23c   : > { %v3645_v33 = vpop.f32.mrf.mxu0 }
 0x23d   : > { %4316 = vmatmul.mubr.bf16.gmra.mxu0 %v9659_v28  ;;  %v9985_v29 = vadd.f32 %v3756_v5, %v3644_v41  ;;  %v9988_v19 = vadd.f32 %v3645_v33, %v9699_v58  ;;  %v9990_v55 = vpop.f32.mrf.mxu1  ;;  %v7708_v28 = vld [vmem:[%s10977_s5 + $0xc0] ss:$12 sps:$4 sm:$0xff]   ;;  %v3584_v33 = vadd.f32 %v9730_v54, %v9695_v61 }
 0x23e   : > { %v3795_v44 = vpop.f32.mrf.mxu0  ;;  %5349 = vmatpush2.bf16.msra.mxu0 %v7705_v6  ;;  %5454 = vmatpush2.bf16.msra.mxu1 %v7757_v16  ;;  %v7763_v16 = vld [vmem:[%s10977_s5 + $0x288] ss:$12 sps:$4 sm:$0xff]  }
 0x23f   : > { %5350 = vmatprep.subr.bf16.mxu0 %v7710_v8  ;;  %v3796_v10 = vadd.f32 %v3795_v44, %v9703_v4  ;;  %v7760_v8 = vld [vmem:[%s10977_s5 + $0x2a0] ss:$12 sps:$4 sm:$0xff]   ;;  %5455 = vmatprep.subr.bf16.mxu1 %v7762_v27 }
 0x240   : > { %4429 = vmatmul.mubr.bf16.gmra.mxu1 %v9663_v38  ;;  %v3908_v18 = vpop.f32.mrf.mxu1  ;;  %v3797_v36 = vpop.f32.mrf.mxu0 }
 0x241   : > { %v3798_v2 = vadd.f32 %v3797_v36, %v9712_v0  ;;  %v3909_v41 = vadd.f32 %v3908_v18, %v3796_v10  ;;  %v3697_v10 = vadd.f32 %v9734_v14, %v3584_v33 }
 0x242   : > { %v3910_v31 = vpop.f32.mrf.mxu1  ;;  %v3799_v59 = vpop.f32.mrf.mxu0  ;;  %5351 = vmatpush2.bf16.msra.mxu0 %v7708_v28  ;;  %v3586_v28 = vadd.f32 %v9739_v49, %v9699_v58  ;;  %5456 = vmatpush2.bf16.msra.mxu1 %v7760_v8 }
 0x243   : > { %v3800_v38 = vadd.f32 %v3799_v59, %v3687_v48  ;;  %7017 = vmatprep.subr.bf16.mxu0 %v7711_v45  ;;  %v3911_v4 = vadd.f32 %v3910_v31, %v3798_v2  ;;  %v4503_v36 = vmul.f32 0.01, %v3909_v41  ;;  %v7765_v48 = vld [vmem:[%s10977_s5 + $0x28c] ss:$12 sps:$4 sm:$0xff]   ;;  %vm4439_vm2 = vcmp.gt.f32.partialorder %v3909_v41, 0.0 }
 0x244   : > { %v3912_v6 = vpop.f32.mrf.mxu1  ;;  %v3801_v0 = vpop.f32.mrf.mxu0  ;;  %5457 = vmatprep.subr.bf16.mxu1 %v7765_v48  ;;  %v3699_v59 = vadd.f32 %v9744_v7, %v3586_v28  ;;  %v7714_v28 = vld [vmem:[%s10977_s5 + $0x98] ss:$12 sps:$4 sm:$0xff]  }
 0x245   : > { %v3913_v5 = vadd.f32 %v3912_v6, %v3800_v38  ;;  %v3802_v1 = vadd.f32 %v3801_v0, %v3689_v30  ;;  %v4504_v45 = vmul.f32 0.01, %v3911_v4  ;;  %vm4440_vm1 = vcmp.gt.f32.partialorder %v3911_v4, 0.0 }
 0x246   : > { %v3914_v43 = vpop.f32.mrf.mxu1  ;;  %v3805_v44 = vpop.f32.mrf.mxu0  ;;  %v4567_v0 = vsel %vm4439_vm2, %v3909_v41, %v4503_v36  ;;  %5458 = vmatpush2.bf16.msra.mxu1 %v7763_v16  ;;  %v7713_v41 = vld [vmem:[%s10977_s5 + $0x158] ss:$12 sps:$4 sm:$0xff]   ;;  %v7715_v36 = vld [vmem:[%s10977_s5 + $0x140] ss:$12 sps:$4 sm:$0xff]  }
 0x247   : > { %v4507_v22 = vmul.f32 0.01, %v3913_v5  ;;  %vm4443_vm0 = vcmp.gt.f32.partialorder %v3913_v5, 0.0  ;;  %v3915_v56 = vadd.f32 %v3914_v43, %v3802_v1  ;;  %v3806_v61 = vadd.f32 %v3805_v44, %v9726_v11  ;;  %v7766_v44 = vld [vmem:[%s10977_s5 + $0x270] ss:$12 sps:$4 sm:$0xff]  }
 0x248   : > { %v3918_v18 = vpop.f32.mrf.mxu1  ;;  %v3807_v54 = vpop.f32.mrf.mxu0  ;;  %v4568_v14 = vsel %vm4440_vm1, %v3911_v4, %v4504_v45  ;;  %v7769_v16 = vld [vmem:[%s10977_s5 + $0x258] ss:$12 sps:$4 sm:$0xff]  }
 0x249   : > { %vm4444_vm3 = vcmp.gt.f32.partialorder %v3915_v56, 0.0  ;;  %v4508_v49 = vmul.f32 0.01, %v3915_v56  ;;  %v4571_v32 = vsel %vm4443_vm0, %v3913_v5, %v4507_v22  ;;  %v3808_v11 = vadd.f32 %v3807_v54, %v9732_v39  ;;  %v7712_v5 = vld [vmem:[%s10977_s5 + $0xb0] ss:$12 sps:$4 sm:$0xff]  }
 0x24a   : > { %v3920_v2 = vpop.f32.mrf.mxu1  ;;  %v3809_v31 = vpop.f32.mrf.mxu0  ;;  %v3919_v8 = vadd.f32 %v3918_v18, %v3806_v61  ;;  %v7768_v39 = vld [vmem:[%s10977_s5 + $0x274] ss:$12 sps:$4 sm:$0xff]   ;;  %v10047_v7 = vpack.c.bf16 %v4571_v32, %v4567_v0 }
 0x24b   : > { %v3810_v38 = vadd.f32 %v3809_v31, %v3697_v10  ;;  %v4572_v6 = vsel %vm4444_vm3, %v3915_v56, %v4508_v49  ;;  %v3921_v33 = vadd.f32 %v3920_v2, %v3808_v11  ;;  %5459 = vmatprep.subr.bf16.mxu1 %v7768_v39  ;;  %v7771_v10 = vld [vmem:[%s10977_s5 + $0x25c] ss:$12 sps:$4 sm:$0xff]   ;;  %v7774_v39 = vld [vmem:[%s10977_s5 + $0x244] ss:$12 sps:$4 sm:$0xff]  }
 0x24c   : > { %v3922_v30 = vpop.f32.mrf.mxu1  ;;  %v3811_v1 = vpop.f32.mrf.mxu0  ;;  %v10039_v43 = vpack.c.bf16 %v4572_v6, %v4568_v14  ;;  %v4511_v61 = vmul.f32 0.01, %v3919_v8  ;;  %5460 = vmatpush2.bf16.msra.mxu1 %v7766_v44  ;;  %vm4447_vm6 = vcmp.gt.f32.partialorder %v3919_v8, 0.0 }
 0x24d   : > { %v3923_v27 = vadd.f32 %v3922_v30, %v3810_v38  ;;  %v3812_v4 = vadd.f32 %v3811_v1, %v3699_v59  ;;  %v4512_v45 = vmul.f32 0.01, %v3921_v33  ;;  %vm4448_vm5 = vcmp.gt.f32.partialorder %v3921_v33, 0.0  ;;  %5461 = vmatprep.subr.bf16.mxu1 %v7771_v10 }
 0x24e   : > { %v3924_v22 = vpop.f32.mrf.mxu1  ;;  %5352 = vmatprep.mubr.bf16.mxu0 %v10039_v43  ;;  %v4575_v6 = vsel %vm4447_vm6, %v3919_v8, %v4511_v61  ;;  %v7717_v8 = vld [vmem:[%s10977_s5 + $0x128] ss:$12 sps:$4 sm:$0xff]  }
 0x24f   : > { %vm4451_vm4 = vcmp.gt.f32.partialorder %v3923_v27, 0.0  ;;  %v4515_v56 = vmul.f32 0.01, %v3923_v27  ;;  %v3925_v18 = vadd.f32 %v3924_v22, %v3812_v4  ;;  %5353 = vmatmul.mubr.bf16.vlgmr.msra.gmra.mxu0 %v10047_v7  ;;  %v4576_v30 = vsel %vm4448_vm5, %v3921_v33, %v4512_v45  ;;  %v7772_v33 = vld [vmem:[%s10977_s5 + $0x240] ss:$12 sps:$4 sm:$0xff]  }
 0x250   : > { %7018 = vmatpush3.bf16.msra.mxu0 %v7712_v5  ;;  %v7716_v5 = vld [vmem:[%s10977_s5 + $0x80] ss:$12 sps:$4 sm:$0xff]   ;;  %5462 = vmatpush2.bf16.msra.mxu1 %v7769_v16  ;;  %v7718_v45 = vld [vmem:[%s10977_s5 + $0x68] ss:$12 sps:$4 sm:$0xff]  }
 0x251   : > { %v3815_v54 = vpop.f32.mrf.mxu0  ;;  %vm4452_vm7 = vcmp.gt.f32.partialorder %v3925_v18, 0.0  ;;  %v4516_v49 = vmul.f32 0.01, %v3925_v18  ;;  %7019 = vmatprep.subr.bf16.mxu0 %v7713_v41  ;;  %v4579_v32 = vsel %vm4451_vm4, %v3923_v27, %v4515_v56  ;;  %5463 = vmatprep.subr.bf16.mxu1 %v7774_v39 }
 0x252   : > { %v3928_v48 = vpop.f32.mrf.mxu1  ;;  %v3816_v2 = vadd.f32 %v3815_v54, %v9757_v3  ;;  %v10081_v27 = vpack.c.bf16 %v4579_v32, %v4575_v6 }
 0x253   : > { %v3817_v11 = vpop.f32.mrf.mxu0  ;;  %v4580_v14 = vsel %vm4452_vm7, %v3925_v18, %v4516_v49  ;;  %v7719_v18 = vld [vmem:[%s10977_s5 + $0x110] ss:$12 sps:$4 sm:$0xff]  }
 0x254   : > { %v3930_v31 = vpop.f32.mrf.mxu1  ;;  %v3929_v59 = vadd.f32 %v3928_v48, %v3816_v2  ;;  %v3818_v38 = vadd.f32 %v3817_v11, %v9763_v13  ;;  %v10073_v3 = vpack.c.bf16 %v4580_v14, %v4576_v30  ;;  %7020 = vmatpush3.bf16.msra.mxu0 %v7714_v28  ;;  %5464 = vmatpush2.bf16.msra.mxu1 %v7772_v33  ;;  %v7720_v2 = vld [vmem:[%s10977_s5 + $0x50] ss:$12 sps:$4 sm:$0xff]   ;;  %v7721_v30 = vld [vmem:[%s10977_s5 + $0xf8] ss:$12 sps:$4 sm:$0xff]  }
 0x255   : > { %v3819_v0 = vpop.f32.mrf.mxu0  ;;  %7021 = vmatprep.subr.bf16.mxu0 %v7715_v36 }
 0x256   : > { %v3932_v1 = vpop.f32.mrf.mxu1  ;;  %v3820_v13 = vadd.f32 %v3819_v0, %v9770_v42  ;;  %5362 = vmatprep.mubr.bf16.mxu0 %v10073_v3  ;;  %v4519_v22 = vmul.f32 0.01, %v3929_v59  ;;  %v3931_v41 = vadd.f32 %v3930_v31, %v3818_v38  ;;  %vm4455_vm8 = vcmp.gt.f32.partialorder %v3929_v59, 0.0  ;;  %v7775_v31 = vld [vmem:[%s10977_s5 + $0x2f0] ss:$12 sps:$4 sm:$0xff]  }
 0x257   : > { %v3821_v4 = vpop.f32.mrf.mxu0  ;;  %5363 = vmatmul.mubr.bf16.gmra.mxu0 %v10081_v27  ;;  %7081 = vmatprep.subr.bf16.mxu1 %v7775_v31 }
 0x258   : > { %v3933_v44 = vadd.f32 %v3932_v1, %v3820_v13  ;;  %v3934_v28 = vpop.f32.mrf.mxu1  ;;  %v3822_v42 = vadd.f32 %v3821_v4, %v9777_v17  ;;  %7022 = vmatpush3.bf16.msra.mxu0 %v7716_v5  ;;  %v4583_v54 = vsel %vm4455_vm8, %v3929_v59, %v4519_v22  ;;  %v4520_v48 = vmul.f32 0.01, %v3931_v41 }
 0x259   : > { %7023 = vmatprep.subr.bf16.mxu0 %v7717_v8  ;;  %vm4456_vm10 = vcmp.gt.f32.partialorder %v3931_v41, 0.0 }
 0x25a   : > { %vm4459_vm9 = vcmp.gt.f32.partialorder %v3933_v44, 0.0  ;;  %v4523_v56 = vmul.f32 0.01, %v3933_v44  ;;  %v3935_v36 = vadd.f32 %v3934_v28, %v3822_v42  ;;  %v4584_v5 = vsel %vm4456_vm10, %v3931_v41, %v4520_v48 }
 0x25b   : > { %v3825_v61 = vpop.f32.mrf.mxu0  ;;  %v3616_v28 = vadd.f32 %v9842_v9, %v9699_v58 }
 0x25c   : > { %v4587_v10 = vsel %vm4459_vm9, %v3933_v44, %v4523_v56  ;;  %v3826_v17 = vadd.f32 %v3825_v61, %v9788_v40  ;;  %v3938_v49 = vpop.f32.mrf.mxu1  ;;  %vm4460_vm11 = vcmp.gt.f32.partialorder %v3935_v36, 0.0  ;;  %v4524_v32 = vmul.f32 0.01, %v3935_v36  ;;  %7024 = vmatpush3.bf16.msra.mxu0 %v7718_v45 }
 0x25d   : > { %v10103_v16 = vpack.c.bf16 %v4587_v10, %v4583_v54  ;;  %v3827_v11 = vpop.f32.mrf.mxu0  ;;  %7025 = vmatprep.subr.bf16.mxu0 %v7719_v18 }
 0x25e   : > { %v3939_v59 = vadd.f32 %v3938_v49, %v3826_v17  ;;  %v3828_v38 = vadd.f32 %v3827_v11, %v9795_v23  ;;  %v3940_v40 = vpop.f32.mrf.mxu1  ;;  %v4588_v6 = vsel %vm4460_vm11, %v3935_v36, %v4524_v32  ;;  %v7722_v23 = vld [vmem:[%s10977_s5 + $0x38] ss:$12 sps:$4 sm:$0xff]   ;;  %v3729_v32 = vadd.f32 %v9850_v63, %v3616_v28 }
 0x25f   : > { %v3829_v14 = vpop.f32.mrf.mxu0  ;;  %v10114_v8 = vpack.c.bf16 %v4588_v6, %v4584_v5 }
 0x260   : > { %v3830_v0 = vadd.f32 %v3829_v14, %v9802_v46  ;;  %v3942_v1 = vpop.f32.mrf.mxu1  ;;  %v3941_v39 = vadd.f32 %v3940_v40, %v3828_v38  ;;  %7026 = vmatpush3.bf16.msra.mxu0 %v7720_v2  ;;  %v4527_v33 = vmul.f32 0.01, %v3939_v59  ;;  %v7723_v46 = vld [vmem:[%s10977_s5 + $0xe0] ss:$12 sps:$4 sm:$0xff]   ;;  %vm4463_vm12 = vcmp.gt.f32.partialorder %v3939_v59, 0.0 }
 0x261   : > { %v3831_v13 = vpop.f32.mrf.mxu0  ;;  %7027 = vmatprep.subr.bf16.mxu0 %v7721_v30  ;;  %5372 = vmatprep.mubr.bf16.mxu0 %v10114_v8 }
 0x262   : > { %v3943_v4 = vadd.f32 %v3942_v1, %v3830_v0  ;;  %v3944_v22 = vpop.f32.mrf.mxu1  ;;  %v3832_v41 = vadd.f32 %v3831_v13, %v9810_v52  ;;  %5373 = vmatmul.mubr.bf16.gmra.mxu0 %v10103_v16  ;;  %v4528_v56 = vmul.f32 0.01, %v3941_v39  ;;  %v7724_v52 = vld [vmem:[%s10977_s5 + $0x20] ss:$12 sps:$4 sm:$0xff]   ;;  %v4591_v61 = vsel %vm4463_vm12, %v3939_v59, %v4527_v33  ;;  %v7726_v1 = vld [vmem:[%s10977_s5 + $0x8] ss:$12 sps:$4 sm:$0xff]  }
 0x263   : > { %v3835_v44 = vpop.f32.mrf.mxu0  ;;  %vm4464_vm14 = vcmp.gt.f32.partialorder %v3941_v39, 0.0 }
 0x264   : > { %vm4467_vm13 = vcmp.gt.f32.partialorder %v3943_v4, 0.0  ;;  %v4531_v42 = vmul.f32 0.01, %v3943_v4  ;;  %v3836_v45 = vadd.f32 %v3835_v44, %v9825_v47  ;;  %v3945_v18 = vadd.f32 %v3944_v22, %v3832_v41  ;;  %7028 = vmatpush3.bf16.msra.mxu0 %v7722_v23  ;;  %v7725_v47 = vld [vmem:[%s10977_s5 + $0xc8] ss:$12 sps:$4 sm:$0xff]  }
 0x265   : > { %v3837_v36 = vpop.f32.mrf.mxu0  ;;  %7029 = vmatprep.subr.bf16.mxu0 %v7723_v46 }
 0x266   : > { %v4595_v54 = vsel %vm4467_vm13, %v3943_v4, %v4531_v42  ;;  %v3948_v48 = vpop.f32.mrf.mxu1  ;;  %v3838_v9 = vadd.f32 %v3837_v36, %v9836_v35  ;;  %vm4468_vm15 = vcmp.gt.f32.partialorder %v3945_v18, 0.0  ;;  %v4532_v17 = vmul.f32 0.01, %v3945_v18 }
 0x267   : > { %v10135_v10 = vpack.c.bf16 %v4595_v54, %v4591_v61  ;;  %v3949_v49 = vadd.f32 %v3948_v48, %v3836_v45  ;;  %v3839_v2 = vpop.f32.mrf.mxu0  ;;  %v4592_v35 = vsel %vm4464_vm14, %v3941_v39, %v4528_v56 }
 0x268   : > { %v3950_v11 = vpop.f32.mrf.mxu1  ;;  %v3840_v31 = vadd.f32 %v3839_v2, %v9848_v20  ;;  %v4596_v40 = vsel %vm4468_vm15, %v3945_v18, %v4532_v17  ;;  %7030 = vmatpush3.bf16.msra.mxu0 %v7724_v52  ;;  %v3626_v20 = vadd.f32 %v9888_v62, %v9699_v58  ;;  %v3636_v2 = vadd.f32 %v9935_v34, %v9699_v58 }
 0x269   : > { %v3951_v59 = vadd.f32 %v3950_v11, %v3838_v9  ;;  %v3841_v38 = vpop.f32.mrf.mxu0  ;;  %v4535_v30 = vmul.f32 0.01, %v3949_v49  ;;  %v10140_v0 = vpack.c.bf16 %v4596_v40, %v4592_v35  ;;  %7031 = vmatprep.subr.bf16.mxu0 %v7725_v47  ;;  %vm4471_vm0 = vcmp.gt.f32.partialorder %v3949_v49, 0.0 }
 0x26a   : > { %v3952_v14 = vpop.f32.mrf.mxu1  ;;  %v3842_v6 = vadd.f32 %v3841_v38, %v3729_v32  ;;  %v3739_v18 = vadd.f32 %v9890_v25, %v3626_v20 }
 0x26b   : > { %v3953_v63 = vadd.f32 %v3952_v14, %v3840_v31  ;;  %v4536_v5 = vmul.f32 0.01, %v3951_v59  ;;  %5382 = vmatprep.mubr.bf16.mxu0 %v10140_v0  ;;  %v4599_v22 = vsel %vm4471_vm0, %v3949_v49, %v4535_v30  ;;  %vm4472_vm2 = vcmp.gt.f32.partialorder %v3951_v59, 0.0 }
 0x26c   : > { %v3954_v13 = vpop.f32.mrf.mxu1  ;;  %v3845_v39 = vpop.f32.mrf.mxu0  ;;  %5383 = vmatmul.mubr.bf16.gmra.mxu0 %v10135_v10 }
 0x26d   : > { %vm4475_vm1 = vcmp.gt.f32.partialorder %v3953_v63, 0.0  ;;  %v4539_v23 = vmul.f32 0.01, %v3953_v63  ;;  %v3955_v33 = vadd.f32 %v3954_v13, %v3842_v6  ;;  %v3846_v4 = vadd.f32 %v3845_v39, %v9874_v26  ;;  %7032 = vmatpush3.bf16.msra.mxu0 %v7726_v1 }
 0x26e   : > { %v3847_v46 = vpop.f32.mrf.mxu0  ;;  %v4600_v52 = vsel %vm4472_vm2, %v3951_v59, %v4536_v5 }
 0x26f   : > { %v4603_v41 = vsel %vm4475_vm1, %v3953_v63, %v4539_v23  ;;  %vm4476_vm3 = vcmp.gt.f32.partialorder %v3955_v33, 0.0  ;;  %v4540_v44 = vmul.f32 0.01, %v3955_v33  ;;  %v3958_v62 = vpop.f32.mrf.mxu1  ;;  %v3848_v28 = vadd.f32 %v3847_v46, %v9884_v51 }
 0x270   : > { %v10151_v42 = vpack.c.bf16 %v4603_v41, %v4599_v22  ;;  %v3959_v45 = vadd.f32 %v3958_v62, %v3846_v4  ;;  %v3849_v56 = vpop.f32.mrf.mxu0  ;;  %v3749_v63 = vadd.f32 %v9942_v15, %v3636_v2 }
 0x271   : > { %v3960_v36 = vpop.f32.mrf.mxu1  ;;  %v3850_v26 = vadd.f32 %v3849_v56, %v9898_v21  ;;  %v4604_v61 = vsel %vm4476_vm3, %v3955_v33, %v4540_v44 }
 0x272   : > { %v3961_v54 = vadd.f32 %v3960_v36, %v3848_v28  ;;  %v3851_v48 = vpop.f32.mrf.mxu0  ;;  %v10155_v9 = vpack.c.bf16 %v4604_v61, %v4600_v52  ;;  %v4543_v47 = vmul.f32 0.01, %v3959_v45  ;;  %vm4479_vm4 = vcmp.gt.f32.partialorder %v3959_v45, 0.0 }
 0x273   : > { %v3962_v17 = vpop.f32.mrf.mxu1  ;;  %v3852_v49 = vadd.f32 %v3851_v48, %v3739_v18 }
 0x274   : > { %v3963_v51 = vadd.f32 %v3962_v17, %v3850_v26  ;;  %5392 = vmatprep.mubr.bf16.mxu0 %v10155_v9  ;;  %v4544_v25 = vmul.f32 0.01, %v3961_v54  ;;  %v4607_v38 = vsel %vm4479_vm4, %v3959_v45, %v4543_v47  ;;  %vm4480_vm6 = vcmp.gt.f32.partialorder %v3961_v54, 0.0 }
 0x275   : > { %v3964_v32 = vpop.f32.mrf.mxu1  ;;  %v3855_v11 = vpop.f32.mrf.mxu0  ;;  %5393 = vmatmul.mubr.bf16.gmra.mxu0 %v10151_v42 }
 0x276   : > { %vm4483_vm5 = vcmp.gt.f32.partialorder %v3963_v51, 0.0  ;;  %v4547_v21 = vmul.f32 0.01, %v3963_v51  ;;  %v3965_v31 = vadd.f32 %v3964_v32, %v3852_v49  ;;  %v3856_v59 = vadd.f32 %v3855_v11, %v9918_v53  ;;  %v8007_v49 = vld [vmem:[%s10976_s4] sm:$0xf] }
 0x277   : > { %v3857_v35 = vpop.f32.mrf.mxu0  ;;  %v4608_v13 = vsel %vm4480_vm6, %v3961_v54, %v4544_v25 }
 0x278   : > { %v4611_v40 = vsel %vm4483_vm5, %v3963_v51, %v4547_v21  ;;  %vm4484_vm7 = vcmp.gt.f32.partialorder %v3965_v31, 0.0  ;;  %v4548_v30 = vmul.f32 0.01, %v3965_v31  ;;  %v3968_v14 = vpop.f32.mrf.mxu1  ;;  %v3858_v6 = vadd.f32 %v3857_v35, %v9926_v50  ;;  %v11100_v51 = vld [vmem:[#allocation7_spill] sm:$0xff] }
 0x279   : > { %v10163_v58 = vpack.c.bf16 %v4611_v40, %v4607_v38  ;;  %v3969_v34 = vadd.f32 %v3968_v14, %v3856_v59  ;;  %v3859_v1 = vpop.f32.mrf.mxu0  ;;  %v10182_v2 = vrot.slane %v8007_v49, %v11100_v51  ;;  %v11101_v59 = vld [vmem:[#allocation5_spill] sm:$0xff] }
 0x27a   : > { %v3970_v20 = vpop.f32.mrf.mxu1  ;;  %v3860_v5 = vadd.f32 %v3859_v1, %v9940_v57  ;;  %v4612_v53 = vsel %vm4484_vm7, %v3965_v31, %v4548_v30  ;;  %v11102_v38 = vsub.s32 3, %v11101_v59 }
 0x27b   : > { %v3971_v39 = vadd.f32 %v3970_v20, %v3858_v6  ;;  %v3861_v23 = vpop.f32.mrf.mxu0  ;;  %v10167_v33 = vpack.c.bf16 %v4612_v53, %v4608_v13  ;;  %v4551_v4 = vmul.f32 0.01, %v3969_v34  ;;  %vm4487_vm8 = vcmp.gt.f32.partialorder %v3969_v34, 0.0 }
 0x27c   : > { %v3972_v22 = vpop.f32.mrf.mxu1  ;;  %v3862_v46 = vadd.f32 %v3861_v23, %v3749_v63 }
 0x27d   : > { %v3973_v50 = vadd.f32 %v3972_v22, %v3860_v5  ;;  %v3865_v41 = vpop.f32.mrf.mxu0  ;;  %5402 = vmatprep.mubr.bf16.mxu0 %v10167_v33  ;;  %v4552_v57 = vmul.f32 0.01, %v3971_v39  ;;  %v4615_v56 = vsel %vm4487_vm8, %v3969_v34, %v4551_v4  ;;  %vm4488_vm10 = vcmp.gt.f32.partialorder %v3971_v39, 0.0 }
 0x27e   : > { %v3974_v44 = vpop.f32.mrf.mxu1  ;;  %v3866_v15 = vadd.f32 %v3865_v41, %v9964_v60  ;;  %5403 = vmatmul.mubr.bf16.gmra.mxu0 %v10163_v58  ;;  %v3759_v60 = vadd.f32 %v9990_v55, %v9988_v19 }
 0x27f   : > { %vm4491_vm9 = vcmp.gt.f32.partialorder %v3973_v50, 0.0  ;;  %v4555_v62 = vmul.f32 0.01, %v3973_v50  ;;  %v3975_v28 = vadd.f32 %v3974_v44, %v3862_v46  ;;  %v3867_v45 = vpop.f32.mrf.mxu0  ;;  %v4616_v32 = vsel %vm4488_vm10, %v3971_v39, %v4552_v57 }
 0x280   : > { %v3978_v18 = vpop.f32.mrf.mxu1  ;;  %v3868_v36 = vadd.f32 %v3867_v45, %v9976_v24 }
 0x281   : > { %v4619_v26 = vsel %vm4491_vm9, %v3973_v50, %v4555_v62  ;;  %vm4492_vm11 = vcmp.gt.f32.partialorder %v3975_v28, 0.0  ;;  %v4556_v52 = vmul.f32 0.01, %v3975_v28  ;;  %v3979_v61 = vadd.f32 %v3978_v18, %v3866_v15  ;;  %v3869_v54 = vpop.f32.mrf.mxu0 }
 0x282   : > { %v10175_v48 = vpack.c.bf16 %v4619_v26, %v4615_v56  ;;  %v3980_v47 = vpop.f32.mrf.mxu1  ;;  %v3870_v17 = vadd.f32 %v3869_v54, %v9985_v29  ;;  %v10189_v29 = vrot.slane %v8007_v49, %v11102_v38 }
 0x283   : > { %v3981_v24 = vadd.f32 %v3980_v47, %v3868_v36  ;;  %v3871_v25 = vpop.f32.mrf.mxu0  ;;  %v4620_v11 = vsel %vm4492_vm11, %v3975_v28, %v4556_v52  ;;  %v4559_v21 = vmul.f32 0.01, %v3979_v61  ;;  %vm4495_vm12 = vcmp.gt.f32.partialorder %v3979_v61, 0.0 }
 0x284   : > { %v3982_v31 = vpop.f32.mrf.mxu1  ;;  %v3872_v19 = vadd.f32 %v3871_v25, %v3759_v60  ;;  %v10185_v55 = vpack.c.bf16 %v4620_v11, %v4616_v32 }
 0x285   : > { %v3983_v35 = vadd.f32 %v3982_v31, %v3870_v17  ;;  %v4021_v40 = vpop.f32.mrf.mxu0  ;;  %v4560_v6 = vmul.f32 0.01, %v3981_v24  ;;  %v4623_v20 = vsel %vm4495_vm12, %v3979_v61, %v4559_v21  ;;  %vm4496_vm14 = vcmp.gt.f32.partialorder %v3981_v24, 0.0 }
 0x286   : > { %v3984_v30 = vpop.f32.mrf.mxu1  ;;  %v4022_v14 = vadd.f32 %v4021_v40, %v10182_v2  ;;  %5412 = vmatprep.mubr.bf16.mxu0 %v10185_v55 }
 0x287   : > { %vm4499_vm13 = vcmp.gt.f32.partialorder %v3983_v35, 0.0  ;;  %v4563_v34 = vmul.f32 0.01, %v3983_v35  ;;  %v3985_v1 = vadd.f32 %v3984_v30, %v3872_v19  ;;  %5413 = vmatmul.mubr.bf16.gmra.mxu0 %v10175_v48  ;;  %v4023_v63 = vpop.f32.mrf.mxu0  ;;  %v4624_v44 = vsel %vm4496_vm14, %v3981_v24, %v4560_v6 }
 0x288   : > { %v4134_v5 = vpop.f32.mrf.mxu1  ;;  %v4024_v13 = vadd.f32 %v4023_v63, %v10189_v29 }
 0x289   : > { %v4627_v53 = vsel %vm4499_vm13, %v3983_v35, %v4563_v34  ;;  %vm4500_vm15 = vcmp.gt.f32.partialorder %v3985_v1, 0.0  ;;  %v4564_v39 = vmul.f32 0.01, %v3985_v1  ;;  %v10195_v23 = vadd.f32 %v4134_v5, %v4022_v14  ;;  %v10197_v4 = vpop.f32.mrf.mxu0 }
 0x28a   : > { %v10199_v22 = vpack.c.bf16 %v4627_v53, %v4623_v20  ;;  %v4136_v46 = vpop.f32.mrf.mxu1 }
 0x28b   : > { %v10201_v50 = vadd.f32 %v4136_v46, %v4024_v13  ;;  %v10203_v41 = vpop.f32.mrf.mxu0  ;;  %v4628_v15 = vsel %vm4500_vm15, %v3985_v1, %v4564_v39 }
 0x28c   : > { %v10205_v57 = vpop.f32.mrf.mxu1  ;;  %v10207_v62 = vpack.c.bf16 %v4628_v15, %v4624_v44 }
 0x28d   : > { %v4031_v28 = vpop.f32.mrf.mxu0 }
 0x28e   : > { %v10209_v45 = vpop.f32.mrf.mxu1  ;;  %v4032_v56 = vadd.f32 %v4031_v28, %v10182_v2  ;;  %5422 = vmatprep.mubr.bf16.mxu0 %v10207_v62 }
 0x28f   : > { %5423 = vmatmul.mubr.bf16.gmra.mxu0 %v10199_v22  ;;  %v4033_v18 = vpop.f32.mrf.mxu0 }
 0x290   : > { %v4144_v36 = vpop.f32.mrf.mxu1  ;;  %v4034_v26 = vadd.f32 %v4033_v18, %v10189_v29  ;;  %5578 = vmatprep.mubr.bf16.mxu0 %v10039_v43 }
 0x291   : > { %v10216_v52 = vadd.f32 %v4144_v36, %v4032_v56  ;;  %v10218_v61 = vpop.f32.mrf.mxu0 }
 0x292   : > { %v4146_v54 = vpop.f32.mrf.mxu1 }
 0x293   : > { %v10220_v60 = vadd.f32 %v4146_v54, %v4034_v26  ;;  %v10222_v47 = vpop.f32.mrf.mxu0 }
 0x294   : > { %v10224_v17 = vpop.f32.mrf.mxu1 }
 0x295   : > { %v4041_v49 = vpop.f32.mrf.mxu0 }
 0x296   : > { %v10226_v24 = vpop.f32.mrf.mxu1  ;;  %v4042_v25 = vadd.f32 %v4041_v49, %v10182_v2 }
 0x297   : > { %5579 = vmatmul.mubr.bf16.vlgmr.msra.gmra.mxu0 %v10047_v7  ;;  %v4043_v32 = vpop.f32.mrf.mxu0 }
 0x298   : > { %v4154_v43 = vpop.f32.mrf.mxu1  ;;  %v4044_v11 = vadd.f32 %v4043_v32, %v10189_v29  ;;  %5586 = vmatprep.mubr.bf16.mxu0 %v10073_v3 }
 0x299   : > { %v10232_v21 = vadd.f32 %v4154_v43, %v4042_v25  ;;  %v10234_v31 = vpop.f32.mrf.mxu0 }
 0x29a   : > { %v4156_v19 = vpop.f32.mrf.mxu1 }
 0x29b   : > { %v10236_v59 = vadd.f32 %v4156_v19, %v4044_v11  ;;  %v10238_v38 = vpop.f32.mrf.mxu0 }
 0x29c   : > { %v10240_v35 = vpop.f32.mrf.mxu1 }
 0x29d   : > { %v4051_v40 = vpop.f32.mrf.mxu0 }
 0x29e   : > { %v10242_v30 = vpop.f32.mrf.mxu1  ;;  %v4052_v7 = vadd.f32 %v4051_v40, %v10182_v2 }
 0x29f   : > { %5587 = vmatmul.mubr.bf16.gmra.mxu0 %v10081_v27  ;;  %v4053_v14 = vpop.f32.mrf.mxu0 }
 0x2a0   : > { %v4164_v3 = vpop.f32.mrf.mxu1  ;;  %v4054_v6 = vadd.f32 %v4053_v14, %v10189_v29  ;;  %5594 = vmatprep.mubr.bf16.mxu0 %v10114_v8 }
 0x2a1   : > { %v10248_v34 = vadd.f32 %v4164_v3, %v4052_v7  ;;  %v10250_v1 = vpop.f32.mrf.mxu0 }
 0x2a2   : > { %v4166_v63 = vpop.f32.mrf.mxu1 }
 0x2a3   : > { %v10252_v20 = vadd.f32 %v4166_v63, %v4054_v6  ;;  %v10254_v5 = vpop.f32.mrf.mxu0 }
 0x2a4   : > { %v10256_v13 = vpop.f32.mrf.mxu1 }
 0x2a5   : > { %v4061_v53 = vpop.f32.mrf.mxu0 }
 0x2a6   : > { %v10258_v39 = vpop.f32.mrf.mxu1  ;;  %v4062_v27 = vadd.f32 %v4061_v53, %v10182_v2 }
 0x2a7   : > { %5595 = vmatmul.mubr.bf16.gmra.mxu0 %v10103_v16  ;;  %v4063_v46 = vpop.f32.mrf.mxu0 }
 0x2a8   : > { %v4174_v8 = vpop.f32.mrf.mxu1  ;;  %v4064_v44 = vadd.f32 %v4063_v46, %v10189_v29  ;;  %5602 = vmatprep.mubr.bf16.mxu0 %v10140_v0 }
 0x2a9   : > { %v10264_v15 = vadd.f32 %v4174_v8, %v4062_v27  ;;  %v10266_v28 = vpop.f32.mrf.mxu0 }
 0x2aa   : > { %v4176_v56 = vpop.f32.mrf.mxu1 }
 0x2ab   : > { %v10268_v18 = vadd.f32 %v4176_v56, %v4064_v44  ;;  %v10270_v36 = vpop.f32.mrf.mxu0 }
 0x2ac   : > { %v10272_v26 = vpop.f32.mrf.mxu1 }
 0x2ad   : > { %v4071_v54 = vpop.f32.mrf.mxu0 }
 0x2ae   : > { %v10274_v49 = vpop.f32.mrf.mxu1  ;;  %v4072_v16 = vadd.f32 %v4071_v54, %v10182_v2 }
 0x2af   : > { %5603 = vmatmul.mubr.bf16.gmra.mxu0 %v10135_v10  ;;  %v4073_v25 = vpop.f32.mrf.mxu0 }
 0x2b0   : > { %v4184_v0 = vpop.f32.mrf.mxu1  ;;  %v4074_v32 = vadd.f32 %v4073_v25, %v10189_v29  ;;  %5610 = vmatprep.mubr.bf16.mxu0 %v10155_v9 }
 0x2b1   : > { %v10280_v43 = vadd.f32 %v4184_v0, %v4072_v16  ;;  %v10282_v11 = vpop.f32.mrf.mxu0 }
 0x2b2   : > { %v4186_v19 = vpop.f32.mrf.mxu1 }
 0x2b3   : > { %v10284_v40 = vadd.f32 %v4186_v19, %v4074_v32  ;;  %v10286_v7 = vpop.f32.mrf.mxu0 }
 0x2b4   : > { %v10288_v14 = vpop.f32.mrf.mxu1 }
 0x2b5   : > { %v4081_v3 = vpop.f32.mrf.mxu0 }
 0x2b6   : > { %v10290_v6 = vpop.f32.mrf.mxu1  ;;  %v4082_v10 = vadd.f32 %v4081_v3, %v10182_v2 }
 0x2b7   : > { %5611 = vmatmul.mubr.bf16.gmra.mxu0 %v10151_v42  ;;  %v4083_v63 = vpop.f32.mrf.mxu0 }
 0x2b8   : > { %v4194_v9 = vpop.f32.mrf.mxu1  ;;  %v4084_v53 = vadd.f32 %v4083_v63, %v10189_v29  ;;  %5618 = vmatprep.mubr.bf16.mxu0 %v10167_v33 }
 0x2b9   : > { %v10296_v27 = vadd.f32 %v4194_v9, %v4082_v10  ;;  %v10298_v46 = vpop.f32.mrf.mxu0 }
 0x2ba   : > { %v4196_v8 = vpop.f32.mrf.mxu1 }
 0x2bb   : > { %v10300_v44 = vadd.f32 %v4196_v8, %v4084_v53  ;;  %v10302_v56 = vpop.f32.mrf.mxu0  ;;  %v4026_v53 = vadd.f32 %v10197_v4, %v10182_v2 }
 0x2bc   : > { %v10304_v54 = vpop.f32.mrf.mxu1 }
 0x2bd   : > { %v4091_v16 = vpop.f32.mrf.mxu0 }
 0x2be   : > { %v10306_v25 = vpop.f32.mrf.mxu1  ;;  %v4092_v42 = vadd.f32 %v4091_v16, %v10182_v2  ;;  %v4028_v16 = vadd.f32 %v10203_v41, %v10189_v29  ;;  %v4036_v41 = vadd.f32 %v10218_v61, %v10182_v2 }
 0x2bf   : > { %5619 = vmatmul.mubr.bf16.gmra.mxu0 %v10163_v58  ;;  %v4093_v0 = vpop.f32.mrf.mxu0 }
 0x2c0   : > { %v4204_v33 = vpop.f32.mrf.mxu1  ;;  %v4094_v32 = vadd.f32 %v4093_v0, %v10189_v29  ;;  %5626 = vmatprep.mubr.bf16.mxu0 %v10185_v55  ;;  %v4141_v51 = vadd.f32 %v10209_v45, %v4028_v16 }
 0x2c1   : > { %v10312_v19 = vadd.f32 %v4204_v33, %v4092_v42  ;;  %v10314_v3 = vpop.f32.mrf.mxu0  ;;  %v4139_v42 = vadd.f32 %v10205_v57, %v4026_v53 }
 0x2c2   : > { %v4206_v10 = vpop.f32.mrf.mxu1 }
 0x2c3   : > { %11103 = vst [vmem:[#allocation10_spill] sm:$0xff] %v10312_v19  ;;  %v10316_v63 = vadd.f32 %v4206_v10, %v4094_v32  ;;  %v10318_v9 = vpop.f32.mrf.mxu0 }
 0x2c4   : > { %v10322_v8 = vpop.f32.mrf.mxu1 }
 0x2c5   : > { %11104 = vst [vmem:[#allocation9_spill] sm:$0xff] %v10316_v63  ;;  %v4247_v58 = vpop.f32.mrf.mxu0 }
 0x2c6   : > { %v10326_v0 = vpop.f32.mrf.mxu1  ;;  %v4248_v33 = vadd.f32 %v4247_v58, %v10195_v23  ;;  %v4149_v58 = vadd.f32 %v10224_v17, %v4036_v41 }
 0x2c7   : > { %11105 = vst [vmem:[#allocation11_spill] sm:$0xff] %v10326_v0  ;;  %5627 = vmatmul.mubr.bf16.gmra.mxu0 %v10175_v48  ;;  %v4249_v55 = vpop.f32.mrf.mxu0 }
 0x2c8   : > { %v4360_v32 = vpop.f32.mrf.mxu1  ;;  %v4250_v10 = vadd.f32 %v4249_v55, %v10201_v50  ;;  %5634 = vmatprep.mubr.bf16.mxu0 %v10207_v62  ;;  %v4038_v50 = vadd.f32 %v10222_v47, %v10189_v29 }
 0x2c9   : > { %v4251_v4 = vpop.f32.mrf.mxu0  ;;  %v4361_v63 = vadd.f32 %v4360_v32, %v4248_v33  ;;  %v4046_v33 = vadd.f32 %v10234_v31, %v10182_v2 }
 0x2ca   : > { %v4362_v37 = vpop.f32.mrf.mxu1  ;;  %v4252_v12 = vadd.f32 %v4251_v4, %v4139_v42  ;;  %v4151_v47 = vadd.f32 %v10226_v24, %v4038_v50  ;;  %v7776_v24 = vld [vmem:[%s10977_s5 + $0x230] ss:$12 sps:$4 sm:$0xff]  }
 0x2cb   : > { %v4363_v0 = vadd.f32 %v4362_v37, %v4250_v10  ;;  %v4253_v48 = vpop.f32.mrf.mxu0  ;;  %v4505_v37 = vmul.f32 0.01, %v4361_v63  ;;  %vm4441_vm2 = vcmp.gt.f32.partialorder %v4361_v63, 0.0 }
 0x2cc   : > { %v4364_v19 = vpop.f32.mrf.mxu1  ;;  %v4254_v57 = vadd.f32 %v4253_v48, %v4141_v51 }
 0x2cd   : > { %v4365_v53 = vadd.f32 %v4364_v19, %v4252_v12  ;;  %v4257_v23 = vpop.f32.mrf.mxu0  ;;  %v4506_v55 = vmul.f32 0.01, %v4363_v0  ;;  %vm4442_vm1 = vcmp.gt.f32.partialorder %v4363_v0, 0.0 }
 0x2ce   : > { %v4366_v62 = vpop.f32.mrf.mxu1  ;;  %v4258_v42 = vadd.f32 %v4257_v23, %v10216_v52 }
 0x2cf   : > { %vm4445_vm0 = vcmp.gt.f32.partialorder %v4365_v53, 0.0  ;;  %v4509_v45 = vmul.f32 0.01, %v4365_v53  ;;  %v4367_v16 = vadd.f32 %v4366_v62, %v4254_v57  ;;  %5635 = vmatmul.mubr.bf16.gmra.mxu0 %v10199_v22  ;;  %v4259_v61 = vpop.f32.mrf.mxu0  ;;  %v4570_v48 = vsel %vm4442_vm1, %v4363_v0, %v4506_v55 }
 0x2d0   : > { %v4370_v51 = vpop.f32.mrf.mxu1  ;;  %v4260_v12 = vadd.f32 %v4259_v61, %v10220_v60  ;;  %v4569_v57 = vsel %vm4441_vm2, %v4361_v63, %v4505_v37  ;;  %v4159_v0 = vadd.f32 %v10240_v35, %v4046_v33  ;;  %v4048_v63 = vadd.f32 %v10238_v38, %v10189_v29  ;;  %v7778_v38 = vld [vmem:[%s10977_s5 + $0x218] ss:$12 sps:$4 sm:$0xff]   ;;  %v7779_v33 = vld [vmem:[%s10977_s5 + $0x2c0] ss:$12 sps:$4 sm:$0xff]  }
 0x2d1   : > { %vm4446_vm3 = vcmp.gt.f32.partialorder %v4367_v16, 0.0  ;;  %v4510_v17 = vmul.f32 0.01, %v4367_v16  ;;  %v4261_v19 = vpop.f32.mrf.mxu0  ;;  %v4573_v32 = vsel %vm4445_vm0, %v4365_v53, %v4509_v45  ;;  %v4371_v23 = vadd.f32 %v4370_v51, %v4258_v42 }
 0x2d2   : > { %v4372_v22 = vpop.f32.mrf.mxu1  ;;  %v4262_v10 = vadd.f32 %v4261_v19, %v4149_v58  ;;  %v10351_v50 = vpack.c.bf16 %v4573_v32, %v4569_v57  ;;  %v7777_v58 = vld [vmem:[%s10977_s5 + $0x2d8] ss:$12 sps:$4 sm:$0xff]   ;;  %v4161_v32 = vadd.f32 %v10242_v30, %v4048_v63  ;;  %v7780_v30 = vld [vmem:[%s10977_s5 + $0x200] ss:$12 sps:$4 sm:$0xff]   ;;  %v4058_v63 = vadd.f32 %v10254_v5, %v10189_v29  ;;  %v7782_v5 = vld [vmem:[%s10977_s5 + $0x1e8] ss:$12 sps:$4 sm:$0xff]  }
 0x2d3   : > { %v4373_v4 = vadd.f32 %v4372_v22, %v4260_v12  ;;  %v4263_v41 = vpop.f32.mrf.mxu0  ;;  %v4574_v52 = vsel %vm4446_vm3, %v4367_v16, %v4510_v17  ;;  %v4513_v51 = vmul.f32 0.01, %v4371_v23  ;;  %vm4449_vm6 = vcmp.gt.f32.partialorder %v4371_v23, 0.0 }
 0x2d4   : > { %v4374_v60 = vpop.f32.mrf.mxu1  ;;  %v4264_v62 = vadd.f32 %v4263_v41, %v4151_v47  ;;  %v10346_v61 = vpack.c.bf16 %v4574_v52, %v4570_v48 }
 0x2d5   : > { %v4375_v31 = vadd.f32 %v4374_v60, %v4262_v10  ;;  %v4267_v53 = vpop.f32.mrf.mxu0  ;;  %v4514_v45 = vmul.f32 0.01, %v4373_v4  ;;  %vm4450_vm5 = vcmp.gt.f32.partialorder %v4373_v4, 0.0  ;;  %v4577_v60 = vsel %vm4449_vm6, %v4371_v23, %v4513_v51 }
 0x2d6   : > { %v4376_v55 = vpop.f32.mrf.mxu1  ;;  %5465 = vmatprep.mubr.bf16.mxu1 %v10346_v61  ;;  %v4268_v12 = vadd.f32 %v4267_v53, %v10232_v21  ;;  %v4056_v21 = vadd.f32 %v10250_v1, %v10182_v2 }
 0x2d7   : > { %vm4453_vm4 = vcmp.gt.f32.partialorder %v4375_v31, 0.0  ;;  %v4517_v16 = vmul.f32 0.01, %v4375_v31  ;;  %v4377_v37 = vadd.f32 %v4376_v55, %v4264_v62  ;;  %5466 = vmatmul.mubr.bf16.vlgmr.msra.gmra.mxu1 %v10351_v50  ;;  %v4269_v42 = vpop.f32.mrf.mxu0  ;;  %v4578_v52 = vsel %vm4450_vm5, %v4373_v4, %v4514_v45  ;;  %v7781_v4 = vld [vmem:[%s10977_s5 + $0x2a8] ss:$12 sps:$4 sm:$0xff]  }
 0x2d8   : > { %v4380_v17 = vpop.f32.mrf.mxu1  ;;  %7082 = vmatpush3.bf16.msra.mxu1 %v7776_v24  ;;  %v4270_v35 = vadd.f32 %v4269_v42, %v10236_v59  ;;  %v4169_v23 = vadd.f32 %v10256_v13, %v4056_v21 }
 0x2d9   : > { %vm4454_vm7 = vcmp.gt.f32.partialorder %v4377_v37, 0.0  ;;  %v4518_v19 = vmul.f32 0.01, %v4377_v37  ;;  %v4271_v47 = vpop.f32.mrf.mxu0  ;;  %7083 = vmatprep.subr.bf16.mxu1 %v7777_v58  ;;  %v4581_v59 = vsel %vm4453_vm4, %v4375_v31, %v4517_v16  ;;  %v4381_v62 = vadd.f32 %v4380_v17, %v4268_v12 }
 0x2da   : > { %v4382_v22 = vpop.f32.mrf.mxu1  ;;  %v4272_v10 = vadd.f32 %v4271_v47, %v4159_v0  ;;  %v10379_v1 = vpack.c.bf16 %v4581_v59, %v4577_v60  ;;  %v4171_v47 = vadd.f32 %v10258_v39, %v4058_v63  ;;  %v7784_v39 = vld [vmem:[%s10977_s5 + $0x1d0] ss:$12 sps:$4 sm:$0xff]  }
 0x2db   : > { %v4383_v41 = vadd.f32 %v4382_v22, %v4270_v35  ;;  %v4273_v48 = vpop.f32.mrf.mxu0  ;;  %v4582_v57 = vsel %vm4454_vm7, %v4377_v37, %v4518_v19  ;;  %v4521_v51 = vmul.f32 0.01, %v4381_v62  ;;  %vm4457_vm10 = vcmp.gt.f32.partialorder %v4381_v62, 0.0  ;;  %v7783_v19 = vld [vmem:[%s10977_s5 + $0x290] ss:$12 sps:$4 sm:$0xff]  }
 0x2dc   : > { %v4384_v24 = vpop.f32.mrf.mxu1  ;;  %v4274_v53 = vadd.f32 %v4273_v48, %v4161_v32  ;;  %v10374_v58 = vpack.c.bf16 %v4582_v57, %v4578_v52  ;;  %7084 = vmatpush3.bf16.msra.mxu1 %v7778_v38 }
 0x2dd   : > { %v4385_v31 = vadd.f32 %v4384_v24, %v4272_v10  ;;  %v4277_v0 = vpop.f32.mrf.mxu0  ;;  %7085 = vmatprep.subr.bf16.mxu1 %v7779_v33  ;;  %v4522_v45 = vmul.f32 0.01, %v4383_v41  ;;  %vm4458_vm9 = vcmp.gt.f32.partialorder %v4383_v41, 0.0  ;;  %v4585_v48 = vsel %vm4457_vm10, %v4381_v62, %v4521_v51 }
 0x2de   : > { %v4386_v55 = vpop.f32.mrf.mxu1  ;;  %5475 = vmatprep.mubr.bf16.mxu1 %v10374_v58  ;;  %v4278_v12 = vadd.f32 %v4277_v0, %v10248_v34  ;;  %v4066_v34 = vadd.f32 %v10266_v28, %v10182_v2 }
 0x2df   : > { %vm4461_vm8 = vcmp.gt.f32.partialorder %v4385_v31, 0.0  ;;  %v4525_v16 = vmul.f32 0.01, %v4385_v31  ;;  %v4387_v37 = vadd.f32 %v4386_v55, %v4274_v53  ;;  %5476 = vmatmul.mubr.bf16.gmra.mxu1 %v10379_v1  ;;  %v4279_v42 = vpop.f32.mrf.mxu0  ;;  %v4586_v22 = vsel %vm4458_vm9, %v4383_v41, %v4522_v45  ;;  %v7785_v41 = vld [vmem:[%s10977_s5 + $0x278] ss:$12 sps:$4 sm:$0xff]  }
 0x2e0   : > { %v4390_v17 = vpop.f32.mrf.mxu1  ;;  %v4280_v13 = vadd.f32 %v4279_v42, %v10252_v20  ;;  %7086 = vmatpush3.bf16.msra.mxu1 %v7780_v30  ;;  %v4179_v62 = vadd.f32 %v10272_v26, %v4066_v34 }
 0x2e1   : > { %vm4462_vm11 = vcmp.gt.f32.partialorder %v4387_v37, 0.0  ;;  %v4526_v35 = vmul.f32 0.01, %v4387_v37  ;;  %v4281_v38 = vpop.f32.mrf.mxu0  ;;  %7087 = vmatprep.subr.bf16.mxu1 %v7781_v4  ;;  %v4589_v20 = vsel %vm4461_vm8, %v4385_v31, %v4525_v16  ;;  %v4391_v52 = vadd.f32 %v4390_v17, %v4278_v12  ;;  %v7787_v12 = vld [vmem:[%s10977_s5 + $0x260] ss:$12 sps:$4 sm:$0xff]  }
 0x2e2   : > { %v4392_v33 = vpop.f32.mrf.mxu1  ;;  %v4282_v32 = vadd.f32 %v4281_v38, %v4169_v23  ;;  %v10407_v28 = vpack.c.bf16 %v4589_v20, %v4585_v48  ;;  %v4068_v31 = vadd.f32 %v10270_v36, %v10189_v29  ;;  %v7786_v36 = vld [vmem:[%s10977_s5 + $0x1b8] ss:$12 sps:$4 sm:$0xff]  }
 0x2e3   : > { %v4393_v21 = vadd.f32 %v4392_v33, %v4280_v13  ;;  %v4283_v59 = vpop.f32.mrf.mxu0  ;;  %v4590_v10 = vsel %vm4462_vm11, %v4387_v37, %v4526_v35  ;;  %v4529_v45 = vmul.f32 0.01, %v4391_v52  ;;  %vm4465_vm14 = vcmp.gt.f32.partialorder %v4391_v52, 0.0 }
 0x2e4   : > { %v4394_v57 = vpop.f32.mrf.mxu1  ;;  %v4284_v60 = vadd.f32 %v4283_v59, %v4171_v47  ;;  %v10402_v24 = vpack.c.bf16 %v4590_v10, %v4586_v22  ;;  %7088 = vmatpush3.bf16.msra.mxu1 %v7782_v5  ;;  %v4181_v17 = vadd.f32 %v10274_v49, %v4068_v31  ;;  %v7788_v49 = vld [vmem:[%s10977_s5 + $0x1a0] ss:$12 sps:$4 sm:$0xff]  }
 0x2e5   : > { %v4395_v53 = vadd.f32 %v4394_v57, %v4282_v32  ;;  %v4287_v30 = vpop.f32.mrf.mxu0  ;;  %7089 = vmatprep.subr.bf16.mxu1 %v7783_v19  ;;  %v4530_v4 = vmul.f32 0.01, %v4393_v21  ;;  %vm4466_vm13 = vcmp.gt.f32.partialorder %v4393_v21, 0.0  ;;  %v4593_v34 = vsel %vm4465_vm14, %v4391_v52, %v4529_v45 }
 0x2e6   : > { %v4396_v0 = vpop.f32.mrf.mxu1  ;;  %5485 = vmatprep.mubr.bf16.mxu1 %v10402_v24  ;;  %v4288_v16 = vadd.f32 %v4287_v30, %v10264_v15  ;;  %v4076_v15 = vadd.f32 %v10282_v11, %v10182_v2  ;;  %v4078_v52 = vadd.f32 %v10286_v7, %v10189_v29  ;;  %v7790_v7 = vld [vmem:[%s10977_s5 + $0x188] ss:$12 sps:$4 sm:$0xff]  }
 0x2e7   : > { %vm4469_vm12 = vcmp.gt.f32.partialorder %v4395_v53, 0.0  ;;  %v4533_v23 = vmul.f32 0.01, %v4395_v53  ;;  %v4397_v63 = vadd.f32 %v4396_v0, %v4284_v60  ;;  %5486 = vmatmul.mubr.bf16.gmra.mxu1 %v10407_v28  ;;  %v4289_v55 = vpop.f32.mrf.mxu0  ;;  %v4594_v19 = vsel %vm4466_vm13, %v4393_v21, %v4530_v4  ;;  %v7789_v21 = vld [vmem:[%s10977_s5 + $0x248] ss:$12 sps:$4 sm:$0xff]  }
 0x2e8   : > { %v4400_v37 = vpop.f32.mrf.mxu1  ;;  %v4290_v26 = vadd.f32 %v4289_v55, %v10268_v18  ;;  %7090 = vmatpush3.bf16.msra.mxu1 %v7784_v39  ;;  %v4189_v48 = vadd.f32 %v10288_v14, %v4076_v15 }
 0x2e9   : > { %vm4470_vm15 = vcmp.gt.f32.partialorder %v4397_v63, 0.0  ;;  %v4534_v42 = vmul.f32 0.01, %v4397_v63  ;;  %v4291_v51 = vpop.f32.mrf.mxu0  ;;  %7091 = vmatprep.subr.bf16.mxu1 %v7785_v41  ;;  %v4597_v18 = vsel %vm4469_vm12, %v4395_v53, %v4533_v23  ;;  %v4401_v20 = vadd.f32 %v4400_v37, %v4288_v16 }
 0x2ea   : > { %v4402_v13 = vpop.f32.mrf.mxu1  ;;  %v4292_v5 = vadd.f32 %v4291_v51, %v4179_v62  ;;  %v10435_v11 = vpack.c.bf16 %v4597_v18, %v4593_v34  ;;  %v4191_v23 = vadd.f32 %v10290_v6, %v4078_v52 }
 0x2eb   : > { %v4403_v35 = vadd.f32 %v4402_v13, %v4290_v26  ;;  %v4293_v38 = vpop.f32.mrf.mxu0  ;;  %v4598_v47 = vsel %vm4470_vm15, %v4397_v63, %v4534_v42  ;;  %v4537_v41 = vmul.f32 0.01, %v4401_v20  ;;  %vm4473_vm2 = vcmp.gt.f32.partialorder %v4401_v20, 0.0 }
 0x2ec   : > { %v4404_v33 = vpop.f32.mrf.mxu1  ;;  %v4294_v32 = vadd.f32 %v4293_v38, %v4181_v17  ;;  %v10430_v59 = vpack.c.bf16 %v4598_v47, %v4594_v19  ;;  %7092 = vmatpush3.bf16.msra.mxu1 %v7786_v36  ;;  %v4086_v63 = vadd.f32 %v10298_v46, %v10182_v2  ;;  %v4088_v13 = vadd.f32 %v10302_v56, %v10189_v29 }
 0x2ed   : > { %v4405_v22 = vadd.f32 %v4404_v33, %v4292_v5  ;;  %v4297_v10 = vpop.f32.mrf.mxu0  ;;  %7093 = vmatprep.subr.bf16.mxu1 %v7787_v12  ;;  %v4538_v60 = vmul.f32 0.01, %v4403_v35  ;;  %vm4474_vm1 = vcmp.gt.f32.partialorder %v4403_v35, 0.0  ;;  %v4601_v36 = vsel %vm4473_vm2, %v4401_v20, %v4537_v41 }
 0x2ee   : > { %v4406_v57 = vpop.f32.mrf.mxu1  ;;  %5495 = vmatprep.mubr.bf16.mxu1 %v10430_v59  ;;  %v4298_v62 = vadd.f32 %v4297_v10, %v10280_v43  ;;  %v4199_v18 = vadd.f32 %v10304_v54, %v4086_v63 }
 0x2ef   : > { %vm4477_vm0 = vcmp.gt.f32.partialorder %v4405_v22, 0.0  ;;  %v4541_v39 = vmul.f32 0.01, %v4405_v22  ;;  %v4407_v53 = vadd.f32 %v4406_v57, %v4294_v32  ;;  %5496 = vmatmul.mubr.bf16.gmra.mxu1 %v10435_v11  ;;  %v4299_v30 = vpop.f32.mrf.mxu0  ;;  %v4602_v37 = vsel %vm4474_vm1, %v4403_v35, %v4538_v60 }
 0x2f0   : > { %v4410_v31 = vpop.f32.mrf.mxu1  ;;  %v4300_v14 = vadd.f32 %v4299_v30, %v10284_v40  ;;  %7094 = vmatpush3.bf16.msra.mxu1 %v7788_v49  ;;  %v4201_v49 = vadd.f32 %v10306_v25, %v4088_v13 }
 0x2f1   : > { %vm4478_vm3 = vcmp.gt.f32.partialorder %v4407_v53, 0.0  ;;  %v4542_v0 = vmul.f32 0.01, %v4407_v53  ;;  %v4301_v4 = vpop.f32.mrf.mxu0  ;;  %7095 = vmatprep.subr.bf16.mxu1 %v7789_v21  ;;  %v4605_v43 = vsel %vm4477_vm0, %v4405_v22, %v4541_v39  ;;  %v4411_v42 = vadd.f32 %v4410_v31, %v4298_v62 }
 0x2f2   : > { %v4412_v55 = vpop.f32.mrf.mxu1  ;;  %v4302_v45 = vadd.f32 %v4301_v4, %v4189_v48  ;;  %v10457_v6 = vpack.c.bf16 %v4605_v43, %v4601_v36  ;;  %v4096_v22 = vadd.f32 %v10314_v3, %v10182_v2  ;;  %v4098_v3 = vadd.f32 %v10318_v9, %v10189_v29  ;;  %v11106_v43 = vld [vmem:[#allocation10_spill] sm:$0xff] }
 0x2f3   : > { %v4413_v40 = vadd.f32 %v4412_v55, %v4300_v14  ;;  %v4303_v16 = vpop.f32.mrf.mxu0  ;;  %v4606_v26 = vsel %vm4478_vm3, %v4407_v53, %v4542_v0  ;;  %v4545_v34 = vmul.f32 0.01, %v4411_v42  ;;  %vm4481_vm6 = vcmp.gt.f32.partialorder %v4411_v42, 0.0 }
 0x2f4   : > { %v4414_v51 = vpop.f32.mrf.mxu1  ;;  %v4304_v12 = vadd.f32 %v4303_v16, %v4191_v23  ;;  %v10455_v17 = vpack.c.bf16 %v4606_v26, %v4602_v37  ;;  %7096 = vmatpush3.bf16.msra.mxu1 %v7790_v7  ;;  %v4209_v2 = vadd.f32 %v10322_v8, %v4096_v22  ;;  %v11108_v16 = vld [vmem:[#allocation11_spill] sm:$0xff] }
 0x2f5   : > { %v4415_v15 = vadd.f32 %v4414_v51, %v4302_v45  ;;  %v4307_v46 = vpop.f32.mrf.mxu0  ;;  %v4546_v35 = vmul.f32 0.01, %v4413_v40  ;;  %vm4482_vm5 = vcmp.gt.f32.partialorder %v4413_v40, 0.0  ;;  %v4609_v39 = vsel %vm4481_vm6, %v4411_v42, %v4545_v34 }
 0x2f6   : > { %v4416_v5 = vpop.f32.mrf.mxu1  ;;  %5505 = vmatprep.mubr.bf16.mxu1 %v10455_v17  ;;  %v4308_v20 = vadd.f32 %v4307_v46, %v10296_v27  ;;  %v4211_v37 = vadd.f32 %v11108_v16, %v4098_v3  ;;  %v7800_v3 = vld [vmem:[%s10979_s7 + $0x18] sm:$0xff]   ;;  %v7809_v16 = vld [vmem:[%s10979_s7 + $0xa8] sm:$0xff]  }
 0x2f7   : > { %vm4485_vm4 = vcmp.gt.f32.partialorder %v4415_v15, 0.0  ;;  %v4549_v38 = vmul.f32 0.01, %v4415_v15  ;;  %v4417_v19 = vadd.f32 %v4416_v5, %v4304_v12  ;;  %5506 = vmatmul.mubr.bf16.gmra.mxu1 %v10457_v6  ;;  %v4309_v47 = vpop.f32.mrf.mxu0  ;;  %v4610_v60 = vsel %vm4482_vm5, %v4413_v40, %v4546_v35  ;;  %v11107_v40 = vld [vmem:[#allocation9_spill] sm:$0xff] }
 0x2f8   : > { %v4420_v33 = vpop.f32.mrf.mxu1  ;;  %v4310_v54 = vadd.f32 %v4309_v47, %v10300_v44 }
 0x2f9   : > { %vm4486_vm7 = vcmp.gt.f32.partialorder %v4417_v19, 0.0  ;;  %v4550_v56 = vmul.f32 0.01, %v4417_v19  ;;  %v4311_v32 = vpop.f32.mrf.mxu0  ;;  %v4613_v10 = vsel %vm4485_vm4, %v4415_v15, %v4549_v38  ;;  %v4421_v53 = vadd.f32 %v4420_v33, %v4308_v20 }
 0x2fa   : > { %v4422_v21 = vpop.f32.mrf.mxu1  ;;  %v4312_v48 = vadd.f32 %v4311_v32, %v4199_v18  ;;  %v10472_v62 = vpack.c.bf16 %v4613_v10, %v4609_v39  ;;  %v7791_v32 = vld [vmem:[%s10979_s7 + $0x78] sm:$0xff]  }
 0x2fb   : > { %v4423_v52 = vadd.f32 %v4422_v21, %v4310_v54  ;;  %v4313_v57 = vpop.f32.mrf.mxu0  ;;  %v4614_v27 = vsel %vm4486_vm7, %v4417_v19, %v4550_v56  ;;  %v4553_v63 = vmul.f32 0.01, %v4421_v53  ;;  %vm4489_vm10 = vcmp.gt.f32.partialorder %v4421_v53, 0.0  ;;  %7145 = vmatprep.subr.bf16.mxu0 %v7791_v32 }
 0x2fc   : > { %v4424_v44 = vpop.f32.mrf.mxu1  ;;  %v4314_v30 = vadd.f32 %v4313_v57, %v4201_v49  ;;  %v10470_v41 = vpack.c.bf16 %v4614_v27, %v4610_v60  ;;  %v7792_v49 = vld [vmem:[%s10979_s7 + $0x38] sm:$0xff]   ;;  %v7793_v60 = vld [vmem:[%s10979_s7 + $0x70] sm:$0xff]  }
 0x2fd   : > { %v4425_v25 = vadd.f32 %v4424_v44, %v4312_v48  ;;  %v4317_v31 = vpop.f32.mrf.mxu0  ;;  %v4554_v7 = vmul.f32 0.01, %v4423_v52  ;;  %vm4490_vm9 = vcmp.gt.f32.partialorder %v4423_v52, 0.0  ;;  %v4617_v18 = vsel %vm4489_vm10, %v4421_v53, %v4553_v63  ;;  %7146 = vmatpush3.bf16.msra.mxu0 %v7792_v49  ;;  %v7794_v27 = vld [vmem:[%s10979_s7 + $0x30] sm:$0xff]   ;;  %v7795_v53 = vld [vmem:[%s10979_s7 + $0x68] sm:$0xff]   ;;  %v7805_v63 = vld [vmem:[%s10979_s7 + $0x40] sm:$0xff]  }
 0x2fe   : > { %v4426_v14 = vpop.f32.mrf.mxu1  ;;  %5515 = vmatprep.mubr.bf16.mxu1 %v10470_v41  ;;  %v4318_v55 = vadd.f32 %v4317_v31, %v11106_v43  ;;  %7147 = vmatprep.subr.bf16.mxu0 %v7793_v60  ;;  %v7796_v44 = vld [vmem:[%s10979_s7 + $0x28] sm:$0xff]   ;;  %v11109_v49 = vld [vmem:[#allocation8_spill] sm:$0xff] }
 0x2ff   : > { %vm4493_vm8 = vcmp.gt.f32.partialorder %v4425_v25, 0.0  ;;  %v4557_v0 = vmul.f32 0.01, %v4425_v25  ;;  %v4427_v4 = vadd.f32 %v4426_v14, %v4314_v30  ;;  %5516 = vmatmul.mubr.bf16.gmra.mxu1 %v10472_v62  ;;  %v4319_v23 = vpop.f32.mrf.mxu0  ;;  %v4618_v15 = vsel %vm4490_vm9, %v4423_v52, %v4554_v7 }
 0x300   : > { %v4430_v45 = vpop.f32.mrf.mxu1  ;;  %v4320_v8 = vadd.f32 %v4319_v23, %v11107_v40 }
 0x301   : > { %vm4494_vm11 = vcmp.gt.f32.partialorder %v4427_v4, 0.0  ;;  %v4558_v29 = vmul.f32 0.01, %v4427_v4  ;;  %v4321_v9 = vpop.f32.mrf.mxu0  ;;  %v4621_v26 = vsel %vm4493_vm8, %v4425_v25, %v4557_v0  ;;  %v4431_v13 = vadd.f32 %v4430_v45, %v4318_v55  ;;  %7148 = vmatpush3.bf16.msra.mxu0 %v7794_v27  ;;  %v7797_v25 = vld [vmem:[%s10979_s7 + $0x60] sm:$0xff]   ;;  %v7803_v0 = vld [vmem:[%s10979_s7 + $0x48] sm:$0xff]  }
 0x302   : > { %v4432_v36 = vpop.f32.mrf.mxu1  ;;  %v4322_v42 = vadd.f32 %v4321_v9, %v4209_v2  ;;  %v10484_v19 = vpack.c.bf16 %v4621_v26, %v4617_v18  ;;  %7149 = vmatprep.subr.bf16.mxu0 %v7795_v53  ;;  %v7799_v2 = vld [vmem:[%s10979_s7 + $0x58] sm:$0xff]   ;;  %v7810_v26 = vld [vmem:[%s10979_s7 + $0xa0] sm:$0xff]  }
 0x303   : > { %v4433_v51 = vadd.f32 %v4432_v36, %v4320_v8  ;;  %v4323_v12 = vpop.f32.mrf.mxu0  ;;  %v4622_v46 = vsel %vm4494_vm11, %v4427_v4, %v4558_v29  ;;  %v4561_v56 = vmul.f32 0.01, %v4431_v13  ;;  %vm4497_vm14 = vcmp.gt.f32.partialorder %v4431_v13, 0.0  ;;  %v7804_v4 = vld [vmem:[%s10979_s7 + $0x8] sm:$0xff]  }
 0x304   : > { %v4434_v5 = vpop.f32.mrf.mxu1  ;;  %v4324_v35 = vadd.f32 %v4323_v12, %v4211_v37  ;;  %v10482_v38 = vpack.c.bf16 %v4622_v46, %v4618_v15  ;;  %v7812_v12 = vld [vmem:[%s10979_s7 + $0x90] sm:$0xff]   ;;  %v7813_v46 = vld [vmem:[%s10979_s7 + $0x88] sm:$0xff]  }
 0x305   : > { %v4435_v47 = vadd.f32 %v4434_v5, %v4322_v42  ;;  %v4562_v20 = vmul.f32 0.01, %v4433_v51  ;;  %vm4498_vm13 = vcmp.gt.f32.partialorder %v4433_v51, 0.0  ;;  %v4625_v52 = vsel %vm4497_vm14, %v4431_v13, %v4561_v56  ;;  %7150 = vmatpush3.bf16.msra.mxu0 %v7796_v44  ;;  %v7811_v42 = vld [vmem:[%s10979_s7 + $0x98] sm:$0xff]   ;;  %v7814_v13 = vld [vmem:[%s10979_s7 + $0x80] sm:$0xff]  }
 0x306   : > { %v4436_v34 = vpop.f32.mrf.mxu1  ;;  %5525 = vmatprep.mubr.bf16.mxu1 %v10482_v38  ;;  %7151 = vmatprep.subr.bf16.mxu0 %v7797_v25  ;;  %v10641_v56 = vld [vmem:[%s10978_s6] sm:$0x7] }
 0x307   : > { %vm4501_vm12 = vcmp.gt.f32.partialorder %v4435_v47, 0.0  ;;  %v4565_v33 = vmul.f32 0.01, %v4435_v47  ;;  %v4437_v54 = vadd.f32 %v4436_v34, %v4324_v35  ;;  %5526 = vmatmul.mubr.bf16.gmra.mxu1 %v10484_v19  ;;  %v4626_v21 = vsel %vm4498_vm13, %v4433_v51, %v4562_v20 }
 0x309   : > { %vm4502_vm15 = vcmp.gt.f32.partialorder %v4437_v54, 0.0  ;;  %v4566_v22 = vmul.f32 0.01, %v4437_v54  ;;  %v4629_v10 = vsel %vm4501_vm12, %v4435_v47, %v4565_v33 }
 0x30a   : > { %v4661_v39 = vpack.c.bf16 %v4629_v10, %v4625_v52  ;;  %v11110_v10 = vld [vmem:[#allocation6_spill] sm:$0xff] }
 0x30b   : > { %v4630_v48 = vsel %vm4502_vm15, %v4437_v54, %v4566_v22  ;;  %v10647_v22 = vrot.slane %v10641_v56, %v11109_v49 }
 0x30c   : > { %v4662_v57 = vpack.c.bf16 %v4630_v48, %v4626_v21  ;;  %v10651_v21 = vrot.slane %v10641_v56, %v11110_v10 }
 0x30e   : > { %5535 = vmatprep.mubr.bf16.mxu1 %v4662_v57 }
 0x30f   : > { %5536 = vmatmul.mubr.bf16.gmra.mxu1 %v4661_v39  ;;  %v10507_v30 = vpop.f32.mrf.mxu0 }
 0x310   : > { %5675 = vmatprep.mubr.bf16.mxu1 %v10346_v61  ;;  %v7798_v61 = vld [vmem:[%s10979_s7 + $0x20] sm:$0xff]   ;;  %v5355_v60 = vadd.f32 %v10507_v30, %v10651_v21 }
 0x311   : > { %v10516_v31 = vpop.f32.mrf.mxu0  ;;  %7152 = vmatpush3.bf16.msra.mxu0 %v7798_v61 }
 0x312   : > { %7153 = vmatprep.subr.bf16.mxu0 %v7799_v2 }
 0x313   : > { %v10525_v14 = vpop.f32.mrf.mxu0 }
 0x315   : > { %7154 = vmatpush3.bf16.msra.mxu0 %v7800_v3  ;;  %v10533_v7 = vpop.f32.mrf.mxu0 }
 0x316   : > { %v5361_v2 = vadd.f32 %v10533_v7, %v10647_v22 }
 0x317   : > { %5676 = vmatmul.mubr.bf16.vlgmr.msra.gmra.mxu1 %v10351_v50  ;;  %v7801_v50 = vld [vmem:[%s10979_s7 + $0x50] sm:$0xff]   ;;  %v10543_v23 = vpop.f32.mrf.mxu0 }
 0x318   : > { %5683 = vmatprep.mubr.bf16.mxu1 %v10374_v58  ;;  %v7802_v58 = vld [vmem:[%s10979_s7 + $0x10] sm:$0xff]   ;;  %7155 = vmatprep.subr.bf16.mxu0 %v7801_v50  ;;  %v5365_v7 = vadd.f32 %v10543_v23, %v10651_v21 }
 0x319   : > { %7156 = vmatpush3.bf16.msra.mxu0 %v7802_v58 }
 0x31a   : > { %7157 = vmatprep.subr.bf16.mxu0 %v7803_v0 }
 0x31d   : > { %7158 = vmatpush3.bf16.msra.mxu0 %v7804_v4 }
 0x31e   : > { %7159 = vmatprep.subr.bf16.mxu0 %v7805_v63 }
 0x31f   : > { %5684 = vmatmul.mubr.bf16.gmra.mxu1 %v10379_v1  ;;  %v7806_v1 = vld [vmem:[%s10979_s7] sm:$0xff]  }
 0x320   : > { %5691 = vmatprep.mubr.bf16.mxu1 %v10402_v24  ;;  %v10551_v24 = vpop.f32.mrf.mxu0 }
 0x321   : > { %7160 = vmatpush3.bf16.msra.mxu0 %v7806_v1 }
 0x322   : > { %v10555_v43 = vpop.f32.mrf.mxu0 }
 0x324   : > { %v10557_v55 = vpop.f32.mrf.mxu0 }
 0x326   : > { %v10561_v45 = vpop.f32.mrf.mxu0 }
 0x327   : > { %5692 = vmatmul.mubr.bf16.gmra.mxu1 %v10407_v28 }
 0x328   : > { %5699 = vmatprep.mubr.bf16.mxu1 %v10430_v59  ;;  %v10563_v40 = vpop.f32.mrf.mxu0 }
 0x32a   : > { %v10567_v28 = vpop.f32.mrf.mxu0 }
 0x32c   : > { %v10569_v8 = vpop.f32.mrf.mxu0 }
 0x32e   : > { %v10573_v59 = vpop.f32.mrf.mxu0 }
 0x32f   : > { %5700 = vmatmul.mubr.bf16.gmra.mxu1 %v10435_v11 }
 0x330   : > { %5707 = vmatprep.mubr.bf16.mxu1 %v10455_v17  ;;  %v10575_v11 = vpop.f32.mrf.mxu0  ;;  %v7807_v17 = vld [vmem:[%s10979_s7 + $0xb8] sm:$0xff]  }
 0x331   : > { %7225 = vmatprep.subr.bf16.mxu1 %v7807_v17 }
 0x332   : > { %7226 = vmatpush3.bf16.msra.mxu1 %v7807_v17 }
 0x337   : > { %5708 = vmatmul.mubr.bf16.gmra.mxu1 %v10457_v6  ;;  %v10581_v6 = vpop.f32.mrf.mxu0 }
 0x338   : > { %5715 = vmatprep.mubr.bf16.mxu1 %v10470_v41 }
 0x339   : > { %v10583_v41 = vpop.f32.mrf.mxu0 }
 0x33b   : > { %v10588_v29 = vpop.f32.mrf.mxu0 }
 0x33d   : > { %v10590_v9 = vpop.f32.mrf.mxu0 }
 0x33f   : > { %5716 = vmatmul.mubr.bf16.gmra.mxu1 %v10472_v62  ;;  %v7808_v62 = vld [vmem:[%s10979_s7 + $0xb0] sm:$0xff]   ;;  %v10595_v37 = vpop.f32.mrf.mxu0 }
 0x340   : > { %5723 = vmatprep.mubr.bf16.mxu1 %v10482_v38  ;;  %7227 = vmatprep.subr.bf16.mxu1 %v7808_v62 }
 0x341   : > { %7228 = vmatpush3.bf16.msra.mxu1 %v7808_v62  ;;  %v10600_v36 = vpop.f32.mrf.mxu0 }
 0x342   : > { %7229 = vmatprep.subr.bf16.mxu1 %v7809_v16 }
 0x343   : > { %v10605_v51 = vpop.f32.mrf.mxu0 }
 0x345   : > { %7230 = vmatpush3.bf16.msra.mxu1 %v7809_v16  ;;  %v10610_v15 = vpop.f32.mrf.mxu0  ;;  %v5369_v16 = vadd.f32 %v10555_v43, %v10651_v21 }
 0x346   : > { %7231 = vmatprep.subr.bf16.mxu1 %v7810_v26 }
 0x347   : > { %5724 = vmatmul.mubr.bf16.gmra.mxu1 %v10484_v19  ;;  %v10615_v18 = vpop.f32.mrf.mxu0 }
 0x348   : > { %5731 = vmatprep.mubr.bf16.mxu1 %v4662_v57  ;;  %v5357_v57 = vadd.f32 %v10516_v31, %v10647_v22 }
 0x349   : > { %7232 = vmatpush3.bf16.msra.mxu1 %v7810_v26  ;;  %v10620_v5 = vpop.f32.mrf.mxu0 }
 0x34a   : > { %7233 = vmatprep.subr.bf16.mxu1 %v7811_v42 }
 0x34b   : > { %v10622_v35 = vpop.f32.mrf.mxu0 }
 0x34d   : > { %7234 = vmatpush3.bf16.msra.mxu1 %v7811_v42  ;;  %v10624_v38 = vpop.f32.mrf.mxu0 }
 0x34e   : > { %7235 = vmatprep.subr.bf16.mxu1 %v7812_v12 }
 0x34f   : > { %5732 = vmatmul.mubr.bf16.gmra.mxu1 %v4661_v39  ;;  %v10626_v19 = vpop.f32.mrf.mxu0  ;;  %v5359_v39 = vadd.f32 %v10525_v14, %v10651_v21  ;;  %v5367_v14 = vadd.f32 %v10551_v24, %v10647_v22 }
 0x351   : > { %7236 = vmatpush3.bf16.msra.mxu1 %v7812_v12  ;;  %v10628_v47 = vpop.f32.mrf.mxu0 }
 0x352   : > { %7237 = vmatprep.subr.bf16.mxu1 %v7813_v46 }
 0x353   : > { %v10630_v34 = vpop.f32.mrf.mxu0 }
 0x355   : > { %7238 = vmatpush3.bf16.msra.mxu1 %v7813_v46  ;;  %v10632_v20 = vpop.f32.mrf.mxu0 }
 0x356   : > { %7239 = vmatprep.subr.bf16.mxu1 %v7814_v13 }
 0x357   : > { %v10634_v33 = vpop.f32.mrf.mxu0 }
 0x359   : > { %7240 = vmatpush3.bf16.msra.mxu1 %v7814_v13  ;;  %v10636_v54 = vpop.f32.mrf.mxu0 }
 0x35b   : > { %v10643_v32 = vpop.f32.mrf.mxu0 }
 0x35d   : > { %v10653_v48 = vpop.f32.mrf.mxu0 }
 0x35f   : > { %v10661_v44 = vpop.f32.mrf.mxu0 }
 0x361   : > { %v10665_v4 = vpop.f32.mrf.mxu0 }
 0x363   : > { %v10673_v46 = vpop.f32.mrf.mxu0 }
 0x397   : > { %v5467_v52 = vpop.f32.mrf.mxu1 }
 0x398   : > { %v5468_v25 = vadd.f32 %v5467_v52, %v5355_v60  ;;  %v5371_v52 = vadd.f32 %v10557_v55, %v10647_v22 }
 0x399   : > { %v5469_v27 = vpop.f32.mrf.mxu1 }
 0x39a   : > { %v5470_v53 = vadd.f32 %v5469_v27, %v5357_v57  ;;  %v5788_v30 = vmul.f32 0.01, %v5468_v25  ;;  %vm5740_vm2 = vcmp.gt.f32.partialorder %v5468_v25, 0.0 }
 0x39b   : > { %v5471_v61 = vpop.f32.mrf.mxu1 }
 0x39c   : > { %v5472_v3 = vadd.f32 %v5471_v61, %v5359_v39  ;;  %v5789_v58 = vmul.f32 0.01, %v5470_v53  ;;  %vm5741_vm1 = vcmp.gt.f32.partialorder %v5470_v53, 0.0  ;;  %v5836_v13 = vsel %vm5740_vm2, %v5468_v25, %v5788_v30 }
 0x39d   : > { %v5473_v50 = vpop.f32.mrf.mxu1 }
 0x39e   : > { %vm5743_vm0 = vcmp.gt.f32.partialorder %v5472_v3, 0.0  ;;  %v5791_v31 = vmul.f32 0.01, %v5472_v3  ;;  %v5474_v0 = vadd.f32 %v5473_v50, %v5361_v2  ;;  %v5837_v42 = vsel %vm5741_vm1, %v5470_v53, %v5789_v58  ;;  %v10677_v53 = vpop.f32.mrf.mxu0 }
 0x39f   : > { %v5477_v63 = vpop.f32.mrf.mxu1  ;;  %v5377_v2 = vadd.f32 %v10563_v40, %v10647_v22 }
 0x3a0   : > { %vm5744_vm3 = vcmp.gt.f32.partialorder %v5474_v0, 0.0  ;;  %v5792_v1 = vmul.f32 0.01, %v5474_v0  ;;  %v5839_v17 = vsel %vm5743_vm0, %v5472_v3, %v5791_v31  ;;  %v5478_v49 = vadd.f32 %v5477_v63, %v5365_v7 }
 0x3a1   : > { %v5479_v62 = vpop.f32.mrf.mxu1  ;;  %v5884_v57 = vpack.c.bf16 %v5839_v17, %v5836_v13  ;;  %v5375_v3 = vadd.f32 %v10561_v45, %v10651_v21  ;;  %v5379_v31 = vadd.f32 %v10567_v28, %v10651_v21 }
 0x3a2   : > { %v5480_v26 = vadd.f32 %v5479_v62, %v5367_v14  ;;  %v5840_v12 = vsel %vm5744_vm3, %v5474_v0, %v5792_v1  ;;  %v5794_v61 = vmul.f32 0.01, %v5478_v49  ;;  %vm5746_vm6 = vcmp.gt.f32.partialorder %v5478_v49, 0.0  ;;  %v10685_v14 = vpop.f32.mrf.mxu0 }
 0x3a3   : > { %v5481_v10 = vpop.f32.mrf.mxu1  ;;  %v5885_v24 = vpack.c.bf16 %v5840_v12, %v5837_v42  ;;  %v5381_v62 = vadd.f32 %v10569_v8, %v10647_v22 }
 0x3a4   : > { %v5482_v60 = vadd.f32 %v5481_v10, %v5369_v16  ;;  %v5795_v27 = vmul.f32 0.01, %v5480_v26  ;;  %vm5747_vm5 = vcmp.gt.f32.partialorder %v5480_v26, 0.0  ;;  %v5842_v1 = vsel %vm5746_vm6, %v5478_v49, %v5794_v61 }
 0x3a5   : > { %v5483_v23 = vpop.f32.mrf.mxu1  ;;  %6139 = vmatprep.mubr.bf16.mxu0 %v5885_v24  ;;  %v5387_v24 = vadd.f32 %v10575_v11, %v10647_v22 }
 0x3a6   : > { %vm5749_vm4 = vcmp.gt.f32.partialorder %v5482_v60, 0.0  ;;  %v5797_v39 = vmul.f32 0.01, %v5482_v60  ;;  %v5484_v43 = vadd.f32 %v5483_v23, %v5371_v52  ;;  %6140 = vmatmul.mubr.bf16.vlgmr.msra.gmra.mxu0 %v5884_v57  ;;  %v5843_v30 = vsel %vm5747_vm5, %v5480_v26, %v5795_v27  ;;  %v10689_v26 = vpop.f32.mrf.mxu0 }
 0x3a7   : > { %v5487_v25 = vpop.f32.mrf.mxu1  ;;  %v5385_v52 = vadd.f32 %v10573_v59, %v10651_v21  ;;  %v5389_v23 = vadd.f32 %v10581_v6, %v10651_v21 }
 0x3a8   : > { %vm5750_vm7 = vcmp.gt.f32.partialorder %v5484_v43, 0.0  ;;  %v5798_v55 = vmul.f32 0.01, %v5484_v43  ;;  %v5845_v50 = vsel %vm5749_vm4, %v5482_v60, %v5797_v39  ;;  %v5488_v7 = vadd.f32 %v5487_v25, %v5375_v3  ;;  %v10697_v61 = vpop.f32.mrf.mxu0 }
 0x3a9   : > { %v5489_v58 = vpop.f32.mrf.mxu1  ;;  %v5887_v16 = vpack.c.bf16 %v5845_v50, %v5842_v1  ;;  %v5391_v3 = vadd.f32 %v10583_v41, %v10647_v22 }
 0x3aa   : > { %v5490_v0 = vadd.f32 %v5489_v58, %v5377_v2  ;;  %v5846_v63 = vsel %vm5750_vm7, %v5484_v43, %v5798_v55  ;;  %v5800_v10 = vmul.f32 0.01, %v5488_v7  ;;  %vm5752_vm10 = vcmp.gt.f32.partialorder %v5488_v7, 0.0 }
 0x3ab   : > { %v5491_v17 = vpop.f32.mrf.mxu1  ;;  %v5888_v40 = vpack.c.bf16 %v5846_v63, %v5843_v30 }
 0x3ac   : > { %v5492_v42 = vadd.f32 %v5491_v17, %v5379_v31  ;;  %v5801_v12 = vmul.f32 0.01, %v5490_v0  ;;  %vm5753_vm9 = vcmp.gt.f32.partialorder %v5490_v0, 0.0  ;;  %v5848_v25 = vsel %vm5752_vm10, %v5488_v7, %v5800_v10 }
 0x3ad   : > { %v5493_v45 = vpop.f32.mrf.mxu1  ;;  %6147 = vmatprep.mubr.bf16.mxu0 %v5888_v40  ;;  %v5397_v7 = vadd.f32 %v10590_v9, %v10647_v22  ;;  %v5395_v17 = vadd.f32 %v10588_v29, %v10651_v21 }
 0x3ae   : > { %vm5755_vm8 = vcmp.gt.f32.partialorder %v5492_v42, 0.0  ;;  %v5803_v13 = vmul.f32 0.01, %v5492_v42  ;;  %v5494_v28 = vadd.f32 %v5493_v45, %v5381_v62  ;;  %6148 = vmatmul.mubr.bf16.gmra.mxu0 %v5887_v16  ;;  %v5849_v39 = vsel %vm5753_vm9, %v5490_v0, %v5801_v12  ;;  %v10701_v0 = vpop.f32.mrf.mxu0 }
 0x3af   : > { %v5497_v49 = vpop.f32.mrf.mxu1  ;;  %v5399_v16 = vadd.f32 %v10595_v37, %v10651_v21 }
 0x3b0   : > { %vm5756_vm11 = vcmp.gt.f32.partialorder %v5494_v28, 0.0  ;;  %v5804_v8 = vmul.f32 0.01, %v5494_v28  ;;  %v5851_v57 = vsel %vm5755_vm8, %v5492_v42, %v5803_v13  ;;  %v5498_v2 = vadd.f32 %v5497_v49, %v5385_v52  ;;  %v10709_v13 = vpop.f32.mrf.mxu0 }
 0x3b1   : > { %v5499_v60 = vpop.f32.mrf.mxu1  ;;  %v5890_v50 = vpack.c.bf16 %v5851_v57, %v5848_v25  ;;  %v5405_v25 = vadd.f32 %v10605_v51, %v10651_v21 }
 0x3b2   : > { %v5500_v27 = vadd.f32 %v5499_v60, %v5387_v24  ;;  %v5852_v43 = vsel %vm5756_vm11, %v5494_v28, %v5804_v8  ;;  %v5806_v63 = vmul.f32 0.01, %v5498_v2  ;;  %vm5758_vm14 = vcmp.gt.f32.partialorder %v5498_v2, 0.0 }
 0x3b3   : > { %v5501_v55 = vpop.f32.mrf.mxu1  ;;  %v5891_v11 = vpack.c.bf16 %v5852_v43, %v5849_v39  ;;  %v5401_v24 = vadd.f32 %v10600_v36, %v10647_v22  ;;  %v5407_v43 = vadd.f32 %v10610_v15, %v10647_v22 }
 0x3b4   : > { %v5502_v58 = vadd.f32 %v5501_v55, %v5389_v23  ;;  %v5807_v31 = vmul.f32 0.01, %v5500_v27  ;;  %vm5759_vm13 = vcmp.gt.f32.partialorder %v5500_v27, 0.0  ;;  %v5854_v28 = vsel %vm5758_vm14, %v5498_v2, %v5806_v63  ;;  %v10713_v23 = vpop.f32.mrf.mxu0 }
 0x3b5   : > { %v5503_v59 = vpop.f32.mrf.mxu1  ;;  %6155 = vmatprep.mubr.bf16.mxu0 %v5891_v11  ;;  %v5409_v11 = vadd.f32 %v10615_v18, %v10651_v21  ;;  %v5411_v63 = vadd.f32 %v10620_v5, %v10647_v22 }
 0x3b6   : > { %vm5761_vm12 = vcmp.gt.f32.partialorder %v5502_v58, 0.0  ;;  %v5809_v30 = vmul.f32 0.01, %v5502_v58  ;;  %v5504_v6 = vadd.f32 %v5503_v59, %v5391_v3  ;;  %6156 = vmatmul.mubr.bf16.gmra.mxu0 %v5890_v50  ;;  %v5855_v45 = vsel %vm5759_vm13, %v5500_v27, %v5807_v31  ;;  %v10721_v59 = vpop.f32.mrf.mxu0 }
 0x3b7   : > { %v5507_v1 = vpop.f32.mrf.mxu1 }
 0x3b8   : > { %vm5762_vm15 = vcmp.gt.f32.partialorder %v5504_v6, 0.0  ;;  %v5810_v41 = vmul.f32 0.01, %v5504_v6  ;;  %v5857_v40 = vsel %vm5761_vm12, %v5502_v58, %v5809_v30  ;;  %v5508_v10 = vadd.f32 %v5507_v1, %v5395_v17 }
 0x3b9   : > { %v5509_v62 = vpop.f32.mrf.mxu1  ;;  %v5893_v8 = vpack.c.bf16 %v5857_v40, %v5854_v28  ;;  %v10725_v40 = vpop.f32.mrf.mxu0 }
 0x3ba   : > { %v5510_v42 = vadd.f32 %v5509_v62, %v5397_v7  ;;  %v5858_v12 = vsel %vm5762_vm15, %v5504_v6, %v5810_v41  ;;  %v5812_v27 = vmul.f32 0.01, %v5508_v10  ;;  %vm5764_vm2 = vcmp.gt.f32.partialorder %v5508_v10, 0.0 }
 0x3bb   : > { %v5511_v49 = vpop.f32.mrf.mxu1  ;;  %v5894_v9 = vpack.c.bf16 %v5858_v12, %v5855_v45  ;;  %v5415_v45 = vadd.f32 %v10622_v35, %v10651_v21 }
 0x3bc   : > { %v5512_v52 = vadd.f32 %v5511_v49, %v5399_v16  ;;  %v5813_v57 = vmul.f32 0.01, %v5510_v42  ;;  %vm5765_vm1 = vcmp.gt.f32.partialorder %v5510_v42, 0.0  ;;  %v5860_v31 = vsel %vm5764_vm2, %v5508_v10, %v5812_v27 }
 0x3bd   : > { %v5513_v29 = vpop.f32.mrf.mxu1  ;;  %6163 = vmatprep.mubr.bf16.mxu0 %v5894_v9  ;;  %v5419_v10 = vadd.f32 %v10626_v19, %v10651_v21 }
 0x3be   : > { %vm5767_vm0 = vcmp.gt.f32.partialorder %v5512_v52, 0.0  ;;  %v5815_v60 = vmul.f32 0.01, %v5512_v52  ;;  %v5514_v37 = vadd.f32 %v5513_v29, %v5401_v24  ;;  %6164 = vmatmul.mubr.bf16.gmra.mxu0 %v5893_v8  ;;  %v5861_v50 = vsel %vm5765_vm1, %v5510_v42, %v5813_v57  ;;  %v10733_v8 = vpop.f32.mrf.mxu0 }
 0x3bf   : > { %v5517_v39 = vpop.f32.mrf.mxu1  ;;  %v5417_v42 = vadd.f32 %v10624_v38, %v10647_v22 }
 0x3c0   : > { %vm5768_vm3 = vcmp.gt.f32.partialorder %v5514_v37, 0.0  ;;  %v5816_v36 = vmul.f32 0.01, %v5514_v37  ;;  %v5863_v2 = vsel %vm5767_vm0, %v5512_v52, %v5815_v60  ;;  %v5518_v30 = vadd.f32 %v5517_v39, %v5405_v25 }
 0x3c1   : > { %v5519_v55 = vpop.f32.mrf.mxu1  ;;  %v5896_v1 = vpack.c.bf16 %v5863_v2, %v5860_v31  ;;  %v5421_v60 = vadd.f32 %v10628_v47, %v10647_v22 }
 0x3c2   : > { %v5520_v3 = vadd.f32 %v5519_v55, %v5407_v43  ;;  %v5864_v58 = vsel %vm5768_vm3, %v5514_v37, %v5816_v36  ;;  %v5818_v62 = vmul.f32 0.01, %v5518_v30  ;;  %vm5770_vm6 = vcmp.gt.f32.partialorder %v5518_v30, 0.0  ;;  %v10737_v36 = vpop.f32.mrf.mxu0 }
 0x3c3   : > { %v5521_v6 = vpop.f32.mrf.mxu1  ;;  %v5897_v15 = vpack.c.bf16 %v5864_v58, %v5861_v50  ;;  %v5427_v55 = vadd.f32 %v10632_v20, %v10647_v22  ;;  %v5429_v58 = vadd.f32 %v10634_v33, %v10651_v21  ;;  %v7035_v33 = vadd.f32 %v10653_v48, %v10643_v32 }
 0x3c4   : > { %v5522_v7 = vadd.f32 %v5521_v6, %v5409_v11  ;;  %v5819_v41 = vmul.f32 0.01, %v5520_v3  ;;  %vm5771_vm5 = vcmp.gt.f32.partialorder %v5520_v3, 0.0  ;;  %v5866_v52 = vsel %vm5770_vm6, %v5518_v30, %v5818_v62 }
 0x3c5   : > { %v5523_v51 = vpop.f32.mrf.mxu1  ;;  %6171 = vmatprep.mubr.bf16.mxu0 %v5897_v15  ;;  %v5425_v11 = vadd.f32 %v10630_v34, %v10651_v21  ;;  %v10745_v15 = vpop.f32.mrf.mxu0  ;;  %v11111_v34 = vld [vmem:[#allocation7_spill] sm:$0xff]  ;;  %v7038_v32 = vadd.f32 %v10665_v4, %v10661_v44 }
 0x3c6   : > { %vm5773_vm4 = vcmp.gt.f32.partialorder %v5522_v7, 0.0  ;;  %v5821_v17 = vmul.f32 0.01, %v5522_v7  ;;  %v5524_v18 = vadd.f32 %v5523_v51, %v5411_v63  ;;  %6172 = vmatmul.mubr.bf16.gmra.mxu0 %v5896_v1  ;;  %v5867_v9 = vsel %vm5771_vm5, %v5520_v3, %v5819_v41 }
 0x3c7   : > { %v5527_v16 = vpop.f32.mrf.mxu1  ;;  %v5431_v51 = vadd.f32 %v10636_v54, %v10647_v22 }
 0x3c8   : > { %vm5774_vm7 = vcmp.gt.f32.partialorder %v5524_v18, 0.0  ;;  %v5822_v5 = vmul.f32 0.01, %v5524_v18  ;;  %v5869_v12 = vsel %vm5773_vm4, %v5522_v7, %v5821_v17  ;;  %v5528_v29 = vadd.f32 %v5527_v16, %v5415_v45 }
 0x3c9   : > { %v5529_v28 = vpop.f32.mrf.mxu1  ;;  %v5899_v37 = vpack.c.bf16 %v5869_v12, %v5866_v52 }
 0x3ca   : > { %v5530_v49 = vadd.f32 %v5529_v28, %v5417_v42  ;;  %v5870_v24 = vsel %vm5774_vm7, %v5524_v18, %v5822_v5  ;;  %v5824_v25 = vmul.f32 0.01, %v5528_v29  ;;  %vm5776_vm10 = vcmp.gt.f32.partialorder %v5528_v29, 0.0  ;;  %v10755_v5 = vpop.f32.mrf.mxu0 }
 0x3cb   : > { %v5531_v57 = vpop.f32.mrf.mxu1  ;;  %v5900_v38 = vpack.c.bf16 %v5870_v24, %v5867_v9  ;;  %v10751_v18 = vrot.slane %v10641_v56, %v11111_v34 }
 0x3cc   : > { %v5532_v27 = vadd.f32 %v5531_v57, %v5419_v10  ;;  %v5825_v39 = vmul.f32 0.01, %v5530_v49  ;;  %vm5777_vm9 = vcmp.gt.f32.partialorder %v5530_v49, 0.0  ;;  %v5872_v63 = vsel %vm5776_vm10, %v5528_v29, %v5824_v25  ;;  %v10760_v9 = vpop.f32.mrf.mxu0 }
 0x3cd   : > { %v5533_v35 = vpop.f32.mrf.mxu1  ;;  %6179 = vmatprep.mubr.bf16.mxu0 %v5900_v38  ;;  %v5581_v56 = vadd.f32 %v7035_v33, %v10751_v18 }
 0x3ce   : > { %vm5779_vm8 = vcmp.gt.f32.partialorder %v5532_v27, 0.0  ;;  %v5827_v43 = vmul.f32 0.01, %v5532_v27  ;;  %v5534_v19 = vadd.f32 %v5533_v35, %v5421_v60  ;;  %6180 = vmatmul.mubr.bf16.gmra.mxu0 %v5899_v37  ;;  %v5873_v30 = vsel %vm5777_vm9, %v5530_v49, %v5825_v39  ;;  %v10765_v44 = vpop.f32.mrf.mxu0 }
 0x3cf   : > { %v5537_v2 = vpop.f32.mrf.mxu1  ;;  %v7041_v60 = vadd.f32 %v10677_v53, %v10673_v46 }
 0x3d0   : > { %vm5780_vm11 = vcmp.gt.f32.partialorder %v5534_v19, 0.0  ;;  %v5828_v47 = vmul.f32 0.01, %v5534_v19  ;;  %v5875_v3 = vsel %vm5779_vm8, %v5532_v27, %v5827_v43  ;;  %v5538_v1 = vadd.f32 %v5537_v2, %v5425_v11 }
 0x3d1   : > { %v5539_v50 = vpop.f32.mrf.mxu1  ;;  %v5902_v41 = vpack.c.bf16 %v5875_v3, %v5872_v63  ;;  %v5584_v27 = vadd.f32 %v7038_v32, %v10751_v18  ;;  %v7044_v2 = vadd.f32 %v10689_v26, %v10685_v14 }
 0x3d2   : > { %v5540_v31 = vadd.f32 %v5539_v50, %v5427_v55  ;;  %v5876_v6 = vsel %vm5780_vm11, %v5534_v19, %v5828_v47  ;;  %v5830_v45 = vmul.f32 0.01, %v5538_v1  ;;  %vm5782_vm14 = vcmp.gt.f32.partialorder %v5538_v1, 0.0  ;;  %v10770_v55 = vpop.f32.mrf.mxu0 }
 0x3d3   : > { %v5541_v7 = vpop.f32.mrf.mxu1  ;;  %v5903_v20 = vpack.c.bf16 %v5876_v6, %v5873_v30  ;;  %v5589_v19 = vadd.f32 %v7041_v60, %v10751_v18  ;;  %v5592_v6 = vadd.f32 %v7044_v2, %v10751_v18 }
 0x3d4   : > { %v5542_v17 = vadd.f32 %v5541_v7, %v5429_v58  ;;  %v5831_v62 = vmul.f32 0.01, %v5540_v31  ;;  %vm5783_vm13 = vcmp.gt.f32.partialorder %v5540_v31, 0.0  ;;  %v5878_v24 = vsel %vm5782_vm14, %v5538_v1, %v5830_v45  ;;  %v7064_v1 = vpop.f32.mrf.mxu0 }
 0x3d5   : > { %v5543_v21 = vpop.f32.mrf.mxu1  ;;  %6187 = vmatprep.mubr.bf16.mxu0 %v5903_v20  ;;  %v7047_v58 = vadd.f32 %v10701_v0, %v10697_v61 }
 0x3d6   : > { %vm5785_vm12 = vcmp.gt.f32.partialorder %v5542_v17, 0.0  ;;  %v5833_v16 = vmul.f32 0.01, %v5542_v17  ;;  %v5544_v42 = vadd.f32 %v5543_v21, %v5431_v51  ;;  %6188 = vmatmul.mubr.bf16.gmra.mxu0 %v5902_v41  ;;  %v5879_v10 = vsel %vm5783_vm13, %v5540_v31, %v5831_v62  ;;  %v7066_v0 = vpop.f32.mrf.mxu0 }
 0x3d7   : > { %v7097_v54 = vpop.f32.mrf.mxu1  ;;  %v5597_v20 = vadd.f32 %v7047_v58, %v10751_v18  ;;  %v7050_v41 = vadd.f32 %v10713_v23, %v10709_v13 }
 0x3d8   : > { %vm5786_vm15 = vcmp.gt.f32.partialorder %v5544_v42, 0.0  ;;  %v5834_v22 = vmul.f32 0.01, %v5544_v42  ;;  %v5881_v12 = vsel %vm5785_vm12, %v5542_v17, %v5833_v16  ;;  %v7053_v16 = vadd.f32 %v10725_v40, %v10721_v59 }
 0x3d9   : > { %v7098_v28 = vpop.f32.mrf.mxu1  ;;  %v5905_v57 = vpack.c.bf16 %v5881_v12, %v5878_v24 }
 0x3da   : > { %v7099_v48 = vadd.f32 %v7098_v28, %v7097_v54  ;;  %v5882_v49 = vsel %vm5786_vm15, %v5544_v42, %v5834_v22  ;;  %v5600_v54 = vadd.f32 %v7050_v41, %v10751_v18  ;;  %v5605_v28 = vadd.f32 %v7053_v16, %v10751_v18 }
 0x3db   : > { %v7100_v52 = vpop.f32.mrf.mxu1  ;;  %v5906_v29 = vpack.c.bf16 %v5882_v49, %v5879_v10 }
 0x3dc   : > { %v5678_v38 = vadd.f32 %v7099_v48, %v5581_v56  ;;  %v7067_v56 = vpop.f32.mrf.mxu0  ;;  %v7056_v48 = vadd.f32 %v10737_v36, %v10733_v8 }
 0x3dd   : > { %v7101_v37 = vpop.f32.mrf.mxu1  ;;  %6195 = vmatprep.mubr.bf16.mxu0 %v5906_v29 }
 0x3de   : > { %v7102_v35 = vadd.f32 %v7101_v37, %v7100_v52  ;;  %6196 = vmatmul.mubr.bf16.gmra.mxu0 %v5905_v57  ;;  %v5790_v39 = vmul.f32 0.01, %v5678_v38  ;;  %vm5742_vm0 = vcmp.gt.f32.partialorder %v5678_v38, 0.0  ;;  %v7069_v40 = vpop.f32.mrf.mxu0  ;;  %v7059_v57 = vadd.f32 %v10755_v5, %v10745_v15 }
 0x3df   : > { %v7103_v4 = vpop.f32.mrf.mxu1  ;;  %v5608_v37 = vadd.f32 %v7056_v48, %v10751_v18 }
 0x3e0   : > { %v5681_v43 = vadd.f32 %v7102_v35, %v5584_v27  ;;  %v5838_v3 = vsel %vm5742_vm0, %v5678_v38, %v5790_v39  ;;  %v7070_v35 = vpop.f32.mrf.mxu0  ;;  %v5613_v39 = vadd.f32 %v7059_v57, %v10751_v18 }
 0x3e1   : > { %v7104_v25 = vpop.f32.mrf.mxu1 }
 0x3e2   : > { %vm5745_vm1 = vcmp.gt.f32.partialorder %v5681_v43, 0.0  ;;  %v5793_v46 = vmul.f32 0.01, %v5681_v43  ;;  %v7105_v53 = vadd.f32 %v7104_v25, %v7103_v4  ;;  %v7072_v5 = vpop.f32.mrf.mxu0 }
 0x3e3   : > { %v7106_v47 = vpop.f32.mrf.mxu1 }
 0x3e4   : > { %v5686_v11 = vadd.f32 %v7105_v53, %v5589_v19  ;;  %v5841_v50 = vsel %vm5745_vm1, %v5681_v43, %v5793_v46  ;;  %v7062_v19 = vadd.f32 %v10765_v44, %v10760_v9 }
 0x3e5   : > { %v7107_v31 = vpop.f32.mrf.mxu1  ;;  %v5886_v30 = vpack.c.bf16 %v5841_v50, %v5838_v3 }
 0x3e6   : > { %v7108_v63 = vadd.f32 %v7107_v31, %v7106_v47  ;;  %v5796_v14 = vmul.f32 0.01, %v5686_v11  ;;  %vm5748_vm2 = vcmp.gt.f32.partialorder %v5686_v11, 0.0  ;;  %v5616_v58 = vadd.f32 %v7062_v19, %v10751_v18 }
 0x3e7   : > { %v7109_v7 = vpop.f32.mrf.mxu1  ;;  %7241 = vmatprep.mubr.bf16.mxu1 %v5886_v30  ;;  %v7073_v30 = vpop.f32.mrf.mxu0 }
 0x3e8   : > { %v5689_v26 = vadd.f32 %v7108_v63, %v5592_v6  ;;  %v5844_v33 = vsel %vm5748_vm2, %v5686_v11, %v5796_v14  ;;  %v7065_v11 = vadd.f32 %v7064_v1, %v10770_v55  ;;  %v7068_v14 = vadd.f32 %v7067_v56, %v7066_v0 }
 0x3e9   : > { %v7110_v51 = vpop.f32.mrf.mxu1  ;;  %v7074_v56 = vadd.f32 %v7073_v30, %v7072_v5 }
 0x3ea   : > { %vm5751_vm3 = vcmp.gt.f32.partialorder %v5689_v26, 0.0  ;;  %v5799_v17 = vmul.f32 0.01, %v5689_v26  ;;  %v7111_v61 = vadd.f32 %v7110_v51, %v7109_v7  ;;  %v5621_v44 = vadd.f32 %v7065_v11, %v10751_v18  ;;  %v7075_v51 = vpop.f32.mrf.mxu0 }
 0x3eb   : > { %v7112_v34 = vpop.f32.mrf.mxu1 }
 0x3ec   : > { %v5847_v21 = vsel %vm5751_vm3, %v5689_v26, %v5799_v17  ;;  %v5694_v62 = vadd.f32 %v7111_v61, %v5597_v20  ;;  %v7071_v61 = vadd.f32 %v7070_v35, %v7069_v40  ;;  %v7076_v16 = vpop.f32.mrf.mxu0 }
 0x3ed   : > { %v5889_v42 = vpack.c.bf16 %v5847_v21, %v5844_v33  ;;  %v7113_v45 = vpop.f32.mrf.mxu1  ;;  %v5624_v21 = vadd.f32 %v7068_v14, %v10751_v18 }
 0x3ee   : > { %v7114_v22 = vadd.f32 %v7113_v45, %v7112_v34  ;;  %v5802_v13 = vmul.f32 0.01, %v5694_v62  ;;  %vm5754_vm4 = vcmp.gt.f32.partialorder %v5694_v62, 0.0  ;;  %v5629_v0 = vadd.f32 %v7071_v61, %v10751_v18 }
 0x3ef   : > { %v7115_v12 = vpop.f32.mrf.mxu1  ;;  %7242 = vmatmul.mubr.bf16.vlgmr.msra.gmra.mxu1 %v5889_v42 }
 0x3f0   : > { %v5697_v23 = vadd.f32 %v7114_v22, %v5600_v54  ;;  %v5850_v52 = vsel %vm5754_vm4, %v5694_v62, %v5802_v13 }
 0x3f1   : > { %v7116_v32 = vpop.f32.mrf.mxu1 }
 0x3f2   : > { %vm5757_vm5 = vcmp.gt.f32.partialorder %v5697_v23, 0.0  ;;  %v5805_v10 = vmul.f32 0.01, %v5697_v23  ;;  %v7117_v59 = vadd.f32 %v7116_v32, %v7115_v12 }
 0x3f3   : > { %v7118_v49 = vpop.f32.mrf.mxu1 }
 0x3f4   : > { %v5702_v24 = vadd.f32 %v7117_v59, %v5605_v28  ;;  %v5853_v29 = vsel %vm5757_vm5, %v5697_v23, %v5805_v10  ;;  %v7078_v23 = vpop.f32.mrf.mxu0  ;;  %v7077_v59 = vadd.f32 %v7076_v16, %v7075_v51 }
 0x3f5   : > { %v7119_v38 = vpop.f32.mrf.mxu1  ;;  %v5892_v60 = vpack.c.bf16 %v5853_v29, %v5850_v52 }
 0x3f6   : > { %v7120_v27 = vadd.f32 %v7119_v38, %v7118_v49  ;;  %v5808_v8 = vmul.f32 0.01, %v5702_v24  ;;  %vm5760_vm6 = vcmp.gt.f32.partialorder %v5702_v24, 0.0  ;;  %v7079_v29 = vpop.f32.mrf.mxu0 }
 0x3f7   : > { %v7121_v4 = vpop.f32.mrf.mxu1  ;;  %7245 = vmatprep.mubr.bf16.mxu1 %v5892_v60  ;;  %v7080_v35 = vadd.f32 %v7079_v29, %v7078_v23 }
 0x3f8   : > { %v5705_v36 = vadd.f32 %v7120_v27, %v5608_v37  ;;  %v5856_v46 = vsel %vm5760_vm6, %v5702_v24, %v5808_v8  ;;  %v5632_v24 = vadd.f32 %v7074_v56, %v10751_v18  ;;  %v5637_v37 = vadd.f32 %v7077_v59, %v10751_v18 }
 0x3f9   : > { %v7122_v43 = vpop.f32.mrf.mxu1  ;;  %v5640_v5 = vadd.f32 %v7080_v35, %v10751_v18 }
 0x3fa   : > { %vm5763_vm7 = vcmp.gt.f32.partialorder %v5705_v36, 0.0  ;;  %v5811_v25 = vmul.f32 0.01, %v5705_v36  ;;  %v7123_v15 = vadd.f32 %v7122_v43, %v7121_v4 }
 0x3fb   : > { %v7124_v2 = vpop.f32.mrf.mxu1 }
 0x3fc   : > { %v5859_v53 = vsel %vm5763_vm7, %v5705_v36, %v5811_v25  ;;  %v5710_v47 = vadd.f32 %v7123_v15, %v5613_v39 }
 0x3fd   : > { %v7125_v3 = vpop.f32.mrf.mxu1  ;;  %v5895_v50 = vpack.c.bf16 %v5859_v53, %v5856_v46 }
 0x3fe   : > { %v7126_v31 = vadd.f32 %v7125_v3, %v7124_v2  ;;  %v5814_v63 = vmul.f32 0.01, %v5710_v47  ;;  %vm5766_vm8 = vcmp.gt.f32.partialorder %v5710_v47, 0.0 }
 0x3ff   : > { %v7127_v6 = vpop.f32.mrf.mxu1  ;;  %7246 = vmatmul.mubr.bf16.gmra.mxu1 %v5895_v50 }
 0x400   : > { %v5713_v9 = vadd.f32 %v7126_v31, %v5616_v58  ;;  %v5862_v41 = vsel %vm5766_vm8, %v5710_v47, %v5814_v63 }
 0x401   : > { %v7128_v7 = vpop.f32.mrf.mxu1 }
 0x402   : > { %vm5769_vm9 = vcmp.gt.f32.partialorder %v5713_v9, 0.0  ;;  %v5817_v26 = vmul.f32 0.01, %v5713_v9  ;;  %v7129_v20 = vadd.f32 %v7128_v7, %v7127_v6 }
 0x403   : > { %v7130_v55 = vpop.f32.mrf.mxu1 }
 0x404   : > { %v5718_v1 = vadd.f32 %v7129_v20, %v5621_v44  ;;  %v5865_v17 = vsel %vm5769_vm9, %v5713_v9, %v5817_v26 }
 0x405   : > { %v7131_v34 = vpop.f32.mrf.mxu1  ;;  %v5898_v33 = vpack.c.bf16 %v5865_v17, %v5862_v41 }
 0x406   : > { %v7132_v62 = vadd.f32 %v7131_v34, %v7130_v55  ;;  %v5820_v45 = vmul.f32 0.01, %v5718_v1  ;;  %vm5772_vm10 = vcmp.gt.f32.partialorder %v5718_v1, 0.0 }
 0x407   : > { %v7133_v42 = vpop.f32.mrf.mxu1  ;;  %7249 = vmatprep.mubr.bf16.mxu1 %v5898_v33 }
 0x408   : > { %v5721_v54 = vadd.f32 %v7132_v62, %v5624_v21  ;;  %v5868_v32 = vsel %vm5772_vm10, %v5718_v1, %v5820_v45  ;;  %v10801_v62 = vld [vmem:[%s10980_s8] ss:$0 sm:$0xff] }
 0x409   : > { %v7134_v22 = vpop.f32.mrf.mxu1 }
 0x40a   : > { %vm5775_vm11 = vcmp.gt.f32.partialorder %v5721_v54, 0.0  ;;  %v5823_v12 = vmul.f32 0.01, %v5721_v54  ;;  %v7135_v13 = vadd.f32 %v7134_v22, %v7133_v42 }
 0x40b   : > { %v7136_v28 = vpop.f32.mrf.mxu1 }
 0x40c   : > { %v5871_v48 = vsel %vm5775_vm11, %v5721_v54, %v5823_v12  ;;  %v5726_v10 = vadd.f32 %v7135_v13, %v5629_v0 }
 0x40d   : > { %v7137_v40 = vpop.f32.mrf.mxu1  ;;  %v5901_v49 = vpack.c.bf16 %v5871_v48, %v5868_v32 }
 0x40e   : > { %v7138_v52 = vadd.f32 %v7137_v40, %v7136_v28  ;;  %v5826_v38 = vmul.f32 0.01, %v5726_v10  ;;  %vm5778_vm12 = vcmp.gt.f32.partialorder %v5726_v10, 0.0 }
 0x40f   : > { %v7139_v57 = vpop.f32.mrf.mxu1  ;;  %7250 = vmatmul.mubr.bf16.gmra.mxu1 %v5901_v49 }
 0x410   : > { %v5729_v60 = vadd.f32 %v7138_v52, %v5632_v24  ;;  %v5874_v43 = vsel %vm5778_vm12, %v5726_v10, %v5826_v38 }
 0x411   : > { %v7140_v27 = vpop.f32.mrf.mxu1 }
 0x412   : > { %vm5781_vm13 = vcmp.gt.f32.partialorder %v5729_v60, 0.0  ;;  %v5829_v4 = vmul.f32 0.01, %v5729_v60  ;;  %v7141_v8 = vadd.f32 %v7140_v27, %v7139_v57 }
 0x413   : > { %v7142_v36 = vpop.f32.mrf.mxu1 }
 0x414   : > { %v5734_v39 = vadd.f32 %v7141_v8, %v5637_v37  ;;  %v5877_v19 = vsel %vm5781_vm13, %v5729_v60, %v5829_v4 }
 0x415   : > { %v7143_v25 = vpop.f32.mrf.mxu1  ;;  %v5904_v15 = vpack.c.bf16 %v5877_v19, %v5874_v43 }
 0x416   : > { %v7144_v2 = vadd.f32 %v7143_v25, %v7142_v36  ;;  %v5832_v46 = vmul.f32 0.01, %v5734_v39  ;;  %vm5784_vm14 = vcmp.gt.f32.partialorder %v5734_v39, 0.0 }
 0x417   : > { %7253 = vmatprep.mubr.bf16.mxu1 %v5904_v15 }
 0x418   : > { %v5737_v53 = vadd.f32 %v7144_v2, %v5640_v5  ;;  %v5880_v11 = vsel %vm5784_vm14, %v5734_v39, %v5832_v46 }
 0x41a   : > { %vm5787_vm15 = vcmp.gt.f32.partialorder %v5737_v53, 0.0  ;;  %v5835_v47 = vmul.f32 0.01, %v5737_v53 }
 0x41c   : > { %v5883_v3 = vsel %vm5787_vm15, %v5737_v53, %v5835_v47 }
 0x41d   : > { %v5907_v50 = vpack.c.bf16 %v5883_v3, %v5880_v11 }
 0x41f   : > { %7254 = vmatmul.mubr.bf16.gmra.mxu1 %v5907_v50 }
 0x466   : > { %v7161_v58 = vpop.f32.mrf.mxu0 }
 0x468   : > { %v7162_v31 = vpop.f32.mrf.mxu0 }
 0x469   : > { %v7163_v33 = vadd.f32 %v7162_v31, %v7161_v58 }
 0x46a   : > { %v7164_v30 = vpop.f32.mrf.mxu0 }
 0x46b   : > { %v6142_v22 = vadd.f32 %v7163_v33, %v10801_v62 }
 0x46c   : > { %v7165_v6 = vpop.f32.mrf.mxu0 }
 0x46d   : > { %v7166_v54 = vadd.f32 %v7165_v6, %v7164_v30 }
 0x46e   : > { %v7167_v63 = vpop.f32.mrf.mxu0 }
 0x46f   : > { %v6145_v48 = vadd.f32 %v7166_v54, %v10801_v62 }
 0x470   : > { %v7168_v9 = vpop.f32.mrf.mxu0 }
 0x471   : > { %v7169_v34 = vadd.f32 %v7168_v9, %v7167_v63 }
 0x472   : > { %v7170_v44 = vpop.f32.mrf.mxu0 }
 0x473   : > { %v6150_v42 = vadd.f32 %v7169_v34, %v10801_v62 }
 0x474   : > { %v7171_v7 = vpop.f32.mrf.mxu0 }
 0x475   : > { %v7172_v16 = vadd.f32 %v7171_v7, %v7170_v44 }
 0x476   : > { %v7173_v18 = vpop.f32.mrf.mxu0 }
 0x477   : > { %v6153_v23 = vadd.f32 %v7172_v16, %v10801_v62 }
 0x478   : > { %v7174_v14 = vpop.f32.mrf.mxu0 }
 0x479   : > { %v7175_v29 = vadd.f32 %v7174_v14, %v7173_v18 }
 0x47a   : > { %v7176_v26 = vpop.f32.mrf.mxu0 }
 0x47b   : > { %v6158_v8 = vadd.f32 %v7175_v29, %v10801_v62 }
 0x47c   : > { %v7177_v20 = vpop.f32.mrf.mxu0 }
 0x47d   : > { %v7178_v4 = vadd.f32 %v7177_v20, %v7176_v26 }
 0x47e   : > { %v7179_v51 = vpop.f32.mrf.mxu0 }
 0x47f   : > { %v6161_v5 = vadd.f32 %v7178_v4, %v10801_v62 }
 0x480   : > { %v7180_v55 = vpop.f32.mrf.mxu0 }
 0x481   : > { %v7181_v24 = vadd.f32 %v7180_v55, %v7179_v51 }
 0x482   : > { %v7182_v1 = vpop.f32.mrf.mxu0 }
 0x483   : > { %v6166_v38 = vadd.f32 %v7181_v24, %v10801_v62 }
 0x484   : > { %v7183_v41 = vpop.f32.mrf.mxu0 }
 0x485   : > { %v7184_v57 = vadd.f32 %v7183_v41, %v7182_v1 }
 0x486   : > { %v7185_v17 = vpop.f32.mrf.mxu0 }
 0x487   : > { %v6169_v36 = vadd.f32 %v7184_v57, %v10801_v62 }
 0x488   : > { %v7186_v61 = vpop.f32.mrf.mxu0 }
 0x489   : > { %v7187_v11 = vadd.f32 %v7186_v61, %v7185_v17 }
 0x48a   : > { %v7188_v21 = vpop.f32.mrf.mxu0 }
 0x48b   : > { %v6174_v9 = vadd.f32 %v7187_v11, %v10801_v62 }
 0x48c   : > { %v7189_v56 = vpop.f32.mrf.mxu0 }
 0x48d   : > { %v7190_v63 = vadd.f32 %v7189_v56, %v7188_v21 }
 0x48e   : > { %v7191_v10 = vpop.f32.mrf.mxu0 }
 0x48f   : > { %v6177_v51 = vadd.f32 %v7190_v63, %v10801_v62 }
 0x490   : > { %v7192_v49 = vpop.f32.mrf.mxu0 }
 0x491   : > { %v7193_v53 = vadd.f32 %v7192_v49, %v7191_v10 }
 0x492   : > { %v7194_v52 = vpop.f32.mrf.mxu0 }
 0x493   : > { %v6182_v50 = vadd.f32 %v7193_v53, %v10801_v62 }
 0x494   : > { %v7195_v27 = vpop.f32.mrf.mxu0 }
 0x495   : > { %v7196_v3 = vadd.f32 %v7195_v27, %v7194_v52 }
 0x496   : > { %v7197_v25 = vpop.f32.mrf.mxu0 }
 0x497   : > { %v6185_v44 = vadd.f32 %v7196_v3, %v10801_v62 }
 0x498   : > { %v7198_v46 = vpop.f32.mrf.mxu0 }
 0x499   : > { %v7199_v41 = vadd.f32 %v7198_v46, %v7197_v25 }
 0x49a   : > { %v7200_v47 = vpop.f32.mrf.mxu0 }
 0x49b   : > { %v6190_v21 = vadd.f32 %v7199_v41, %v10801_v62 }
 0x49c   : > { %v7201_v30 = vpop.f32.mrf.mxu0 }
 0x49d   : > { %v7202_v34 = vadd.f32 %v7201_v30, %v7200_v47 }
 0x49e   : > { %v7203_v26 = vpop.f32.mrf.mxu0 }
 0x4a0   : > { %v7204_v1 = vpop.f32.mrf.mxu0 }
 0x4a1   : > { %v7205_v33 = vadd.f32 %v7204_v1, %v7203_v26 }
 0x4a2   : > { %v7206_v17 = vpop.f32.mrf.mxu0 }
 0x4a3   : > { %v6198_v56 = vadd.f32 %v7205_v33, %v10801_v62 }
 0x4a4   : > { %v7207_v16 = vpop.f32.mrf.mxu0 }
 0x4af   : > { %v7243_v45 = vpop.f32.mrf.mxu1 }
 0x4b0   : > { %v10804_v0 = vadd.f32 %v7243_v45, %v6150_v42 }
 0x4b1   : > { %v6238_v12 = vpop.f32.mrf.mxu1 }
 0x4b2   : > { %v10807_v13 = vadd.f32 %v6238_v12, %v6142_v22  ;;  %6305 = vmax.xlane.f32.xlu1 %v10804_v0  ;;  %v7208_v22 = vadd.f32 %v7207_v16, %v7206_v17  ;;  %v6193_v12 = vadd.f32 %v7202_v34, %v10801_v62 }
 0x4b3   : > { %v7244_v28 = vpop.f32.mrf.mxu1 }
 0x4b4   : > { %v10811_v32 = vadd.f32 %v7244_v28, %v6153_v23  ;;  %6301 = vmax.xlane.f32.xlu0 %v10807_v13  ;;  %v6201_v10 = vadd.f32 %v7208_v22, %v10801_v62 }
 0x4b5   : > { %v6241_v59 = vpop.f32.mrf.mxu1 }
 0x4b6   : > { %v10815_v40 = vadd.f32 %v6241_v59, %v6145_v48  ;;  %6307 = vmax.xlane.f32.xlu1 %v10811_v32 }
 0x4b8   : > { %6303 = vmax.xlane.f32.xlu0 %v10815_v40 }
 0x4bf   : > { %v7247_v60 = vpop.f32.mrf.mxu1 }
 0x4c0   : > { %v10820_v37 = vadd.f32 %v7247_v60, %v6166_v38 }
 0x4c1   : > { %v6254_v35 = vpop.f32.mrf.mxu1 }
 0x4c2   : > { %6313 = vmax.xlane.f32.xlu0 %v10820_v37  ;;  %v10825_v43 = vadd.f32 %v6254_v35, %v6158_v8 }
 0x4c3   : > { %v7248_v39 = vpop.f32.mrf.mxu1 }
 0x4c4   : > { %v10827_v19 = vadd.f32 %v7248_v39, %v6169_v36 }
 0x4c5   : > { %v6257_v15 = vpop.f32.mrf.mxu1 }
 0x4c6   : > { %6315 = vmax.xlane.f32.xlu1 %v10827_v19  ;;  %6309 = vmax.xlane.f32.xlu0 %v10825_v43  ;;  %v10832_v2 = vadd.f32 %v6257_v15, %v6161_v5 }
 0x4ca   : > { %6311 = vmax.xlane.f32.xlu1 %v10832_v2 }
 0x4cf   : > { %v7251_v58 = vpop.f32.mrf.mxu1 }
 0x4d0   : > { %v10836_v31 = vadd.f32 %v7251_v58, %v6182_v50 }
 0x4d1   : > { %v6270_v6 = vpop.f32.mrf.mxu1 }
 0x4d2   : > { %6321 = vmax.xlane.f32.xlu0 %v10836_v31  ;;  %v10841_v18 = vadd.f32 %v6270_v6, %v6174_v9 }
 0x4d3   : > { %v7252_v7 = vpop.f32.mrf.mxu1 }
 0x4d4   : > { %v10843_v14 = vadd.f32 %v7252_v7, %v6185_v44 }
 0x4d5   : > { %v6273_v20 = vpop.f32.mrf.mxu1 }
 0x4d6   : > { %6323 = vmax.xlane.f32.xlu1 %v10843_v14  ;;  %6317 = vmax.xlane.f32.xlu0 %v10841_v18  ;;  %v10848_v55 = vadd.f32 %v6273_v20, %v6177_v51 }
 0x4da   : > { %6319 = vmax.xlane.f32.xlu1 %v10848_v55 }
 0x4df   : > { %v7255_v61 = vpop.f32.mrf.mxu1 }
 0x4e0   : > { %v10857_v28 = vadd.f32 %v7255_v61, %v6198_v56 }
 0x4e1   : > { %v6286_v42 = vpop.f32.mrf.mxu1 }
 0x4e2   : > { %v10852_v45 = vadd.f32 %v6286_v42, %v6190_v21 }
 0x4e3   : > { %v7256_v54 = vpop.f32.mrf.mxu1 }
 0x4e4   : > { %6325 = vmax.xlane.f32.xlu0 %v10852_v45  ;;  %v10864_v59 = vadd.f32 %v7256_v54, %v6201_v10 }
 0x4e5   : > { %v6289_v23 = vpop.f32.mrf.mxu1 }
 0x4e6   : > { %v10859_v48 = vadd.f32 %v6289_v23, %v6193_v12 }
 0x4e8   : > { %6327 = vmax.xlane.f32.xlu1 %v10859_v48  ;;  %6329 = vmax.xlane.f32.xlu0 %v10857_v28 }
 0x4ec   : > { %6331 = vmax.xlane.f32.xlu1 %v10864_v59 }
 0x53b   : > { %v6306_v49 = vpop.xlane.xlu1 %6305 }
 0x53c   : > { %v10868_v24 = vsub.f32 %v10804_v0, %v6306_v49 }
 0x53d   : > { %v6302_v52 = vpop.xlane.xlu0 %6301 }
 0x53e   : > { %v6353_v29 = vmul.f32 1.442695, %v10868_v24  ;;  %v10872_v57 = vsub.f32 %v10807_v13, %v6302_v52 }
 0x53f   : > { %v6308_v38 = vpop.xlane.xlu1 %6307 }
 0x540   : > { %7943 = vpow2.f32 %v6353_v29  ;;  %v6349_v62 = vmul.f32 1.442695, %v10872_v57  ;;  %v10876_v60 = vsub.f32 %v10811_v32, %v6308_v38 }
 0x541   : > { %v6304_v27 = vpop.xlane.xlu0 %6303 }
 0x542   : > { %v6355_v35 = vmul.f32 1.442695, %v10876_v60  ;;  %v10880_v4 = vsub.f32 %v10815_v40, %v6304_v27  ;;  %7945 = vpow2.f32 %v6349_v62 }
 0x544   : > { %7947 = vpow2.f32 %v6355_v35  ;;  %v6351_v0 = vmul.f32 1.442695, %v10880_v4 }
 0x546   : > { %7949 = vpow2.f32 %v6351_v0 }
 0x54b   : > { %v6314_v13 = vpop.xlane.xlu0 %6313 }
 0x54c   : > { %v10884_v8 = vsub.f32 %v10820_v37, %v6314_v13 }
 0x54d   : > { %v7944_v36 = vpop.eup %7943 }
 0x54e   : > { %v6361_v39 = vmul.f32 1.442695, %v10884_v8  ;;  %6385 = vadd.xlane.f32.xlu0 %v7944_v36 }
 0x54f   : > { %v6316_v32 = vpop.xlane.xlu1 %6315  ;;  %v6310_v25 = vpop.xlane.xlu0 %6309 }
 0x550   : > { %v7946_v15 = vpop.eup %7945  ;;  %7951 = vpow2.f32 %v6361_v39  ;;  %v10888_v40 = vsub.f32 %v10827_v19, %v6316_v32  ;;  %v10891_v5 = vsub.f32 %v10825_v43, %v6310_v25 }
 0x551   : > { %v7948_v46 = vpop.eup %7947 }
 0x552   : > { %v6363_v53 = vmul.f32 1.442695, %v10888_v40  ;;  %v6357_v37 = vmul.f32 1.442695, %v10891_v5  ;;  %6387 = vadd.xlane.f32.xlu1 %v7948_v46  ;;  %6381 = vadd.xlane.f32.xlu0 %v7946_v15 }
 0x553   : > { %v6312_v47 = vpop.xlane.xlu1 %6311  ;;  %v7950_v3 = vpop.eup %7949 }
 0x554   : > { %7953 = vpow2.f32 %v6363_v53  ;;  %v10896_v11 = vsub.f32 %v10832_v2, %v6312_v47 }
 0x555   : > { %7955 = vpow2.f32 %v6357_v37 }
 0x556   : > { %v6359_v19 = vmul.f32 1.442695, %v10896_v11  ;;  %6383 = vadd.xlane.f32.xlu1 %v7950_v3 }
 0x558   : > { %7957 = vpow2.f32 %v6359_v19 }
 0x55b   : > { %v6322_v43 = vpop.xlane.xlu0 %6321 }
 0x55c   : > { %v10900_v50 = vsub.f32 %v10836_v31, %v6322_v43 }
 0x55d   : > { %v7952_v58 = vpop.eup %7951 }
 0x55e   : > { %v6369_v30 = vmul.f32 1.442695, %v10900_v50  ;;  %6393 = vadd.xlane.f32.xlu0 %v7952_v58 }
 0x55f   : > { %v6324_v6 = vpop.xlane.xlu1 %6323  ;;  %v6318_v63 = vpop.xlane.xlu0 %6317 }
 0x560   : > { %7959 = vpow2.f32 %v6369_v30  ;;  %v10904_v2 = vsub.f32 %v10843_v14, %v6324_v6  ;;  %v10907_v9 = vsub.f32 %v10841_v18, %v6318_v63 }
 0x561   : > { %v7954_v44 = vpop.eup %7953 }
 0x562   : > { %v7956_v7 = vpop.eup %7955  ;;  %v6371_v26 = vmul.f32 1.442695, %v10904_v2  ;;  %v6365_v31 = vmul.f32 1.442695, %v10907_v9  ;;  %6395 = vadd.xlane.f32.xlu1 %v7954_v44 }
 0x563   : > { %6389 = vadd.xlane.f32.xlu0 %v7956_v7  ;;  %v6320_v20 = vpop.xlane.xlu1 %6319 }
 0x564   : > { %7961 = vpow2.f32 %v6371_v26  ;;  %v10912_v51 = vsub.f32 %v10848_v55, %v6320_v20 }
 0x565   : > { %v7958_v1 = vpop.eup %7957  ;;  %7963 = vpow2.f32 %v6365_v31 }
 0x566   : > { %v6367_v14 = vmul.f32 1.442695, %v10912_v51  ;;  %6391 = vadd.xlane.f32.xlu1 %v7958_v1 }
 0x568   : > { %7965 = vpow2.f32 %v6367_v14 }
 0x56d   : > { %v7960_v18 = vpop.eup %7959  ;;  %v6326_v41 = vpop.xlane.xlu0 %6325 }
 0x56e   : > { %v10916_v17 = vsub.f32 %v10852_v45, %v6326_v41  ;;  %6401 = vadd.xlane.f32.xlu0 %v7960_v18 }
 0x570   : > { %v6373_v61 = vmul.f32 1.442695, %v10916_v17 }
 0x571   : > { %v7962_v34 = vpop.eup %7961  ;;  %v6328_v33 = vpop.xlane.xlu1 %6327 }
 0x572   : > { %v6330_v21 = vpop.xlane.xlu0 %6329  ;;  %v7964_v16 = vpop.eup %7963  ;;  %7967 = vpow2.f32 %v6373_v61  ;;  %v10920_v55 = vsub.f32 %v10859_v48, %v6328_v33  ;;  %6403 = vadd.xlane.f32.xlu1 %v7962_v34 }
 0x573   : > { %v10923_v42 = vsub.f32 %v10857_v28, %v6330_v21  ;;  %6397 = vadd.xlane.f32.xlu0 %v7964_v16 }
 0x574   : > { %v6375_v54 = vmul.f32 1.442695, %v10920_v55 }
 0x575   : > { %v6377_v45 = vmul.f32 1.442695, %v10923_v42  ;;  %v7966_v22 = vpop.eup %7965  ;;  %v6332_v56 = vpop.xlane.xlu1 %6331 }
 0x576   : > { %7969 = vpow2.f32 %v6375_v54  ;;  %v10928_v12 = vsub.f32 %v10864_v59, %v6332_v56  ;;  %6399 = vadd.xlane.f32.xlu1 %v7966_v22 }
 0x577   : > { %7971 = vpow2.f32 %v6377_v45 }
 0x578   : > { %v6379_v23 = vmul.f32 1.442695, %v10928_v12 }
 0x57a   : > { %7973 = vpow2.f32 %v6379_v23 }
 0x57f   : > { %v7968_v48 = vpop.eup %7967 }
 0x580   : > { %6405 = vadd.xlane.f32.xlu0 %v7968_v48 }
 0x583   : > { %v7970_v28 = vpop.eup %7969 }
 0x584   : > { %v7972_v10 = vpop.eup %7971  ;;  %6407 = vadd.xlane.f32.xlu1 %v7970_v28 }
 0x585   : > { %6409 = vadd.xlane.f32.xlu0 %v7972_v10 }
 0x587   : > { %v7974_v49 = vpop.eup %7973 }
 0x588   : > { %6411 = vadd.xlane.f32.xlu1 %v7974_v49 }
 0x5d7   : > { %v6386_v52 = vpop.xlane.xlu0 %6385 }
 0x5d8   : > { %7975 = vlog2.f32 %v6386_v52 }
 0x5db   : > { %v6388_v29 = vpop.xlane.xlu1 %6387  ;;  %v6382_v38 = vpop.xlane.xlu0 %6381 }
 0x5dc   : > { %7977 = vlog2.f32 %v6388_v29 }
 0x5dd   : > { %7979 = vlog2.f32 %v6382_v38 }
 0x5df   : > { %v6384_v59 = vpop.xlane.xlu1 %6383 }
 0x5e0   : > { %7981 = vlog2.f32 %v6384_v59 }
 0x5e5   : > { %v7976_v62 = vpop.eup %7975 }
 0x5e6   : > { %v6418_v27 = vmul.f32 0.6931472, %v7976_v62 }
 0x5e7   : > { %v6394_v35 = vpop.xlane.xlu0 %6393 }
 0x5e8   : > { %v6447_v0 = vsub.f32 %v10868_v24, %v6418_v27  ;;  %7983 = vlog2.f32 %v6394_v35 }
 0x5e9   : > { %v7978_v13 = vpop.eup %7977 }
 0x5ea   : > { %v7980_v36 = vpop.eup %7979  ;;  %6463 = vst [vmem:[%s10935_s10 + $0x10] sm:$0xff] %v6447_v0  ;;  %v6420_v39 = vmul.f32 0.6931472, %v7978_v13 }
 0x5eb   : > { %v6414_v32 = vmul.f32 0.6931472, %v7980_v36  ;;  %v6396_v25 = vpop.xlane.xlu1 %6395 }
 0x5ec   : > { %v6448_v15 = vsub.f32 %v10876_v60, %v6420_v39  ;;  %7985 = vlog2.f32 %v6396_v25  ;;  %v6390_v46 = vpop.xlane.xlu0 %6389 }
 0x5ed   : > { %v7982_v53 = vpop.eup %7981  ;;  %v6445_v37 = vsub.f32 %v10872_v57, %v6414_v32  ;;  %7987 = vlog2.f32 %v6390_v46 }
 0x5ee   : > { %6464 = vst [vmem:[%s10935_s10 + $0x18] sm:$0xff] %v6448_v15  ;;  %v6416_v24 = vmul.f32 0.6931472, %v7982_v53 }
 0x5ef   : > { %6461 = vst [vmem:[%s10935_s10] sm:$0xff] %v6445_v37  ;;  %v6392_v47 = vpop.xlane.xlu1 %6391 }
 0x5f0   : > { %v6446_v3 = vsub.f32 %v10880_v4, %v6416_v24  ;;  %7989 = vlog2.f32 %v6392_v47 }
 0x5f2   : > { %6462 = vst [vmem:[%s10935_s10 + $0x8] sm:$0xff] %v6446_v3 }
 0x5f5   : > { %v7984_v19 = vpop.eup %7983 }
 0x5f6   : > { %v6426_v43 = vmul.f32 0.6931472, %v7984_v19 }
 0x5f7   : > { %v6402_v58 = vpop.xlane.xlu0 %6401 }
 0x5f8   : > { %v6451_v60 = vsub.f32 %v10884_v8, %v6426_v43  ;;  %7991 = vlog2.f32 %v6402_v58 }
 0x5f9   : > { %v7986_v30 = vpop.eup %7985 }
 0x5fa   : > { %v7988_v57 = vpop.eup %7987  ;;  %6467 = vst [vmem:[%s10935_s10 + $0x30] sm:$0xff] %v6451_v60  ;;  %v6428_v6 = vmul.f32 0.6931472, %v7986_v30 }
 0x5fb   : > { %v6422_v63 = vmul.f32 0.6931472, %v7988_v57  ;;  %v6404_v44 = vpop.xlane.xlu1 %6403 }
 0x5fc   : > { %v6452_v7 = vsub.f32 %v10888_v40, %v6428_v6  ;;  %7993 = vlog2.f32 %v6404_v44  ;;  %v6398_v4 = vpop.xlane.xlu0 %6397 }
 0x5fd   : > { %v7990_v26 = vpop.eup %7989  ;;  %v6449_v31 = vsub.f32 %v10891_v5, %v6422_v63  ;;  %7995 = vlog2.f32 %v6398_v4 }
 0x5fe   : > { %6468 = vst [vmem:[%s10935_s10 + $0x38] sm:$0xff] %v6452_v7  ;;  %v6424_v8 = vmul.f32 0.6931472, %v7990_v26 }
 0x5ff   : > { %6465 = vst [vmem:[%s10935_s10 + $0x20] sm:$0xff] %v6449_v31  ;;  %v6400_v20 = vpop.xlane.xlu1 %6399 }
 0x600   : > { %v6450_v1 = vsub.f32 %v10896_v11, %v6424_v8  ;;  %7997 = vlog2.f32 %v6400_v20 }
 0x602   : > { %6466 = vst [vmem:[%s10935_s10 + $0x28] sm:$0xff] %v6450_v1 }
 0x605   : > { %v7992_v14 = vpop.eup %7991 }
 0x606   : > { %v6434_v18 = vmul.f32 0.6931472, %v7992_v14 }
 0x608   : > { %v6455_v40 = vsub.f32 %v10900_v50, %v6434_v18 }
 0x609   : > { %v7994_v41 = vpop.eup %7993  ;;  %v6406_v61 = vpop.xlane.xlu0 %6405 }
 0x60a   : > { %v7996_v34 = vpop.eup %7995  ;;  %6471 = vst [vmem:[%s10935_s10 + $0x50] sm:$0xff] %v6455_v40  ;;  %v6436_v5 = vmul.f32 0.6931472, %v7994_v41  ;;  %7999 = vlog2.f32 %v6406_v61 }
 0x60b   : > { %v6430_v33 = vmul.f32 0.6931472, %v7996_v34 }
 0x60c   : > { %v6456_v21 = vsub.f32 %v10904_v2, %v6436_v5 }
 0x60d   : > { %v7998_v16 = vpop.eup %7997  ;;  %v6453_v11 = vsub.f32 %v10907_v9, %v6430_v33  ;;  %v6408_v54 = vpop.xlane.xlu1 %6407 }
 0x60e   : > { %6472 = vst [vmem:[%s10935_s10 + $0x58] sm:$0xff] %v6456_v21  ;;  %v6432_v45 = vmul.f32 0.6931472, %v7998_v16  ;;  %8001 = vlog2.f32 %v6408_v54  ;;  %v6410_v50 = vpop.xlane.xlu0 %6409 }
 0x60f   : > { %6469 = vst [vmem:[%s10935_s10 + $0x40] sm:$0xff] %v6453_v11  ;;  %8003 = vlog2.f32 %v6410_v50 }
 0x610   : > { %v6454_v22 = vsub.f32 %v10912_v51, %v6432_v45 }
 0x611   : > { %v6412_v56 = vpop.xlane.xlu1 %6411 }
 0x612   : > { %6470 = vst [vmem:[%s10935_s10 + $0x48] sm:$0xff] %v6454_v22  ;;  %8005 = vlog2.f32 %v6412_v56 }
 0x617   : > { %v8000_v2 = vpop.eup %7999 }
 0x618   : > { %v6438_v23 = vmul.f32 0.6931472, %v8000_v2 }
 0x61a   : > { %v6457_v9 = vsub.f32 %v10916_v17, %v6438_v23 }
 0x61b   : > { %v8002_v48 = vpop.eup %8001 }
 0x61c   : > { %v8004_v28 = vpop.eup %8003  ;;  %6473 = vst [vmem:[%s10935_s10 + $0x60] sm:$0xff] %v6457_v9  ;;  %v6440_v10 = vmul.f32 0.6931472, %v8002_v48 }
 0x61d   : > { %v6442_v49 = vmul.f32 0.6931472, %v8004_v28 }
 0x61e   : > { %v6458_v52 = vsub.f32 %v10920_v55, %v6440_v10 }
 0x61f   : > { %v8006_v29 = vpop.eup %8005  ;;  %v6459_v38 = vsub.f32 %v10923_v42, %v6442_v49 }
 0x620   : > { %6474 = vst [vmem:[%s10935_s10 + $0x68] sm:$0xff] %v6458_v52  ;;  %v6444_v51 = vmul.f32 0.6931472, %v8006_v29 }
 0x621   : > { %6475 = vst [vmem:[%s10935_s10 + $0x70] sm:$0xff] %v6459_v38 }
 0x622   : > { %v6460_v59 = vsub.f32 %v10928_v12, %v6444_v51 }
 0x624   : > { %6476 = vst [vmem:[%s10935_s10 + $0x78] sm:$0xff] %v6460_v59 }
 0x625 PF: > { %s20_s30 = sadd.s32 1, %s8044_s30  }
 0x626   : > { %p17_p1 = scmp.ge.s32.totalorder %s20_s30, 4  }
 0x628   :  { %19 = sbr.rel (!%p17_p1) target bundleno = 1 (0x1), region = 91 }
 0x62d   :  { %6499 = vsyncpa [#allocation3], 1 }
 0x62e   :  { %6501 = vsyncpa [#allocation3 + $0x1], 1 }

</bundles_post_ra>
